<compile_context>
chip_gen: v7x
topology: tpu7x:2x2x1
jax: 0.10.0
libtpu: 0.0.40
codegen_flags: <defaults>
</compile_context>

<pallas_src>
import jax
import jax.numpy as jnp
from jax.experimental import pallas as pl
from jax.experimental.pallas import tpu as pltpu


def user_encode_kernel(
    ridx_ref,   # (B*H, 1) int32  rating indices (ur_history), node-major flat
    p_ref,      # (B*H, D)        post embeddings (up_history), node-major flat
    uatt_ref,   # (B, E)   f32    precomputed u_rep @ att1b + b_att1
    r2e_ref,    # (Rp, E)  f32    folded rating table r2e @ w1b (rows >= R zero)
    we_ref,     # (D, E)   bf16   w_e weight (transposed)
    be_ref,     # (1, E)   f32
    w1a_ref,    # (E, E)   bf16   w_1 half acting on p_embed
    b1_ref,     # (1, E)   f32
    w2_ref,     # (E, E)   bf16
    b2_ref,     # (1, E)   f32
    a1a_ref,    # (E, E)   bf16   att1 half acting on o
    a2_ref,     # (E, E)   bf16
    ba2_ref,    # (1, E)   f32
    a3_ref,     # (1, E)   f32    att3 weight as a row (VPU multiply + reduce)
    ba3_ref,    # (1, 1)   f32
    out_ref,    # (B, E)   f32
):
    BH, _ = p_ref.shape
    B, E = out_ref.shape
    H = BH // B
    Rp = r2e_ref.shape[0]
    f32 = jnp.float32
    bf16 = jnp.bfloat16

    # ---- per-history-item MLP, all B*H rows fused into full MXU passes ----
    # p_embed = relu(w_e(p)) : bf16 operands (cast in-register), f32 accumulation.
    p_bf = p_ref[...].astype(bf16)
    pe = jnp.dot(p_bf, we_ref[...], preferred_element_type=f32)
    pe = jnp.maximum(pe + be_ref[...], 0.0)                              # (BH, E)

    # Rating-embedding gather fused with w_1's rating half:
    # one_hot(ridx) @ (r2e @ w1b) -- exact f32 row-select of the folded table.
    onehot = (jax.lax.broadcasted_iota(jnp.int32, (BH, Rp), 1)
              == ridx_ref[...]).astype(f32)                              # (BH, Rp)
    r_w1b = jnp.dot(onehot, r2e_ref[...], preferred_element_type=f32)    # (BH, E)

    # x = relu(w_1(cat(p_embed, r_embed)))  (split-weight form, rating half folded)
    x = jnp.maximum(
        jnp.dot(pe.astype(bf16), w1a_ref[...], preferred_element_type=f32)
        + r_w1b + b1_ref[...], 0.0)                                      # (BH, E)

    # o = relu(w_2(x))
    o = jnp.maximum(
        jnp.dot(x.astype(bf16), w2_ref[...], preferred_element_type=f32)
        + b2_ref[...], 0.0)                                              # (BH, E)

    # ---- attention over the H history rows of each node ----
    a = jnp.dot(o.astype(bf16), a1a_ref[...], preferred_element_type=f32)  # (BH, E)
    a = jnp.maximum(a.reshape(B, H, E) + uatt_ref[...][:, None, :], 0.0)   # (B, H, E)
    a = jnp.maximum(
        jnp.dot(a.reshape(BH, E).astype(bf16), a2_ref[...],
                preferred_element_type=f32) + ba2_ref[...], 0.0)           # (BH, E)

    # att3 (E -> 1) as VPU multiply + lane reduction (no 1-column MXU pass).
    logits = jnp.sum((a * a3_ref[...]).reshape(B, H, E), axis=-1,
                     keepdims=True) + ba3_ref[...]                       # (B, H, 1)

    # Softmax over the H axis, independently per node.
    m = jnp.max(logits, axis=1, keepdims=True)                           # (B, 1, 1)
    e = jnp.exp(logits - m)                                              # (B, H, 1)
    denom = jnp.sum(e, axis=1, keepdims=True)                            # (B, 1, 1)
    inv = pl.reciprocal(denom, approx=True)
    inv = inv * (2.0 - denom * inv)       # one Newton step -> ~f32 accuracy
    att = e * inv                                                        # (B, H, 1)

    # out[b] = sum_h att[b, h] * o[b, h, :]
    out = jnp.sum(att * o.reshape(B, H, E), axis=1)                      # (B, E)
    out_ref[...] = out.astype(out_ref.dtype)


def user_encode(p_hist, r_idx, u_rep, r2e_w, params, *, block_nodes=None):
    """p_hist: (N,H,768), r_idx: (N,H) int, u_rep: (N,E), r2e_w: (R,E) -> (N,E) f32."""
    N, H, D = p_hist.shape
    E = u_rep.shape[-1]
    R = r2e_w.shape[0]

    (we_T, be, w1a_T, w1b_T, b1, w2_T, b2,
     a1a_T, a1b_T, ba1, a2_T, ba2, a3_T, ba3) = params

    # --- block size: fill the MXU M dimension (~2048 fused rows per step),
    #     keep >= 4 grid steps when N allows (2 per TensorCore on v7x), and
    #     keep the node count per block a multiple of 8 (sublane tiling). ---
    if block_nodes is None:
        B = max(1, 2048 // H)
        B = min(B, max(8, pl.cdiv(N, 4)))
    else:
        B = block_nodes
    B = max(8, ((B + 7) // 8) * 8)
    grid = pl.cdiv(N, B)
    BH = B * H

    # Zero-copy views only: no pad-concatenate, no full-tensor dtype cast of
    # p_hist in HBM.  The ragged node tail is handled by the cdiv grid (OOB
    # output rows are masked; all in-kernel math is strictly per node).
    p_flat = p_hist.reshape(N * H, D)                  # free contiguous view
    ridx = r_idx.reshape(N * H, 1).astype(jnp.int32)
    u_rep = u_rep.astype(jnp.float32)

    # Tiny resident tables/weights.  Algebraic folds (exact, f32):
    #   r2e_fold = r2e @ w1b        -> rating half of w_1 disappears in-kernel
    #   u_att    = u_rep @ a1b + ba1 -> user half of att1 disappears in-kernel
    Rp = ((R + 7) // 8) * 8
    r2e_fold = jnp.zeros((Rp, E), jnp.float32).at[:R, :].set(
        r2e_w.astype(jnp.float32) @ w1b_T.astype(jnp.float32))
    u_att = u_rep @ a1b_T.astype(jnp.float32) + ba1.astype(jnp.float32)   # (N, E)

    bf16 = jnp.bfloat16
    we_bf = we_T.astype(bf16)
    w1a_bf = w1a_T.astype(bf16)
    w2_bf = w2_T.astype(bf16)
    a1a_bf = a1a_T.astype(bf16)
    a2_bf = a2_T.astype(bf16)
    a3_row = a3_T.reshape(1, E).astype(jnp.float32)

    full = lambda shape: pl.BlockSpec(shape, lambda i: (0,) * len(shape))

    in_specs = [
        pl.BlockSpec((BH, 1), lambda i: (i, 0)),   # ridx
        pl.BlockSpec((BH, D), lambda i: (i, 0)),   # p (streamed, cast in-kernel)
        pl.BlockSpec((B, E), lambda i: (i, 0)),    # u_att = u_rep @ a1b + ba1
        full((Rp, E)),                             # folded rating table (resident)
        full((D, E)), full((1, E)),                # w_e (bf16), b_e
        full((E, E)), full((1, E)),                # w_1a (bf16), b_1
        full((E, E)), full((1, E)),                # w_2 (bf16), b_2
        full((E, E)),                              # att1a (bf16)
        full((E, E)), full((1, E)),                # att2 (bf16), b_att2
        full((1, E)), full((1, 1)),                # att3 row, b_att3
    ]

    # Double-buffered p block dominates VMEM; give the compiler headroom
    # (stay under v7x's 64 MiB physical VMEM).
    p_block_bytes = BH * D * p_flat.dtype.itemsize
    vmem_limit = int(min(60 << 20, max(32 << 20, 6 * p_block_bytes)))

    out = pl.pallas_call(
        user_encode_kernel,
        out_shape=jax.ShapeDtypeStruct((N, E), jnp.float32),
        grid_spec=pltpu.PrefetchScalarGridSpec(
            num_scalar_prefetch=0,
            grid=(grid,),
            in_specs=in_specs,
            out_specs=pl.BlockSpec((B, E), lambda i: (i, 0)),
        ),
        compiler_params=pltpu.CompilerParams(
            dimension_semantics=("parallel",),   # megacore-shardable on v7x
            vmem_limit_bytes=vmem_limit,
        ),
    )(ridx, p_flat, u_att, r2e_fold, we_bf, be, w1a_bf, b1,
      w2_bf, b2, a1a_bf, a2_bf, ba2, a3_row, ba3)
    return out


def reference(p_hist, r_idx, u_rep, r2e_w, params):
    """Vectorized pure-JAX f32 reference of UserEncode.forward (eval mode)."""
    (we_T, be, w1a_T, w1b_T, b1, w2_T, b2,
     a1a_T, a1b_T, ba1, a2_T, ba2, a3_T, ba3) = params
    r_emb = r2e_w[r_idx]                                                 # (N,H,E)
    pe = jax.nn.relu(jnp.einsum('nhd,de->nhe', p_hist, we_T) + be)
    x = jax.nn.relu(jnp.einsum('nhe,ef->nhf', pe, w1a_T)
                    + jnp.einsum('nhe,ef->nhf', r_emb, w1b_T) + b1)
    o = jax.nn.relu(jnp.einsum('nhe,ef->nhf', x, w2_T) + b2)
    a = jax.nn.relu(jnp.einsum('nhe,ef->nhf', o, a1a_T)
                    + (u_rep @ a1b_T)[:, None, :] + ba1)
    a = jax.nn.relu(jnp.einsum('nhe,ef->nhf', a, a2_T) + ba2)
    logits = jnp.einsum('nhe,ef->nhf', a, a3_T) + ba3                    # (N,H,1)
    att = jax.nn.softmax(logits, axis=1)                                 # over H
    return jnp.einsum('nhf,nhe->ne', att, o)                             # f = 1


def reference_mxu(p_hist, r_idx, u_rep, r2e_w, params):
    """Reference reproducing the kernel's exact mixed precision:
    bf16 MXU operands with f32 accumulation, all other math f32."""
    bf, f32 = jnp.bfloat16, jnp.float32
    (we_T, be, w1a_T, w1b_T, b1, w2_T, b2,
     a1a_T, a1b_T, ba1, a2_T, ba2, a3_T, ba3) = params
    N, H, D = p_hist.shape
    E = u_rep.shape[-1]
    mm = lambda x, w: jnp.dot(x.astype(bf), w.astype(bf), preferred_element_type=f32)
    p = p_hist.reshape(N * H, D)
    pe = jax.nn.relu(mm(p, we_T) + be)
    r_w1b = (r2e_w.astype(f32) @ w1b_T.astype(f32))[r_idx.reshape(-1)]   # f32 fold
    x = jax.nn.relu(mm(pe, w1a_T) + r_w1b + b1)
    o = jax.nn.relu(mm(x, w2_T) + b2)
    u_att = u_rep.astype(f32) @ a1b_T.astype(f32) + ba1                  # f32 fold
    a = jax.nn.relu(mm(o, a1a_T).reshape(N, H, E) + u_att[:, None, :])
    a = jax.nn.relu(mm(a.reshape(N * H, E), a2_T) + ba2)
    logits = (jnp.sum(a * a3_T.reshape(1, E), axis=-1).reshape(N, H, 1) + ba3)
    att = jax.nn.softmax(logits, axis=1)
    return jnp.einsum('nhf,nhe->ne', att, o.reshape(N, H, E))


if __name__ == "__main__":
    # Small shapes consistent with the module: embed_dim=32, 768-d post
    # embeddings, 8 history items per node, 50 nodes (ragged: cdiv grid with a
    # masked tail block -- no wrapper-side padding of the inputs).
    N, H, D, E = 50, 8, 768, 32
    NUM_USERS, NUM_RATINGS = 64, 5

    key = jax.random.PRNGKey(0)
    keys = jax.random.split(key, 12)

    # Embedding tables (u2e / r2e; i2e is unused in forward).
    u2e_w = jax.random.normal(keys[0], (NUM_USERS, E), jnp.float32) * 0.1
    r2e_w = jax.random.normal(keys[1], (NUM_RATINGS, E), jnp.float32) * 0.1

    # Linear params (stored transposed: x @ W_T + b).
    def lin(k, fan_in, fan_out):
        kw, kb = jax.random.split(k)
        bound = 1.0 / jnp.sqrt(fan_in)
        w = jax.random.uniform(kw, (fan_in, fan_out), jnp.float32, -bound, bound)
        b = jax.random.uniform(kb, (1, fan_out), jnp.float32, -bound, bound)
        return w, b

    we_T, be = lin(keys[2], D, E)                      # w_e: 768 -> E
    w1_T, b1 = lin(keys[3], 2 * E, E)                  # w_1: 2E -> E
    w1a_T, w1b_T = w1_T[:E], w1_T[E:]
    w2_T, b2 = lin(keys[4], E, E)                      # w_2: E -> E
    a1_T, ba1 = lin(keys[5], 2 * E, E)                 # attention att1
    a1a_T, a1b_T = a1_T[:E], a1_T[E:]
    a2_T, ba2 = lin(keys[6], E, E)                     # attention att2
    a3_T, ba3 = lin(keys[7], E, 1)                     # attention att3

    params = (we_T, be, w1a_T, w1b_T, b1, w2_T, b2,
              a1a_T, a1b_T, ba1, a2_T, ba2, a3_T, ba3)

    # Synthetic forward inputs (nodes, up_history / ur_history analogues).
    nodes = jax.random.randint(keys[8], (N,), 0, NUM_USERS)
    p_hist = jax.random.normal(keys[9], (N, H, D), jnp.float32)
    r_idx = jax.random.randint(keys[10], (N, H), 0, NUM_RATINGS)

    u_rep = u2e_w[nodes]                               # (N, E) gather (glue)

    out = user_encode(p_hist, r_idx, u_rep, r2e_w, params)
    out = jax.block_until_ready(out)
    assert out.shape == (N, E)

    # Tight check: reference with the kernel's exact bf16-operand / f32-acc
    # quantization points (validates all kernel mechanics: grid, BlockSpecs,
    # ragged tail masking, gather, attention, softmax).
    ref_q = reference_mxu(p_hist, r_idx, u_rep, r2e_w, params)
    assert jnp.allclose(out, ref_q, rtol=2e-3, atol=2e-3), \
        "mismatch vs mixed-precision reference"

    # Loose check: full-f32 semantics of the original module (bf16 MXU
    # operands perturb outputs at the ~1e-3 level).
    ref_f32 = reference(p_hist, r_idx, u_rep, r2e_w, params)
    assert jnp.allclose(out, ref_f32, rtol=5e-2, atol=5e-2), \
        "mismatch vs f32 reference"

    print("KERNEL_OK")
</pallas_src>

<mosaic_0001>
module attributes {stable_mosaic.version = 11 : i64} {
  func.func @user_encode_kernel(%arg0: i32, %arg1: memref<128x1xi32, #tpu.memory_space<vmem>>, %arg2: memref<128x768xf32, #tpu.memory_space<vmem>>, %arg3: memref<16x32xf32, #tpu.memory_space<vmem>>, %arg4: memref<8x32xf32, #tpu.memory_space<vmem>>, %arg5: memref<768x32xbf16, #tpu.memory_space<vmem>>, %arg6: memref<1x32xf32, #tpu.memory_space<vmem>>, %arg7: memref<32x32xbf16, #tpu.memory_space<vmem>>, %arg8: memref<1x32xf32, #tpu.memory_space<vmem>>, %arg9: memref<32x32xbf16, #tpu.memory_space<vmem>>, %arg10: memref<1x32xf32, #tpu.memory_space<vmem>>, %arg11: memref<32x32xbf16, #tpu.memory_space<vmem>>, %arg12: memref<32x32xbf16, #tpu.memory_space<vmem>>, %arg13: memref<1x32xf32, #tpu.memory_space<vmem>>, %arg14: memref<1x32xf32, #tpu.memory_space<vmem>>, %arg15: memref<1x1xf32, #tpu.memory_space<vmem>>, %arg16: memref<16x32xf32, #tpu.memory_space<vmem>>) attributes {dimension_semantics = [#tpu.dimension_semantics<parallel>], iteration_bounds = array<i64: 4>, scalar_prefetch = 0 : i64, scratch_operands = 0 : i64, tpu.core_type = #tpu.core_type<tc>, window_params = [{transform_indices = @transform_0, window_bounds = array<i64: 128, 1>}, {transform_indices = @transform_1, window_bounds = array<i64: 128, 768>}, {transform_indices = @transform_2, window_bounds = array<i64: 16, 32>}, {pipeline_mode = #tpu.pipeline_mode<synchronous>, transform_indices = @transform_3, window_bounds = array<i64: 8, 32>}, {pipeline_mode = #tpu.pipeline_mode<synchronous>, transform_indices = @transform_4, window_bounds = array<i64: 768, 32>}, {pipeline_mode = #tpu.pipeline_mode<synchronous>, transform_indices = @transform_5, window_bounds = array<i64: 1, 32>}, {pipeline_mode = #tpu.pipeline_mode<synchronous>, transform_indices = @transform_6, window_bounds = array<i64: 32, 32>}, {pipeline_mode = #tpu.pipeline_mode<synchronous>, transform_indices = @transform_7, window_bounds = array<i64: 1, 32>}, {pipeline_mode = #tpu.pipeline_mode<synchronous>, transform_indices = @transform_8, window_bounds = array<i64: 32, 32>}, {pipeline_mode = #tpu.pipeline_mode<synchronous>, transform_indices = @transform_9, window_bounds = array<i64: 1, 32>}, {pipeline_mode = #tpu.pipeline_mode<synchronous>, transform_indices = @transform_10, window_bounds = array<i64: 32, 32>}, {pipeline_mode = #tpu.pipeline_mode<synchronous>, transform_indices = @transform_11, window_bounds = array<i64: 32, 32>}, {pipeline_mode = #tpu.pipeline_mode<synchronous>, transform_indices = @transform_12, window_bounds = array<i64: 1, 32>}, {pipeline_mode = #tpu.pipeline_mode<synchronous>, transform_indices = @transform_13, window_bounds = array<i64: 1, 32>}, {pipeline_mode = #tpu.pipeline_mode<synchronous>, transform_indices = @transform_14, window_bounds = array<i64: 1, 1>}, {transform_indices = @transform_15, window_bounds = array<i64: 16, 32>}]} {
    %c0 = arith.constant 0 : index
    %c0_0 = arith.constant 0 : index
    %0 = vector.load %arg2[%c0, %c0_0] : memref<128x768xf32, #tpu.memory_space<vmem>>, vector<128x768xf32>
    %1 = arith.truncf %0 : vector<128x768xf32> to vector<128x768xbf16>
    %c0_1 = arith.constant 0 : index
    %c0_2 = arith.constant 0 : index
    %2 = vector.load %arg5[%c0_1, %c0_2] : memref<768x32xbf16, #tpu.memory_space<vmem>>, vector<768x32xbf16>
    %cst = arith.constant dense<0.000000e+00> : vector<128x32xf32>
    %3 = tpu.matmul %1, %2, %cst {dimension_numbers = #tpu.dot_dimension_numbers<[1], [0], [0], [1], [0, 0, 1, 1], [], []>} : vector<128x768xbf16>, vector<768x32xbf16>, vector<128x32xf32> -> vector<128x32xf32>
    %c0_3 = arith.constant 0 : index
    %c0_4 = arith.constant 0 : index
    %4 = vector.load %arg6[%c0_3, %c0_4] : memref<1x32xf32, #tpu.memory_space<vmem>>, vector<1x32xf32>
    %5 = vector.broadcast %4 : vector<1x32xf32> to vector<128x32xf32>
    %6 = arith.addf %3, %5 : vector<128x32xf32>
    %cst_5 = arith.constant 0.000000e+00 : f32
    %7 = vector.broadcast %cst_5 : f32 to vector<128x32xf32>
    %8 = arith.maximumf %6, %7 : vector<128x32xf32>
    %9 = tpu.iota {dimensions = array<i32: 1>} : vector<128x8xi32>
    %c0_6 = arith.constant 0 : index
    %c0_7 = arith.constant 0 : index
    %10 = vector.load %arg1[%c0_6, %c0_7] : memref<128x1xi32, #tpu.memory_space<vmem>>, vector<128x1xi32>
    %11 = vector.broadcast %10 : vector<128x1xi32> to vector<128x8xi32>
    %12 = arith.cmpi eq, %9, %11 : vector<128x8xi32>
    %13 = arith.extui %12 : vector<128x8xi1> to vector<128x8xi32>
    %14 = arith.sitofp %13 : vector<128x8xi32> to vector<128x8xf32>
    %c0_8 = arith.constant 0 : index
    %c0_9 = arith.constant 0 : index
    %15 = vector.load %arg4[%c0_8, %c0_9] : memref<8x32xf32, #tpu.memory_space<vmem>>, vector<8x32xf32>
    %cst_10 = arith.constant dense<0.000000e+00> : vector<128x32xf32>
    %16 = tpu.matmul %14, %15, %cst_10 {dimension_numbers = #tpu.dot_dimension_numbers<[1], [0], [0], [1], [0, 0, 1, 1], [], []>} : vector<128x8xf32>, vector<8x32xf32>, vector<128x32xf32> -> vector<128x32xf32>
    %17 = arith.truncf %8 : vector<128x32xf32> to vector<128x32xbf16>
    %c0_11 = arith.constant 0 : index
    %c0_12 = arith.constant 0 : index
    %18 = vector.load %arg7[%c0_11, %c0_12] : memref<32x32xbf16, #tpu.memory_space<vmem>>, vector<32x32xbf16>
    %cst_13 = arith.constant dense<0.000000e+00> : vector<128x32xf32>
    %19 = tpu.matmul %17, %18, %cst_13 {dimension_numbers = #tpu.dot_dimension_numbers<[1], [0], [0], [1], [0, 0, 1, 1], [], []>} : vector<128x32xbf16>, vector<32x32xbf16>, vector<128x32xf32> -> vector<128x32xf32>
    %20 = arith.addf %19, %16 : vector<128x32xf32>
    %c0_14 = arith.constant 0 : index
    %c0_15 = arith.constant 0 : index
    %21 = vector.load %arg8[%c0_14, %c0_15] : memref<1x32xf32, #tpu.memory_space<vmem>>, vector<1x32xf32>
    %22 = vector.broadcast %21 : vector<1x32xf32> to vector<128x32xf32>
    %23 = arith.addf %20, %22 : vector<128x32xf32>
    %cst_16 = arith.constant 0.000000e+00 : f32
    %24 = vector.broadcast %cst_16 : f32 to vector<128x32xf32>
    %25 = arith.maximumf %23, %24 : vector<128x32xf32>
    %26 = arith.truncf %25 : vector<128x32xf32> to vector<128x32xbf16>
    %c0_17 = arith.constant 0 : index
    %c0_18 = arith.constant 0 : index
    %27 = vector.load %arg9[%c0_17, %c0_18] : memref<32x32xbf16, #tpu.memory_space<vmem>>, vector<32x32xbf16>
    %cst_19 = arith.constant dense<0.000000e+00> : vector<128x32xf32>
    %28 = tpu.matmul %26, %27, %cst_19 {dimension_numbers = #tpu.dot_dimension_numbers<[1], [0], [0], [1], [0, 0, 1, 1], [], []>} : vector<128x32xbf16>, vector<32x32xbf16>, vector<128x32xf32> -> vector<128x32xf32>
    %c0_20 = arith.constant 0 : index
    %c0_21 = arith.constant 0 : index
    %29 = vector.load %arg10[%c0_20, %c0_21] : memref<1x32xf32, #tpu.memory_space<vmem>>, vector<1x32xf32>
    %30 = vector.broadcast %29 : vector<1x32xf32> to vector<128x32xf32>
    %31 = arith.addf %28, %30 : vector<128x32xf32>
    %cst_22 = arith.constant 0.000000e+00 : f32
    %32 = vector.broadcast %cst_22 : f32 to vector<128x32xf32>
    %33 = arith.maximumf %31, %32 : vector<128x32xf32>
    %34 = arith.truncf %33 : vector<128x32xf32> to vector<128x32xbf16>
    %c0_23 = arith.constant 0 : index
    %c0_24 = arith.constant 0 : index
    %35 = vector.load %arg11[%c0_23, %c0_24] : memref<32x32xbf16, #tpu.memory_space<vmem>>, vector<32x32xbf16>
    %cst_25 = arith.constant dense<0.000000e+00> : vector<128x32xf32>
    %36 = tpu.matmul %34, %35, %cst_25 {dimension_numbers = #tpu.dot_dimension_numbers<[1], [0], [0], [1], [0, 0, 1, 1], [], []>} : vector<128x32xbf16>, vector<32x32xbf16>, vector<128x32xf32> -> vector<128x32xf32>
    %37 = vector.shape_cast %36 : vector<128x32xf32> to vector<16x8x32xf32>
    %c0_26 = arith.constant 0 : index
    %c0_27 = arith.constant 0 : index
    %38 = vector.load %arg3[%c0_26, %c0_27] : memref<16x32xf32, #tpu.memory_space<vmem>>, vector<16x32xf32>
    %39 = vector.shape_cast %38 : vector<16x32xf32> to vector<16x1x32xf32>
    %40 = vector.broadcast %39 : vector<16x1x32xf32> to vector<16x8x32xf32>
    %41 = arith.addf %37, %40 : vector<16x8x32xf32>
    %cst_28 = arith.constant 0.000000e+00 : f32
    %42 = vector.broadcast %cst_28 : f32 to vector<16x8x32xf32>
    %43 = arith.maximumf %41, %42 : vector<16x8x32xf32>
    %44 = vector.shape_cast %43 : vector<16x8x32xf32> to vector<128x32xf32>
    %45 = arith.truncf %44 : vector<128x32xf32> to vector<128x32xbf16>
    %c0_29 = arith.constant 0 : index
    %c0_30 = arith.constant 0 : index
    %46 = vector.load %arg12[%c0_29, %c0_30] : memref<32x32xbf16, #tpu.memory_space<vmem>>, vector<32x32xbf16>
    %cst_31 = arith.constant dense<0.000000e+00> : vector<128x32xf32>
    %47 = tpu.matmul %45, %46, %cst_31 {dimension_numbers = #tpu.dot_dimension_numbers<[1], [0], [0], [1], [0, 0, 1, 1], [], []>} : vector<128x32xbf16>, vector<32x32xbf16>, vector<128x32xf32> -> vector<128x32xf32>
    %c0_32 = arith.constant 0 : index
    %c0_33 = arith.constant 0 : index
    %48 = vector.load %arg13[%c0_32, %c0_33] : memref<1x32xf32, #tpu.memory_space<vmem>>, vector<1x32xf32>
    %49 = vector.broadcast %48 : vector<1x32xf32> to vector<128x32xf32>
    %50 = arith.addf %47, %49 : vector<128x32xf32>
    %cst_34 = arith.constant 0.000000e+00 : f32
    %51 = vector.broadcast %cst_34 : f32 to vector<128x32xf32>
    %52 = arith.maximumf %50, %51 : vector<128x32xf32>
    %c0_35 = arith.constant 0 : index
    %c0_36 = arith.constant 0 : index
    %53 = vector.load %arg14[%c0_35, %c0_36] : memref<1x32xf32, #tpu.memory_space<vmem>>, vector<1x32xf32>
    %54 = vector.broadcast %53 : vector<1x32xf32> to vector<128x32xf32>
    %55 = arith.mulf %52, %54 : vector<128x32xf32>
    %56 = vector.shape_cast %55 : vector<128x32xf32> to vector<16x8x32xf32>
    %cst_37 = arith.constant dense<0.000000e+00> : vector<16x8xf32>
    %57 = vector.multi_reduction <add>, %56, %cst_37 [2] : vector<16x8x32xf32> to vector<16x8xf32>
    %58 = vector.shape_cast %57 : vector<16x8xf32> to vector<16x8x1xf32>
    %c0_38 = arith.constant 0 : index
    %c0_39 = arith.constant 0 : index
    %59 = vector.load %arg15[%c0_38, %c0_39] : memref<1x1xf32, #tpu.memory_space<vmem>>, vector<1x1xf32>
    %60 = vector.shape_cast %59 : vector<1x1xf32> to vector<1x1x1xf32>
    %61 = vector.broadcast %60 : vector<1x1x1xf32> to vector<16x8x1xf32>
    %62 = arith.addf %58, %61 : vector<16x8x1xf32>
    %cst_40 = arith.constant dense<0xFF800000> : vector<16x1xf32>
    %63 = vector.multi_reduction <maximumf>, %62, %cst_40 [1] : vector<16x8x1xf32> to vector<16x1xf32>
    %64 = vector.shape_cast %63 : vector<16x1xf32> to vector<16x1x1xf32>
    %65 = vector.broadcast %64 : vector<16x1x1xf32> to vector<16x8x1xf32>
    %66 = arith.subf %62, %65 : vector<16x8x1xf32>
    %67 = math.exp %66 : vector<16x8x1xf32>
    %cst_41 = arith.constant dense<0.000000e+00> : vector<16x1xf32>
    %68 = vector.multi_reduction <add>, %67, %cst_41 [1] : vector<16x8x1xf32> to vector<16x1xf32>
    %69 = vector.shape_cast %68 : vector<16x1xf32> to vector<16x1x1xf32>
    %70 = tpu.reciprocal %69 {approx = true} : vector<16x1x1xf32> -> vector<16x1x1xf32>
    %71 = arith.mulf %69, %70 : vector<16x1x1xf32>
    %cst_42 = arith.constant 2.000000e+00 : f32
    %72 = vector.broadcast %cst_42 : f32 to vector<16x1x1xf32>
    %73 = arith.subf %72, %71 : vector<16x1x1xf32>
    %74 = arith.mulf %70, %73 : vector<16x1x1xf32>
    %75 = vector.broadcast %74 : vector<16x1x1xf32> to vector<16x8x1xf32>
    %76 = arith.mulf %67, %75 : vector<16x8x1xf32>
    %77 = vector.shape_cast %33 : vector<128x32xf32> to vector<16x8x32xf32>
    %78 = vector.broadcast %76 : vector<16x8x1xf32> to vector<16x8x32xf32>
    %79 = arith.mulf %78, %77 : vector<16x8x32xf32>
    %cst_43 = arith.constant dense<0.000000e+00> : vector<16x32xf32>
    %80 = vector.multi_reduction <add>, %79, %cst_43 [1] : vector<16x8x32xf32> to vector<16x32xf32>
    %c0_44 = arith.constant 0 : index
    %c0_45 = arith.constant 0 : index
    %81 = vector.load %arg16[%c0_44, %c0_45] : memref<16x32xf32, #tpu.memory_space<vmem>>, vector<16x32xf32>
    tpu.vector_store %arg16[%c0_44, %c0_45], %80 {strides = array<i32>} : memref<16x32xf32, #tpu.memory_space<vmem>>, vector<16x32xf32>,
    return
  }
  func.func @transform_0(%arg0: i32) -> (i32, i32) {
    %c0_i32 = arith.constant 0 : i32
    %c0_i32_0 = arith.constant 0 : i32
    return %arg0, %c0_i32 : i32, i32
  }
  func.func @transform_1(%arg0: i32) -> (i32, i32) {
    %c0_i32 = arith.constant 0 : i32
    %c0_i32_0 = arith.constant 0 : i32
    return %arg0, %c0_i32 : i32, i32
  }
  func.func @transform_2(%arg0: i32) -> (i32, i32) {
    %c0_i32 = arith.constant 0 : i32
    %c0_i32_0 = arith.constant 0 : i32
    return %arg0, %c0_i32 : i32, i32
  }
  func.func @transform_3(%arg0: i32) -> (i32, i32) {
    %c0_i32 = arith.constant 0 : i32
    %c0_i32_0 = arith.constant 0 : i32
    %c0_i32_1 = arith.constant 0 : i32
    return %c0_i32, %c0_i32_0 : i32, i32
  }
  func.func @transform_4(%arg0: i32) -> (i32, i32) {
    %c0_i32 = arith.constant 0 : i32
    %c0_i32_0 = arith.constant 0 : i32
    %c0_i32_1 = arith.constant 0 : i32
    return %c0_i32, %c0_i32_0 : i32, i32
  }
  func.func @transform_5(%arg0: i32) -> (i32, i32) {
    %c0_i32 = arith.constant 0 : i32
    %c0_i32_0 = arith.constant 0 : i32
    %c0_i32_1 = arith.constant 0 : i32
    return %c0_i32, %c0_i32_0 : i32, i32
  }
  func.func @transform_6(%arg0: i32) -> (i32, i32) {
    %c0_i32 = arith.constant 0 : i32
    %c0_i32_0 = arith.constant 0 : i32
    %c0_i32_1 = arith.constant 0 : i32
    return %c0_i32, %c0_i32_0 : i32, i32
  }
  func.func @transform_7(%arg0: i32) -> (i32, i32) {
    %c0_i32 = arith.constant 0 : i32
    %c0_i32_0 = arith.constant 0 : i32
    %c0_i32_1 = arith.constant 0 : i32
    return %c0_i32, %c0_i32_0 : i32, i32
  }
  func.func @transform_8(%arg0: i32) -> (i32, i32) {
    %c0_i32 = arith.constant 0 : i32
    %c0_i32_0 = arith.constant 0 : i32
    %c0_i32_1 = arith.constant 0 : i32
    return %c0_i32, %c0_i32_0 : i32, i32
  }
  func.func @transform_9(%arg0: i32) -> (i32, i32) {
    %c0_i32 = arith.constant 0 : i32
    %c0_i32_0 = arith.constant 0 : i32
    %c0_i32_1 = arith.constant 0 : i32
    return %c0_i32, %c0_i32_0 : i32, i32
  }
  func.func @transform_10(%arg0: i32) -> (i32, i32) {
    %c0_i32 = arith.constant 0 : i32
    %c0_i32_0 = arith.constant 0 : i32
    %c0_i32_1 = arith.constant 0 : i32
    return %c0_i32, %c0_i32_0 : i32, i32
  }
  func.func @transform_11(%arg0: i32) -> (i32, i32) {
    %c0_i32 = arith.constant 0 : i32
    %c0_i32_0 = arith.constant 0 : i32
    %c0_i32_1 = arith.constant 0 : i32
    return %c0_i32, %c0_i32_0 : i32, i32
  }
  func.func @transform_12(%arg0: i32) -> (i32, i32) {
    %c0_i32 = arith.constant 0 : i32
    %c0_i32_0 = arith.constant 0 : i32
    %c0_i32_1 = arith.constant 0 : i32
    return %c0_i32, %c0_i32_0 : i32, i32
  }
  func.func @transform_13(%arg0: i32) -> (i32, i32) {
    %c0_i32 = arith.constant 0 : i32
    %c0_i32_0 = arith.constant 0 : i32
    %c0_i32_1 = arith.constant 0 : i32
    return %c0_i32, %c0_i32_0 : i32, i32
  }
  func.func @transform_14(%arg0: i32) -> (i32, i32) {
    %c0_i32 = arith.constant 0 : i32
    %c0_i32_0 = arith.constant 0 : i32
    %c0_i32_1 = arith.constant 0 : i32
    return %c0_i32, %c0_i32_0 : i32, i32
  }
  func.func @transform_15(%arg0: i32) -> (i32, i32) {
    %c0_i32 = arith.constant 0 : i32
    %c0_i32_0 = arith.constant 0 : i32
    return %arg0, %c0_i32 : i32, i32
  }
}

</mosaic_0001>

<bundles_post_ra>
// kernel: tpu_custom_call.1
= control target key start
LH: loop header
LB: loop body
LE: loop exit
PB: predicated region body
PF: predicated region fallthrough
CT: control target
= control target key end

     0   :  { %s6500_s0 = inlined_call_operand.vmem [shape: s32[400,1], index: 0, kind: input, shape index: {}]   ;;  %s6501_s1 = inlined_call_operand.hbm [shape: f32[400,768], index: 1, kind: input, shape index: {}]   ;;  %s6502_s2 = inlined_call_operand.vmem [shape: f32[50,32], index: 2, kind: input, shape index: {}]   ;;  %s6503_s3 = inlined_call_operand.hbm [shape: f32[8,32], index: 3, kind: input, shape index: {}]   ;;  %s6504_s4 = inlined_call_operand.vmem [shape: bf16[768,32], index: 4, kind: input, shape index: {}]   ;;  %s6505_s5 = inlined_call_operand.hbm [shape: f32[1,32], index: 5, kind: input, shape index: {}]   ;;  %s6506_s6 = inlined_call_operand.hbm [shape: bf16[32,32], index: 6, kind: input, shape index: {}]   ;;  %s6507_s7 = inlined_call_operand.hbm [shape: f32[1,32], index: 7, kind: input, shape index: {}]   ;;  %s6508_s8 = inlined_call_operand.hbm [shape: bf16[32,32], index: 8, kind: input, shape index: {}]   ;;  %s6509_s9 = inlined_call_operand.hbm [shape: f32[1,32], index: 9, kind: input, shape index: {}]   ;;  %s6510_s10 = inlined_call_operand.hbm [shape: bf16[32,32], index: 10, kind: input, shape index: {}]   ;;  %s6511_s11 = inlined_call_operand.hbm [shape: bf16[32,32], index: 11, kind: input, shape index: {}]   ;;  %s6512_s12 = inlined_call_operand.hbm [shape: f32[1,32], index: 12, kind: input, shape index: {}]   ;;  %s6513_s13 = inlined_call_operand.hbm [shape: f32[1,32], index: 13, kind: input, shape index: {}]   ;;  %s6514_s14 = inlined_call_operand.<no memory space> [shape: f32[1,1], index: 14, kind: input, shape index: {}]   ;;  %s6515_s15 = inlined_call_operand.vmem [shape: f32[50,32], index: 15, kind: output, shape index: {}]  }
   0x1   :  { %6544 = sst [smem:[#allocation33_spill]] %s6500_s0  ;;  %v20_v0 = vstv %s6514_s14 }
   0x2   :  { %6545 = sst [smem:[#allocation34_spill]] %s6502_s2  ;;  %21 = vst [vmem:[#allocation2] sm:$0x1] %v20_v0 }
   0x3   :  { %6546 = sst [smem:[#allocation35_spill]] %s6503_s3 }
   0x4   :  { %6547 = sst [smem:[#allocation36_spill]] %s6504_s4 }
   0x5   :  { %6548 = sst [smem:[#allocation37_spill]] %s6506_s6 }
   0x6   :  { %6549 = sst [smem:[#allocation38_spill]] %s6515_s15 }
   0x7   :  { %22 = vsyncpa [#allocation4], 0 }
   0x8   :  { %24 = vsyncpa [#allocation4 + $0x1], 0 }
   0x9   :  { %25 = vsyncpa [#allocation6], 0 }
   0xa   :  { %26 = vsyncpa [#allocation9], 0 }
   0xb   :  { %27 = vsyncpa [#allocation12], 0 }
   0xc   :  { %28 = vsyncpa [#allocation15], 0 }
   0xd   :  { %29 = vsyncpa [#allocation18], 0  ;;  %s5238_s20 = smov 0   ;;  %s5240_s21 = smov 0  }
   0xe   :  { %s5242_s22 = smov 0   ;;  %s5244_s23 = smov 0  }
   0xf LB: > { %s5257_s14 = sadd.s32 4294967295, %s5103_s23   ;;  %s5260_s24 = sadd.s32 1, %s5103_s23   ;;  %s5103_s23 = sphi %s5244_s23, %s6604_s23   ;;  %s5099_s22 = sphi %s5242_s22, %s6608_s22   ;;  %s5095_s21 = sphi %s5240_s21, %s6607_s21   ;;  %s5091_s20 = sphi %s5238_s20, %s6606_s20  }
  0x10   : > { %6550 = sst [smem:[#allocation27_spill]] %s5257_s14  ;;  %s65_s25 = ssub.s32 %s5103_s23, %s5260_s24 }
  0x11   : > { %6551 = sst [smem:[#allocation28_spill]] %s5260_s24  ;;  %s68_s26 = sadd.s32 1, %s5099_s22 }
  0x12   : > { %p66_p0 = scmp.eq.s32.totalorder %s65_s25, 0  ;;  %p75_p1 = scmp.ne.s32.totalorder %s5099_s22, %s5095_s21 }
  0x13   : > { %p76_p2 = scmp.eq.s32.totalorder %s5103_s23, 0  ;;  %p81_p3 = scmp.ne.s32.totalorder %s5095_s21, %s5091_s20 }
  0x14   : > { %s5270_s27 = scalar_select %p66_p0, %s5099_s22, %s68_s26  }
  0x15   : > { %p5272_p4 = por %p76_p2, %p75_p1  ;;  %p6519_p5 = scmp.eq.s32.totalorder %s5257_s14, 0 }
  0x16   : > { %6552 = sst [smem:[#allocation29_spill]] %s5270_s27  ;;  %p383_p6 = scmp.eq.s32.totalorder %s5257_s14, 3 }
  0x17   : > { %s6553_s28 = scalar_select %p5272_p4, 1, 0 }
  0x18   : > { %p3825_p7 = scmp.ge.s32.totalorder %s5103_s23, 1  ;;  %p5281_p8 = por %p6519_p5, %p81_p3 }
  0x19   : > { %p396_p9 = scmp.lt.s32.totalorder %s5103_s23, 5  ;;  %p5286_p10 = por %p383_p6, %p75_p1 }
  0x1a   : > { %s6554_s29 = scalar_select %p5281_p8, 1, 0 }
  0x1b   : > { %s6556_s30 = scalar_select %p5286_p10, 1, 0 }
  0x1c   : > { %6555 = sst [smem:[#allocation30_spill]] %s6554_s29  ;;  %p5290_p11 = pnand %p3825_p7, %p396_p9 }
  0x1d   : > { %6557 = sst [smem:[#allocation31_spill]] %s6556_s30  ;;  %s5137_s17 = smov [#allocation5]  }
  0x1e   : > { %s6558_s16 = scalar_select %p5290_p11, 1, 0 }
  0x1f   : > { %s409_s18 = sshll.u32 %s5137_s17, 4  ;;  %p4421_p12 = pneg %p5290_p11  ;;  %s410_s18 = int_to_ptr.vmem [resolvable:$true] %s409_s18 }
  0x20   : > { %s5138_s19 = smov [#allocation8]   ;;  %s5139_s26 = smov [#allocation11]  }
  0x21   : > { %s433_s20 = sshll.u32 %s5138_s19, 4  ;;  %p5298_p13 = pnand %p4421_p12, %p6519_p5  ;;  %s5302_s20 = int_to_ptr.vmem [resolvable:$true] %s433_s20 }
  0x22   : > { %s5304_s27 = sshll.u32 %s5139_s26, 4  ;;  %s6560_s3 = sld [smem:[#allocation35_spill]]  ;;  %s458_s27 = int_to_ptr.vmem [resolvable:$true] %s5304_s27 }
  0x23   : > { %p5314_p1 = pneg %p5298_p13 }
  0x28   : > { %s4709_s17 = scalar_lea.hbm %s6560_s3, 128 }
  0x29   : > { %p4710_p0 = scmp.ne.s32.totalorder %s6560_s3, %s4709_s17  ;;  %p4716_p6 = scmp.lt.u32.totalorder %s4709_s17, %s6560_s3 }
  0x2b   : > { %p4712_p2 = pnand %p5314_p1, %p4710_p0 }
  0x2d   : > { %p4713_p3 = pneg %p4712_p2 }
  0x2f   : > { %p4718_p7 = pnand %p4716_p6, %p4713_p3 }
  0x31   : > { %4721 = shalt.err (!%p4718_p7)
}
  0x32   : > { %s4722_s15 = scalar_lea.vmem %s410_s18, 128  ;;  %p4730_p10 = scmp.lt.s32.totalorder %s410_s18, %s410_s18 }
  0x33   : > { %p4723_p9 = scmp.ne.s32.totalorder %s410_s18, %s4722_s15  ;;  %p4731_p8 = scmp.lt.s32.totalorder %s4722_s15, %s4722_s15 }
  0x35   : > { %p4725_p12 = pnand %p4723_p9, %p5314_p1  ;;  %p4732_p11 = por %p4731_p8, %p4730_p10 }
  0x37   : > { %p4726_p5 = pneg %p4725_p12 }
  0x39   : > { %p4733_p4 = pnand %p4732_p11, %p4726_p5 }
  0x3b   : > { %4736 = shalt.err (!%p4733_p4)
}
  0x3c   : > { %4424 = dma.hbm_to_vmem [thread:$0]  (!%p5298_p13), %s6560_s3, 128, %s410_s18, [#allocation6]  }
  0x3d   : > { %s6562_s6 = sld [smem:[#allocation37_spill]] }
  0x43   : > { %s4737_s17 = scalar_lea.hbm %s6562_s6, 256 }
  0x44   : > { %p4738_p0 = scmp.ne.s32.totalorder %s6562_s6, %s4737_s17  ;;  %p4744_p4 = scmp.lt.u32.totalorder %s4737_s17, %s6562_s6 }
  0x46   : > { %p4740_p2 = pnand %p4738_p0, %p5314_p1 }
  0x48   : > { %p4741_p8 = pneg %p4740_p2 }
  0x4a   : > { %p4746_p5 = pnand %p4744_p4, %p4741_p8 }
  0x4c   : > { %4749 = shalt.err (!%p4746_p5)
}
  0x4d   : > { %s4750_s18 = scalar_lea.vmem %s5302_s20, 256  ;;  %p4758_p6 = scmp.lt.s32.totalorder %s5302_s20, %s5302_s20 }
  0x4e   : > { %p4751_p10 = scmp.ne.s32.totalorder %s5302_s20, %s4750_s18  ;;  %p4759_p7 = scmp.lt.s32.totalorder %s4750_s18, %s4750_s18 }
  0x50   : > { %p4753_p11 = pnand %p4751_p10, %p5314_p1  ;;  %p4760_p9 = por %p4759_p7, %p4758_p6 }
  0x52   : > { %p4754_p3 = pneg %p4753_p11 }
  0x54   : > { %p4761_p12 = pnand %p4760_p9, %p4754_p3 }
  0x56   : > { %4764 = shalt.err (!%p4761_p12)
}
  0x57   : > { %s5140_s4 = smov 64   ;;  %s5141_s14 = smov 4  }
  0x58   : > { %4430 = dma.hbm_to_vmem [thread:$0]  (!%p5298_p13), %s6562_s6, 256, %s5302_s20, [#allocation9], %s5140_s4, %s5140_s4, %s5141_s14  }
  0x59   : > { %s4765_s17 = scalar_lea.hbm %s6508_s8, 256 }
  0x5a   : > { %p4766_p0 = scmp.ne.s32.totalorder %s6508_s8, %s4765_s17  ;;  %p4772_p4 = scmp.lt.u32.totalorder %s4765_s17, %s6508_s8 }
  0x5c   : > { %p4768_p2 = pnand %p4766_p0, %p5314_p1 }
  0x5e   : > { %p4769_p8 = pneg %p4768_p2 }
  0x60   : > { %p4774_p5 = pnand %p4772_p4, %p4769_p8 }
  0x62   : > { %4777 = shalt.err (!%p4774_p5)
}
  0x63   : > { %s4778_s2 = scalar_lea.vmem %s458_s27, 256  ;;  %p4786_p6 = scmp.lt.s32.totalorder %s458_s27, %s458_s27 }
  0x64   : > { %p4779_p10 = scmp.ne.s32.totalorder %s458_s27, %s4778_s2  ;;  %p4787_p7 = scmp.lt.s32.totalorder %s4778_s2, %s4778_s2 }
  0x66   : > { %p4781_p11 = pnand %p4779_p10, %p5314_p1  ;;  %p4788_p9 = por %p4787_p7, %p4786_p6 }
  0x68   : > { %p4782_p3 = pneg %p4781_p11 }
  0x6a   : > { %p4789_p12 = pnand %p4788_p9, %p4782_p3 }
  0x6c   : > { %4792 = shalt.err (!%p4789_p12)
}
  0x6d   : > { %4436 = dma.hbm_to_vmem [thread:$0]  (!%p5298_p13), %s6508_s8, 256, %s458_s27, [#allocation12], %s5140_s4, %s5140_s4, %s5141_s14  }
  0x6e   : > { %s5142_s24 = smov [#allocation14]   ;;  %s5143_s30 = smov [#allocation17]  }
  0x6f   : > { %s481_s0 = sshll.u32 %s5142_s24, 4  ;;  %s508_s17 = sshll.u32 %s5143_s30, 4  ;;  %s482_s0 = int_to_ptr.vmem [resolvable:$true] %s481_s0  ;;  %s509_s17 = int_to_ptr.vmem [resolvable:$true] %s508_s17 }
  0x70   : > { %s4793_s18 = scalar_lea.hbm %s6510_s10, 256 }
  0x71   : > { %p4794_p0 = scmp.ne.s32.totalorder %s6510_s10, %s4793_s18  ;;  %p4800_p4 = scmp.lt.u32.totalorder %s4793_s18, %s6510_s10 }
  0x73   : > { %p4796_p2 = pnand %p4794_p0, %p5314_p1 }
  0x75   : > { %p4797_p8 = pneg %p4796_p2 }
  0x77   : > { %p4802_p5 = pnand %p4800_p4, %p4797_p8 }
  0x79   : > { %4805 = shalt.err (!%p4802_p5)
}
  0x7a   : > { %s4806_s27 = scalar_lea.vmem %s482_s0, 256  ;;  %p4814_p6 = scmp.lt.s32.totalorder %s482_s0, %s482_s0 }
  0x7b   : > { %p4807_p10 = scmp.ne.s32.totalorder %s482_s0, %s4806_s27  ;;  %p4815_p7 = scmp.lt.s32.totalorder %s4806_s27, %s4806_s27 }
  0x7d   : > { %p4809_p11 = pnand %p4807_p10, %p5314_p1  ;;  %p4816_p9 = por %p4815_p7, %p4814_p6 }
  0x7f   : > { %p4810_p3 = pneg %p4809_p11 }
  0x81   : > { %p4817_p12 = pnand %p4816_p9, %p4810_p3 }
  0x83   : > { %4820 = shalt.err (!%p4817_p12)
}
  0x84   : > { %4442 = dma.hbm_to_vmem [thread:$0]  (!%p5298_p13), %s6510_s10, 256, %s482_s0, [#allocation15], %s5140_s4, %s5140_s4, %s5141_s14  }
  0x85   : > { %s4821_s30 = scalar_lea.hbm %s6512_s12, 16 }
  0x86   : > { %p4822_p0 = scmp.ne.s32.totalorder %s6512_s12, %s4821_s30  ;;  %p4828_p4 = scmp.lt.u32.totalorder %s4821_s30, %s6512_s12 }
  0x88   : > { %p4824_p2 = pnand %p4822_p0, %p5314_p1 }
  0x8a   : > { %p4825_p8 = pneg %p4824_p2 }
  0x8c   : > { %p4830_p5 = pnand %p4828_p4, %p4825_p8 }
  0x8e   : > { %4833 = shalt.err (!%p4830_p5)
}
  0x8f   : > { %s4834_s3 = scalar_lea.vmem %s509_s17, 16  ;;  %s4841_s0 = scalar_lea.vmem %s509_s17, 32 }
  0x90   : > { %p4835_p10 = scmp.ne.s32.totalorder %s509_s17, %s4834_s3  ;;  %p4842_p6 = scmp.lt.s32.totalorder %s509_s17, %s509_s17 }
  0x91   : > { %p4843_p7 = scmp.lt.s32.totalorder %s4841_s0, %s4834_s3 }
  0x92   : > { %p4837_p11 = pnand %p4835_p10, %p5314_p1 }
  0x93   : > { %p4844_p9 = por %p4843_p7, %p4842_p6 }
  0x94   : > { %p4838_p3 = pneg %p4837_p11 }
  0x96   : > { %p4845_p12 = pnand %p4844_p9, %p4838_p3 }
  0x98   : > { %4848 = shalt.err (!%p4845_p12)
}
  0x99   : > { %4448 = dma.hbm_to_vmem [thread:$0]  (!%p5298_p13), %s6512_s12, 16, %s509_s17, [#allocation18]  }
  0x9a   : > { %s5144_s29 = smov [#allocation7]   ;;  %s5145_s24 = smov [#allocation10]  }
  0x9b   : > { %s423_s20 = sshll.u32 %s5144_s29, 4  ;;  %s447_s30 = sshll.u32 %s5145_s24, 4  ;;  %s424_s20 = int_to_ptr.vmem [resolvable:$true] %s423_s20  ;;  %s448_s30 = int_to_ptr.vmem [resolvable:$true] %s447_s30 }
  0x9c   : > { %s4849_s18 = scalar_lea.hbm %s6505_s5, 16 }
  0x9d   : > { %p4850_p0 = scmp.ne.s32.totalorder %s6505_s5, %s4849_s18  ;;  %p4856_p4 = scmp.lt.u32.totalorder %s4849_s18, %s6505_s5 }
  0x9f   : > { %p4852_p2 = pnand %p4850_p0, %p5314_p1 }
  0xa1   : > { %p4853_p8 = pneg %p4852_p2 }
  0xa3   : > { %p4858_p5 = pnand %p4856_p4, %p4853_p8 }
  0xa5   : > { %4861 = shalt.err (!%p4858_p5)
}
  0xa6   : > { %s4862_s17 = scalar_lea.vmem %s424_s20, 16  ;;  %s4869_s6 = scalar_lea.vmem %s424_s20, 32 }
  0xa7   : > { %p4863_p10 = scmp.ne.s32.totalorder %s424_s20, %s4862_s17  ;;  %p4870_p6 = scmp.lt.s32.totalorder %s424_s20, %s424_s20 }
  0xa8   : > { %p4871_p7 = scmp.lt.s32.totalorder %s4869_s6, %s4862_s17 }
  0xa9   : > { %p4865_p11 = pnand %p4863_p10, %p5314_p1 }
  0xaa   : > { %p4872_p9 = por %p4871_p7, %p4870_p6 }
  0xab   : > { %p4866_p3 = pneg %p4865_p11 }
  0xad   : > { %p4873_p12 = pnand %p4872_p9, %p4866_p3 }
  0xaf   : > { %4876 = shalt.err (!%p4873_p12)
}
  0xb0   : > { %4427 = dma.hbm_to_vmem [thread:$0]  (!%p5298_p13), %s6505_s5, 16, %s424_s20, [#allocation6]  }
  0xb1   : > { %s4877_s18 = scalar_lea.hbm %s6507_s7, 16 }
  0xb2   : > { %p4878_p0 = scmp.ne.s32.totalorder %s6507_s7, %s4877_s18  ;;  %p4884_p4 = scmp.lt.u32.totalorder %s4877_s18, %s6507_s7 }
  0xb4   : > { %p4880_p2 = pnand %p4878_p0, %p5314_p1 }
  0xb6   : > { %p4881_p8 = pneg %p4880_p2 }
  0xb8   : > { %p4886_p5 = pnand %p4884_p4, %p4881_p8 }
  0xba   : > { %4889 = shalt.err (!%p4886_p5)
}
  0xbb   : > { %s4890_s17 = scalar_lea.vmem %s448_s30, 16  ;;  %s4897_s20 = scalar_lea.vmem %s448_s30, 32 }
  0xbc   : > { %p4891_p10 = scmp.ne.s32.totalorder %s448_s30, %s4890_s17  ;;  %p4898_p6 = scmp.lt.s32.totalorder %s448_s30, %s448_s30 }
  0xbd   : > { %p4899_p7 = scmp.lt.s32.totalorder %s4897_s20, %s4890_s17 }
  0xbe   : > { %p4893_p11 = pnand %p4891_p10, %p5314_p1 }
  0xbf   : > { %p4900_p9 = por %p4899_p7, %p4898_p6 }
  0xc0   : > { %p4894_p3 = pneg %p4893_p11 }
  0xc2   : > { %p4901_p12 = pnand %p4900_p9, %p4894_p3 }
  0xc4   : > { %4904 = shalt.err (!%p4901_p12)
}
  0xc5   : > { %4433 = dma.hbm_to_vmem [thread:$0]  (!%p5298_p13), %s6507_s7, 16, %s448_s30, [#allocation9]  }
  0xc6   : > { %s5146_s24 = smov [#allocation13]   ;;  %s5147_s15 = smov [#allocation16]  }
  0xc7   : > { %s471_s26 = sshll.u32 %s5146_s24, 4  ;;  %s494_s18 = sshll.u32 %s5147_s15, 4  ;;  %s472_s26 = int_to_ptr.vmem [resolvable:$true] %s471_s26  ;;  %s495_s18 = int_to_ptr.vmem [resolvable:$true] %s494_s18 }
  0xc8   : > { %s4905_s0 = scalar_lea.hbm %s6509_s9, 16 }
  0xc9   : > { %p4906_p0 = scmp.ne.s32.totalorder %s6509_s9, %s4905_s0  ;;  %p4912_p4 = scmp.lt.u32.totalorder %s4905_s0, %s6509_s9 }
  0xcb   : > { %p4908_p2 = pnand %p4906_p0, %p5314_p1 }
  0xcd   : > { %p4909_p8 = pneg %p4908_p2 }
  0xcf   : > { %p4914_p5 = pnand %p4912_p4, %p4909_p8 }
  0xd1   : > { %4917 = shalt.err (!%p4914_p5)
}
  0xd2   : > { %s4918_s30 = scalar_lea.vmem %s472_s26, 16  ;;  %s4925_s29 = scalar_lea.vmem %s472_s26, 32 }
  0xd3   : > { %p4919_p10 = scmp.ne.s32.totalorder %s472_s26, %s4918_s30  ;;  %p4926_p6 = scmp.lt.s32.totalorder %s472_s26, %s472_s26 }
  0xd4   : > { %p4927_p7 = scmp.lt.s32.totalorder %s4925_s29, %s4918_s30 }
  0xd5   : > { %p4921_p11 = pnand %p4919_p10, %p5314_p1 }
  0xd6   : > { %p4928_p9 = por %p4927_p7, %p4926_p6 }
  0xd7   : > { %p4922_p3 = pneg %p4921_p11 }
  0xd9   : > { %p4929_p12 = pnand %p4928_p9, %p4922_p3 }
  0xdb   : > { %4932 = shalt.err (!%p4929_p12)
}
  0xdc   : > { %4439 = dma.hbm_to_vmem [thread:$0]  (!%p5298_p13), %s6509_s9, 16, %s472_s26, [#allocation12]  }
  0xdd   : > { %s4933_s0 = scalar_lea.hbm %s6511_s11, 256 }
  0xde   : > { %p4934_p0 = scmp.ne.s32.totalorder %s6511_s11, %s4933_s0  ;;  %p4940_p4 = scmp.lt.u32.totalorder %s4933_s0, %s6511_s11 }
  0xe0   : > { %p4936_p2 = pnand %p4934_p0, %p5314_p1 }
  0xe2   : > { %p4937_p8 = pneg %p4936_p2 }
  0xe4   : > { %p4942_p5 = pnand %p4940_p4, %p4937_p8 }
  0xe6   : > { %4945 = shalt.err (!%p4942_p5)
}
  0xe7   : > { %s4946_s30 = scalar_lea.vmem %s495_s18, 256  ;;  %p4954_p6 = scmp.lt.s32.totalorder %s495_s18, %s495_s18 }
  0xe8   : > { %p4947_p10 = scmp.ne.s32.totalorder %s495_s18, %s4946_s30  ;;  %p4955_p7 = scmp.lt.s32.totalorder %s4946_s30, %s4946_s30 }
  0xea   : > { %p4949_p11 = pnand %p4947_p10, %p5314_p1  ;;  %p4956_p9 = por %p4955_p7, %p4954_p6 }
  0xec   : > { %p4950_p3 = pneg %p4949_p11 }
  0xee   : > { %p4957_p12 = pnand %p4956_p9, %p4950_p3 }
  0xf0   : > { %4960 = shalt.err (!%p4957_p12)
}
  0xf1   : > { %4445 = dma.hbm_to_vmem [thread:$0]  (!%p5298_p13), %s6511_s11, 256, %s495_s18, [#allocation15], %s5140_s4, %s5140_s4, %s5141_s14  }
  0xf2   : > { %s5148_s24 = smov [#allocation19]   ;;  %s4961_s0 = scalar_lea.hbm %s6513_s13, 16 }
  0xf3   : > { %s519_s15 = sshll.u32 %s5148_s24, 4  ;;  %p4962_p0 = scmp.ne.s32.totalorder %s6513_s13, %s4961_s0  ;;  %s520_s15 = int_to_ptr.vmem [resolvable:$true] %s519_s15 }
  0xf4   : > { %p4968_p4 = scmp.lt.u32.totalorder %s4961_s0, %s6513_s13 }
  0xf5   : > { %p4964_p2 = pnand %p4962_p0, %p5314_p1 }
  0xf7   : > { %p4965_p8 = pneg %p4964_p2 }
  0xf9   : > { %p4970_p5 = pnand %p4968_p4, %p4965_p8 }
  0xfb   : > { %4973 = shalt.err (!%p4970_p5)
}
  0xfc   : > { %s4974_s4 = scalar_lea.vmem %s520_s15, 16  ;;  %s4981_s14 = scalar_lea.vmem %s520_s15, 32 }
  0xfd   : > { %p4975_p10 = scmp.ne.s32.totalorder %s520_s15, %s4974_s4  ;;  %p4982_p6 = scmp.lt.s32.totalorder %s520_s15, %s520_s15 }
  0xfe   : > { %p4983_p7 = scmp.lt.s32.totalorder %s4981_s14, %s4974_s4 }
  0xff   : > { %p4977_p11 = pnand %p4975_p10, %p5314_p1 }
 0x100   : > { %p4984_p9 = por %p4983_p7, %p4982_p6 }
 0x101   : > { %p4978_p3 = pneg %p4977_p11 }
 0x103   : > { %p4985_p12 = pnand %p4984_p9, %p4978_p3 }
 0x105   : > { %4988 = shalt.err (!%p4985_p12)
}
 0x106   : > { %4451 = dma.hbm_to_vmem [thread:$0]  (!%p5298_p13), %s6513_s13, 16, %s520_s15, [#allocation18]  }
 0x107   : > { %p3836_p0 = scmp.ge.s32.totalorder %s5103_s23, 4 }
 0x108   : > { %p6563_p2 = scmp.ne.s32.totalorder (!%p3836_p0), %s6553_s28, 0 }
 0x109   : > { %529 = sbr.rel (%p3836_p0) target bundleno = 308 (0x134), region = 64 }
 0x110   : > { %549 = sbr.rel (!%p6563_p2) target bundleno = 308 (0x134), region = 72  ;;  %s550_s19 = sand.u32 (%p6563_p2), 1, %s5099_s22  }
 0x111   : > { %s3837_s26 = sshll.u32 (%p6563_p2), %s5103_s23, 4  ;;  %s4377_s29 = smul.u32 (%p6563_p2), 768, %s550_s19 }
 0x112   : > { %s556_s24 = ssub.s32 (%p6563_p2), 50, %s3837_s26  ;;  %s5518_s3 = scalar_lea.sflag (%p6563_p2), [#allocation4], %s550_s19 }
 0x113   : > { %p557_p1 = scmp.lt.s32.totalorder (%p6563_p2), %s556_s24, 16  ;;  %s554_s15 = scalar_lea.vmem (%p6563_p2), [#allocation3], %s4377_s29 }
 0x117   : > { %s6610_s24 = smov (!%p557_p1, %s556_s24), 16 }
 0x118   : > { %s5515_s2 = smul.u32 768, %s6610_s24 }
 0x11a   : > { %s562_s25 = ssub.s32 12288, %s5515_s2 }
 0x11b   : > { %563 = vsyncadd %s5518_s3, %s562_s25  ;;  %p3840_p13 = scmp.ne.s32.totalorder %s5515_s2, 0  ;;  %s4378_s28 = smul.u32 12288, %s5103_s23 }
 0x11c   : > { %s569_s0 = sshll.u32 %s554_s15, 4  ;;  %s4993_s23 = scalar_lea.hbm %s6501_s1, 38400  ;;  %s5528_s0 = int_to_ptr.vmem [resolvable:$true] %s569_s0 }
 0x11d   : > { %s5526_s20 = scalar_lea.hbm %s6501_s1, %s4378_s28 }
 0x11e   : > { %s4989_s6 = scalar_lea.hbm %s5526_s20, %s5515_s2  ;;  %p4994_p10 = scmp.lt.u32.totalorder %s5526_s20, %s6501_s1 }
 0x11f   : > { %p4990_p8 = scmp.ne.s32.totalorder %s5526_s20, %s4989_s6  ;;  %p4995_p11 = scmp.lt.u32.totalorder %s4993_s23, %s4989_s6 }
 0x120   : > { %p4997_p6 = scmp.lt.u32.totalorder %s4989_s6, %s5526_s20 }
 0x121   : > { %p4991_p4 = pnand %p4990_p8, %p3840_p13  ;;  %p4996_p3 = por %p4995_p11, %p4994_p10 }
 0x123   : > { %p4992_p5 = pneg %p4991_p4  ;;  %p4998_p7 = por %p4997_p6, %p4996_p3 }
 0x125   : > { %p4999_p9 = pnand %p4998_p7, %p4992_p5 }
 0x127   : > { %5002 = shalt.err (!%p4999_p9)
}
 0x128   : > { %s5003_s19 = scalar_lea.vmem %s5528_s0, %s5515_s2  ;;  %s5149_s26 = smov [#allocation3]  }
 0x129   : > { %p5004_p12 = scmp.ne.s32.totalorder %s5528_s0, %s5003_s19  ;;  %s5007_s29 = sshll.u32 %s5149_s26, 4  ;;  %s5008_s29 = int_to_ptr.vmem [resolvable:$false] %s5007_s29 }
 0x12a   : > { %s5009_s24 = scalar_lea.vmem %s5008_s29, 24576  ;;  %p5010_p1 = scmp.lt.s32.totalorder %s5528_s0, %s5008_s29 }
 0x12b   : > { %p5005_p0 = pnand %p5004_p12, %p3840_p13  ;;  %p5011_p8 = scmp.lt.s32.totalorder %s5009_s24, %s5003_s19 }
 0x12d   : > { %p5006_p2 = pneg %p5005_p0  ;;  %p5012_p4 = por %p5011_p8, %p5010_p1 }
 0x12f   : > { %p5013_p10 = pnand %p5012_p4, %p5006_p2 }
 0x131   : > { %5016 = shalt.err (!%p5013_p10)
}
 0x132   : > { %s5150_s25 = smov 768   ;;  %s5151_s15 = smov 48  }
 0x133   : > { %575 = dma.hbm_to_vmem [thread:$0]  (%p3840_p13), %s5526_s20, %s5515_s2, %s5528_s0, %s5518_s3, %s5150_s25, %s5150_s25, %s5151_s15  }
 0x134 PF: > { %p6564_p5 = scmp.ne.s32.totalorder %s6558_s16, 0 }
 0x136   : > { %598 = sbr.rel (%p6564_p5) target bundleno = 2040 (0x7f8), region = 80 }
 0x13d   : > { %s6565_s28 = sld [smem:[#allocation30_spill]]  ;;  %s5558_s27 = sand.u32 1, %s5095_s21  }
 0x13e   : > { %s4379_s17 = smul.u32 768, %s5558_s27  ;;  %s601_s6 = scalar_lea.sflag [#allocation4], %s5558_s27 }
 0x140   : > { %s5562_s4 = scalar_lea.vmem [#allocation3], %s4379_s17 }
 0x143   : > { %p6566_p11 = scmp.ne.s32.totalorder %s6565_s28, 0 }
 0x145   : > { %5066 = dma.done.wait (%p6566_p11), %s601_s6, 12288  }
 0x146   : > { %5068 = vsyncadd (%p6566_p11), %s601_s6, 4294955008  ;;  %s6567_s2 = sld [smem:[#allocation27_spill]] }
 0x14c   : > { %p6568_p13 = scmp.eq.s32.totalorder %s6567_s2, 0 }
 0x14e   : > { %5070 = dma.done.wait (%p6568_p13), [#allocation6], 144   ;;  %p6569_p3 = pmov %p6568_p13 }
 0x150   : > { %5072 = vsyncadd (%p6569_p3), [#allocation6], 4294967152  ;;  %p6570_p6 = pmov %p6569_p3 }
 0x151   : > { %p6571_p7 = pmov %p6569_p3 }
 0x152   : > { %5074 = dma.done.wait (%p6570_p6), [#allocation9], 272  }
 0x153   : > { %5076 = vsyncadd (%p6571_p7), [#allocation9], 4294967024  ;;  %p6572_p9 = pmov %p6569_p3 }
 0x154   : > { %p6573_p12 = pmov %p6569_p3 }
 0x155   : > { %5078 = dma.done.wait (%p6572_p9), [#allocation12], 272  }
 0x156   : > { %5080 = vsyncadd (%p6573_p12), [#allocation12], 4294967024  ;;  %p6574_p0 = pmov %p6569_p3 }
 0x158   : > { %5082 = dma.done.wait (%p6574_p0), [#allocation15], 512   ;;  %p6575_p2 = pmov %p6574_p0 }
 0x159   : > { %p6576_p1 = pmov %p6574_p0 }
 0x15a   : > { %5084 = vsyncadd (%p6575_p2), [#allocation15], 4294966784 }
 0x15b   : > { %5086 = dma.done.wait (%p6576_p1), [#allocation18], 32   ;;  %p6577_p8 = pmov %p6574_p0 }
 0x15c   : > { %s6578_s0 = sld [smem:[#allocation36_spill]]  ;;  %v5152_v15 = vmov 0   ;;  %v749_v34 = vld [vmem:[%s5562_s4 + $0x8] sm:$0xff]  ;;  %v755_v35 = vld [vmem:[%s5562_s4 + $0x38] sm:$0xff]  ;;  %v748_v39 = vld [vmem:[%s5562_s4] sm:$0xff]  ;;  %s5768_s24 = sshll.u32 %s6567_s2, 4 }
 0x15d   : > { %5088 = vsyncadd (%p6577_p8), [#allocation18], 4294967264  ;;  %4585 = vset.pattern.permute.xlu0 %v5152_v15  ;;  %4586 = vset.pattern.permute.xlu1 %v5152_v15  ;;  %v751_v36 = vld [vmem:[%s5562_s4 + $0x18] sm:$0xff]  ;;  %v845_v37 = vpack.c.bf16 %v755_v35, %v749_v34  ;;  %v757_v38 = vld [vmem:[%s5562_s4 + $0x48] sm:$0xff]  ;;  %p713_p4 = scmp.lt.s32.totalorder %s5768_s24, 49  ;;  %s6579_s18 = sld [smem:[#allocation33_spill]] }
 0x15e   : > { %v754_v40 = vld [vmem:[%s5562_s4 + $0x30] sm:$0xff]  ;;  %v847_v41 = vpack.c.bf16 %v757_v38, %v751_v36  ;;  %v756_v44 = vld [vmem:[%s5562_s4 + $0x40] sm:$0xff]  ;;  %v761_v48 = vld [vmem:[%s5562_s4 + $0x68] sm:$0xff]  ;;  %vm1705_vm0 = vcmask 64512   ;;  %s6581_s15 = sld [smem:[#allocation34_spill]]  ;;  %s6601_s17 = sld [smem:[#allocation31_spill]] }
 0x15f   : > { %v844_v42 = vpack.c.bf16 %v754_v40, %v748_v39  ;;  %v750_v43 = vld [vmem:[%s5562_s4 + $0x10] sm:$0xff]  ;;  %1315 = vmatprep.mubr.bf16.mxu0 %v845_v37  ;;  %v767_v49 = vld [vmem:[%s5562_s4 + $0x98] sm:$0xff]  ;;  %v769_v51 = vld [vmem:[%s5562_s4 + $0xa8] sm:$0xff]  ;;  %s714_s3 = scalar_select %p713_p4, %s5768_s24, 49 }
 0x160   : > { %v846_v45 = vpack.c.bf16 %v756_v44, %v750_v43  ;;  %1412 = vmatprep.mubr.bf16.mxu1 %v847_v41  ;;  %v763_v50 = vld [vmem:[%s5562_s4 + $0x78] sm:$0xff]  ;;  %v851_v52 = vpack.c.bf16 %v767_v49, %v761_v48  ;;  %v760_v54 = vld [vmem:[%s5562_s4 + $0x60] sm:$0xff]  ;;  %v766_v55 = vld [vmem:[%s5562_s4 + $0x90] sm:$0xff] }
 0x161   : > { %v853_v53 = vpack.c.bf16 %v769_v51, %v763_v50  ;;  %v762_v56 = vld [vmem:[%s5562_s4 + $0x70] sm:$0xff]  ;;  %v768_v57 = vld [vmem:[%s5562_s4 + $0xa0] sm:$0xff]  ;;  %v850_v58 = vpack.c.bf16 %v766_v55, %v760_v54  ;;  %v773_v62 = vld [vmem:[%s5562_s4 + $0xc8] sm:$0xff]  ;;  %s3857_s20 = sshll.u32 %s714_s3, 3 }
 0x162   : > { %v4587_v1 = vld [vmem:[%s6578_s0 + $0x40] sm:$0xff]   ;;  %v4591_v5 = vld [vmem:[%s6578_s0 + $0x48] sm:$0xff]   ;;  %v4595_v9 = vld [vmem:[%s6578_s0 + $0x50] sm:$0xff]   ;;  %v852_v60 = vpack.c.bf16 %v768_v57, %v762_v56 }
 0x163   : > { %v4588_v2 = vld [vmem:[%s6578_s0 + $0xc0] sm:$0xff]   ;;  %4006 = vmatprep.subr.bf16.mxu0 %v4587_v1  ;;  %v4592_v6 = vld [vmem:[%s6578_s0 + $0xc8] sm:$0xff]   ;;  %v4596_v10 = vld [vmem:[%s6578_s0 + $0xd0] sm:$0xff]   ;;  %s5797_s30 = scalar_lea.vmem %s6579_s18, %s3857_s20 }
 0x164   : > { %v4589_v3 = vld [vmem:[%s6578_s0] sm:$0xff]   ;;  %4070 = vmatprep.subr.bf16.mxu1 %v4588_v2  ;;  %v4593_v7 = vld [vmem:[%s6578_s0 + $0x8] sm:$0xff]   ;;  %v4597_v11 = vld [vmem:[%s6578_s0 + $0x10] sm:$0xff]   ;;  %p6602_p5 = scmp.ne.s32.totalorder %s6601_s17, 0 }
 0x165   : > { %v4590_v4 = vld [vmem:[%s6578_s0 + $0x80] sm:$0xff]   ;;  %4007 = vmatpush3.bf16.msra.mxu0 %v4589_v3  ;;  %v4594_v8 = vld [vmem:[%s6578_s0 + $0x88] sm:$0xff]   ;;  %v4598_v12 = vld [vmem:[%s6578_s0 + $0x90] sm:$0xff]   ;;  %s6603_s20 = sld [smem:[#allocation38_spill]] (%p6602_p5) }
 0x166   : > { %4071 = vmatpush3.bf16.msra.mxu1 %v4590_v4  ;;  %4008 = vmatprep.subr.bf16.mxu0 %v4591_v5  ;;  %v4599_v13 = vld [vmem:[%s6578_s0 + $0x58] sm:$0xff]   ;;  %v4603_v18 = vld [vmem:[%s6578_s0 + $0x60] sm:$0xff]   ;;  %v4607_v22 = vld [vmem:[%s6578_s0 + $0x68] sm:$0xff]  }
 0x167   : > { %4072 = vmatprep.subr.bf16.mxu1 %v4592_v6  ;;  %v4600_v14 = vld [vmem:[%s6578_s0 + $0xd8] sm:$0xff]   ;;  %v4604_v19 = vld [vmem:[%s6578_s0 + $0xe0] sm:$0xff]   ;;  %v4608_v23 = vld [vmem:[%s6578_s0 + $0xe8] sm:$0xff]  }
 0x168   : > { %v4601_v16 = vld [vmem:[%s6578_s0 + $0x18] sm:$0xff]   ;;  %v4605_v20 = vld [vmem:[%s6578_s0 + $0x20] sm:$0xff]   ;;  %v4609_v24 = vld [vmem:[%s6578_s0 + $0x28] sm:$0xff]  }
 0x169   : > { %4009 = vmatpush3.bf16.msra.mxu0 %v4593_v7  ;;  %v4602_v17 = vld [vmem:[%s6578_s0 + $0x98] sm:$0xff]   ;;  %v4606_v21 = vld [vmem:[%s6578_s0 + $0xa0] sm:$0xff]   ;;  %v4610_v25 = vld [vmem:[%s6578_s0 + $0xa8] sm:$0xff]  }
 0x16a   : > { %4073 = vmatpush3.bf16.msra.mxu1 %v4594_v8  ;;  %4010 = vmatprep.subr.bf16.mxu0 %v4595_v9  ;;  %v4611_v26 = vld [vmem:[%s6578_s0 + $0x70] sm:$0xff]   ;;  %v4615_v30 = vld [vmem:[%s6578_s0 + $0x78] sm:$0xff]   ;;  %v4619_v46 = vld [vmem:[%s6578_s0 + $0x140] sm:$0xff]  }
 0x16b   : > { %4074 = vmatprep.subr.bf16.mxu1 %v4596_v10  ;;  %v4612_v27 = vld [vmem:[%s6578_s0 + $0xf0] sm:$0xff]   ;;  %v4616_v31 = vld [vmem:[%s6578_s0 + $0xf8] sm:$0xff]   ;;  %v4620_v47 = vld [vmem:[%s6578_s0 + $0x100] sm:$0xff]   ;;  %s6463_s14 = scalar_lea.vmem (%p6602_p5), %s6603_s20, %s5768_s24  }
 0x16c   : > { %v4613_v28 = vld [vmem:[%s6578_s0 + $0x30] sm:$0xff]   ;;  %v4617_v32 = vld [vmem:[%s6578_s0 + $0x38] sm:$0xff]   ;;  %v4621_v59 = vld [vmem:[%s6578_s0 + $0x148] sm:$0xff]  }
 0x16d   : > { %4011 = vmatpush3.bf16.msra.mxu0 %v4597_v11  ;;  %v4614_v29 = vld [vmem:[%s6578_s0 + $0xb0] sm:$0xff]   ;;  %v4618_v33 = vld [vmem:[%s6578_s0 + $0xb8] sm:$0xff]   ;;  %v4622_v61 = vld [vmem:[%s6578_s0 + $0x108] sm:$0xff]  }
 0x16e   : > { %4075 = vmatpush3.bf16.msra.mxu1 %v4598_v12  ;;  %4012 = vmatprep.subr.bf16.mxu0 %v4599_v13  ;;  %v779_v63 = vld [vmem:[%s5562_s4 + $0xf8] sm:$0xff]  ;;  %v781_v2 = vld [vmem:[%s5562_s4 + $0x108] sm:$0xff]  ;;  %v772_v4 = vld [vmem:[%s5562_s4 + $0xc0] sm:$0xff] }
 0x16f   : > { %4076 = vmatprep.subr.bf16.mxu1 %v4600_v14  ;;  %v857_v0 = vpack.c.bf16 %v779_v63, %v773_v62  ;;  %v775_v1 = vld [vmem:[%s5562_s4 + $0xd8] sm:$0xff]  ;;  %v778_v5 = vld [vmem:[%s5562_s4 + $0xf0] sm:$0xff]  ;;  %v780_v9 = vld [vmem:[%s5562_s4 + $0x100] sm:$0xff] }
 0x170   : > { %v859_v3 = vpack.c.bf16 %v781_v2, %v775_v1  ;;  %v774_v6 = vld [vmem:[%s5562_s4 + $0xd0] sm:$0xff]  ;;  %v785_v10 = vld [vmem:[%s5562_s4 + $0x128] sm:$0xff]  ;;  %v791_v11 = vld [vmem:[%s5562_s4 + $0x158] sm:$0xff]  ;;  %v856_v14 = vpack.c.bf16 %v778_v5, %v772_v4 }
 0x171   : > { %4013 = vmatpush3.bf16.msra.mxu0 %v4601_v16  ;;  %v4623_v7 = vld [vmem:[%s6578_s0 + $0x150] sm:$0xff]   ;;  %v787_v12 = vld [vmem:[%s5562_s4 + $0x138] sm:$0xff]  ;;  %v858_v15 = vpack.c.bf16 %v780_v9, %v774_v6  ;;  %v863_v16 = vpack.c.bf16 %v791_v11, %v785_v10  ;;  %v4629_v34 = vld [vmem:[%s6578_s0 + $0x168] sm:$0xff]  }
 0x172   : > { %4077 = vmatpush3.bf16.msra.mxu1 %v4602_v17  ;;  %4014 = vmatprep.subr.bf16.mxu0 %v4603_v18  ;;  %v4624_v8 = vld [vmem:[%s6578_s0 + $0x110] sm:$0xff]   ;;  %v4625_v17 = vld [vmem:[%s6578_s0 + $0x158] sm:$0xff]   ;;  %v4630_v35 = vld [vmem:[%s6578_s0 + $0x128] sm:$0xff]  }
 0x173   : > { %4078 = vmatprep.subr.bf16.mxu1 %v4604_v19  ;;  %v793_v13 = vld [vmem:[%s5562_s4 + $0x168] sm:$0xff]  ;;  %v4626_v19 = vld [vmem:[%s6578_s0 + $0x118] sm:$0xff]   ;;  %v796_v36 = vld [vmem:[%s5562_s4 + $0x180] sm:$0xff] }
 0x174   : > { %v865_v18 = vpack.c.bf16 %v793_v13, %v787_v12  ;;  %v802_v37 = vld [vmem:[%s5562_s4 + $0x1b0] sm:$0xff]  ;;  %v804_v39 = vld [vmem:[%s5562_s4 + $0x1c0] sm:$0xff]  ;;  %v809_v40 = vld [vmem:[%s5562_s4 + $0x1e8] sm:$0xff] }
 0x175   : > { %4015 = vmatpush3.bf16.msra.mxu0 %v4605_v20  ;;  %v784_v20 = vld [vmem:[%s5562_s4 + $0x120] sm:$0xff]  ;;  %v798_v38 = vld [vmem:[%s5562_s4 + $0x190] sm:$0xff]  ;;  %v815_v41 = vld [vmem:[%s5562_s4 + $0x218] sm:$0xff] }
 0x176   : > { %4079 = vmatpush3.bf16.msra.mxu1 %v4606_v21  ;;  %4016 = vmatprep.subr.bf16.mxu0 %v4607_v22  ;;  %v790_v21 = vld [vmem:[%s5562_s4 + $0x150] sm:$0xff]  ;;  %v817_v43 = vld [vmem:[%s5562_s4 + $0x228] sm:$0xff]  ;;  %v875_v48 = vpack.c.bf16 %v815_v41, %v809_v40  ;;  %v808_v50 = vld [vmem:[%s5562_s4 + $0x1e0] sm:$0xff] }
 0x177   : > { %4080 = vmatprep.subr.bf16.mxu1 %v4608_v23  ;;  %v786_v22 = vld [vmem:[%s5562_s4 + $0x130] sm:$0xff]  ;;  %v792_v23 = vld [vmem:[%s5562_s4 + $0x160] sm:$0xff]  ;;  %v821_v56 = vld [vmem:[%s5562_s4 + $0x248] sm:$0xff] }
 0x178   : > { %v4631_v44 = vld [vmem:[%s6578_s0 + $0x170] sm:$0xff]   ;;  %v4633_v51 = vld [vmem:[%s6578_s0 + $0x178] sm:$0xff]   ;;  %v816_v55 = vld [vmem:[%s5562_s4 + $0x220] sm:$0xff] }
 0x179   : > { %4017 = vmatpush3.bf16.msra.mxu0 %v4609_v24  ;;  %v797_v24 = vld [vmem:[%s5562_s4 + $0x188] sm:$0xff]  ;;  %v4634_v54 = vld [vmem:[%s6578_s0 + $0x138] sm:$0xff]   ;;  %v1592_v9 = vld [vmem:[%s5797_s30] sm:$0xff] }
 0x17a   : > { %4081 = vmatpush3.bf16.msra.mxu1 %v4610_v25  ;;  %4018 = vmatprep.subr.bf16.mxu0 %v4611_v26  ;;  %v803_v25 = vld [vmem:[%s5562_s4 + $0x1b8] sm:$0xff]  ;;  %v826_v1 = vld [vmem:[%s5562_s4 + $0x270] sm:$0xff]  ;;  %v833_v4 = vld [vmem:[%s5562_s4 + $0x2a8] sm:$0xff] }
 0x17b   : > { %4082 = vmatprep.subr.bf16.mxu1 %v4612_v27  ;;  %v4627_v26 = vld [vmem:[%s6578_s0 + $0x160] sm:$0xff]   ;;  %v822_v2 = vld [vmem:[%s5562_s4 + $0x250] sm:$0xff]  ;;  %1609 = vperm.xlu0 %4585, %v1592_v9  }
 0x17c   : > { %v799_v27 = vld [vmem:[%s5562_s4 + $0x198] sm:$0xff]  ;;  %v1594_v10 = vld [vmem:[%s5797_s30 + $0x10] sm:$0xff]  ;;  %v800_v9 = vld [vmem:[%s5562_s4 + $0x1a0] sm:$0xff] }
 0x17d   : > { %4019 = vmatpush3.bf16.msra.mxu0 %v4613_v28  ;;  %v805_v28 = vld [vmem:[%s5562_s4 + $0x1c8] sm:$0xff]  ;;  %v827_v57 = vld [vmem:[%s5562_s4 + $0x278] sm:$0xff]  ;;  %1615 = vperm.xlu1 %4586, %v1594_v10   ;;  %v806_v10 = vld [vmem:[%s5562_s4 + $0x1d0] sm:$0xff] }
 0x17e   : > { %4083 = vmatpush3.bf16.msra.mxu1 %v4614_v29  ;;  %4020 = vmatprep.subr.bf16.mxu0 %v4615_v30  ;;  %v4628_v29 = vld [vmem:[%s6578_s0 + $0x120] sm:$0xff]   ;;  %v862_v30 = vpack.c.bf16 %v790_v21, %v784_v20  ;;  %v881_v62 = vpack.c.bf16 %v827_v57, %v821_v56  ;;  %v1595_v21 = vld [vmem:[%s5797_s30 + $0x18] sm:$0xff]  ;;  %v1605_v56 = vld [vmem:[%s5797_s30 + $0x68] sm:$0xff] }
 0x17f   : > { %4084 = vmatprep.subr.bf16.mxu1 %v4616_v31  ;;  %v864_v31 = vpack.c.bf16 %v792_v23, %v786_v22  ;;  %v839_v5 = vld [vmem:[%s5562_s4 + $0x2d8] sm:$0xff]  ;;  %v825_v22 = vld [vmem:[%s5562_s4 + $0x268] sm:$0xff] }
 0x180   : > { %v835_v6 = vld [vmem:[%s5562_s4 + $0x2b8] sm:$0xff]  ;;  %v887_v12 = vpack.c.bf16 %v839_v5, %v833_v4  ;;  %v794_v4 = vld [vmem:[%s5562_s4 + $0x170] sm:$0xff]  ;;  %v801_v5 = vld [vmem:[%s5562_s4 + $0x1a8] sm:$0xff] }
 0x181   : > { %4021 = vmatpush3.bf16.msra.mxu0 %v4617_v32  ;;  %v869_v32 = vpack.c.bf16 %v803_v25, %v797_v24  ;;  %v759_v20 = vld [vmem:[%s5562_s4 + $0x58] sm:$0xff]  ;;  %v1597_v25 = vld [vmem:[%s5797_s30 + $0x28] sm:$0xff]  ;;  %1618 = vperm.xlu1 %4586, %v1595_v21  }
 0x182   : > { %4085 = vmatpush3.bf16.msra.mxu1 %v4618_v33  ;;  %4134 = vmatprep.subr.bf16.mxu0 %v4619_v46  ;;  %v871_v33 = vpack.c.bf16 %v805_v28, %v799_v27  ;;  %v831_v23 = vld [vmem:[%s5562_s4 + $0x298] sm:$0xff] }
 0x183   : > { %4361 = vmatprep.subr.bf16.mxu1 %v4619_v46  ;;  %v4632_v46 = vld [vmem:[%s6578_s0 + $0x130] sm:$0xff]   ;;  %v1596_v24 = vld [vmem:[%s5797_s30 + $0x20] sm:$0xff] }
 0x184   : > { %1316 = vmatmul.mubr.bf16.vlgmr.msra.gmra.mrb[0].mxu0 %v844_v42  ;;  %v811_v42 = vld [vmem:[%s5562_s4 + $0x1f8] sm:$0xff] }
 0x185   : > { %1413 = vmatmul.mubr.bf16.vlgmr.msra.gmra.mrb[0].mxu1 %v846_v45  ;;  %4135 = vmatpush3.bf16.msra.mxu0 %v4620_v47  ;;  %v868_v45 = vpack.c.bf16 %v802_v37, %v796_v36  ;;  %v877_v49 = vpack.c.bf16 %v817_v43, %v811_v42  ;;  %v765_v36 = vld [vmem:[%s5562_s4 + $0x88] sm:$0xff]  ;;  %v771_v37 = vld [vmem:[%s5562_s4 + $0xb8] sm:$0xff] }
 0x186   : > { %4369 = vmatpush3.bf16.msra.mxu1 %v4620_v47  ;;  %1323 = vmatprep.mubr.bf16.mxu0 %v851_v52  ;;  %v870_v47 = vpack.c.bf16 %v804_v39, %v798_v38  ;;  %v814_v52 = vld [vmem:[%s5562_s4 + $0x210] sm:$0xff]  ;;  %v837_v38 = vld [vmem:[%s5562_s4 + $0x2c8] sm:$0xff]  ;;  %v843_v39 = vld [vmem:[%s5562_s4 + $0x2f8] sm:$0xff] }
 0x187   : > { %1420 = vmatprep.mubr.bf16.mxu1 %v853_v53  ;;  %4136 = vmatprep.subr.bf16.mxu0 %v4621_v59  ;;  %v810_v53 = vld [vmem:[%s5562_s4 + $0x1f0] sm:$0xff]  ;;  %v1600_v40 = vld [vmem:[%s5797_s30 + $0x40] sm:$0xff]  ;;  %v1601_v42 = vld [vmem:[%s5797_s30 + $0x48] sm:$0xff] }
 0x188   : > { %4362 = vmatprep.subr.bf16.mxu1 %v4621_v59  ;;  %v829_v59 = vld [vmem:[%s5562_s4 + $0x288] sm:$0xff]  ;;  %1624 = vperm.xlu1 %4586, %v1597_v25  }
 0x189   : > { %4137 = vmatpush3.bf16.msra.mxu0 %v4622_v61 }
 0x18a   : > { %4370 = vmatpush3.bf16.msra.mxu1 %v4622_v61  ;;  %4138 = vmatprep.subr.bf16.mxu0 %v4623_v7  ;;  %v876_v61 = vpack.c.bf16 %v816_v55, %v810_v53  ;;  %v783_v53 = vld [vmem:[%s5562_s4 + $0x118] sm:$0xff] }
 0x18b   : > { %4363 = vmatprep.subr.bf16.mxu1 %v4623_v7  ;;  %v841_v7 = vld [vmem:[%s5562_s4 + $0x2e8] sm:$0xff] }
 0x18c   : > { %1324 = vmatmul.mubr.bf16.gmra.mrb[4].mxu0 %v850_v58  ;;  %v823_v58 = vld [vmem:[%s5562_s4 + $0x258] sm:$0xff]  ;;  %v889_v13 = vpack.c.bf16 %v841_v7, %v835_v6 }
 0x18d   : > { %1421 = vmatmul.mubr.bf16.gmra.mrb[4].mxu1 %v852_v60  ;;  %1331 = vmatprep.mubr.bf16.mxu0 %v857_v0  ;;  %v874_v60 = vpack.c.bf16 %v814_v52, %v808_v50  ;;  %v883_v63 = vpack.c.bf16 %v829_v59, %v823_v58  ;;  %v820_v0 = vld [vmem:[%s5562_s4 + $0x240] sm:$0xff]  ;;  %v777_v52 = vld [vmem:[%s5562_s4 + $0xe8] sm:$0xff]  ;;  %v807_v6 = vld [vmem:[%s5562_s4 + $0x1d8] sm:$0xff] }
 0x18e   : > { %1428 = vmatprep.mubr.bf16.mxu1 %v859_v3  ;;  %4139 = vmatpush3.bf16.msra.mxu0 %v4624_v8  ;;  %v828_v3 = vld [vmem:[%s5562_s4 + $0x280] sm:$0xff]  ;;  %v861_v58 = vpack.c.bf16 %v783_v53, %v777_v52  ;;  %v1606_v59 = vld [vmem:[%s5797_s30 + $0x70] sm:$0xff] }
 0x18f   : > { %4371 = vmatpush3.bf16.msra.mxu1 %v4624_v8  ;;  %4140 = vmatprep.subr.bf16.mxu0 %v4625_v17  ;;  %v880_v8 = vpack.c.bf16 %v826_v1, %v820_v0  ;;  %v882_v11 = vpack.c.bf16 %v828_v3, %v822_v2  ;;  %v836_v50 = vld [vmem:[%s5562_s4 + $0x2c0] sm:$0xff]  ;;  %v795_v0 = vld [vmem:[%s5562_s4 + $0x178] sm:$0xff] }
 0x190   : > { %4364 = vmatprep.subr.bf16.mxu1 %v4625_v17  ;;  %v834_v17 = vld [vmem:[%s5562_s4 + $0x2b0] sm:$0xff]  ;;  %v788_v3 = vld [vmem:[%s5562_s4 + $0x140] sm:$0xff] }
 0x191   : > { %v866_v7 = vpack.c.bf16 %v794_v4, %v788_v3 }
 0x192   : > { %4141 = vmatpush3.bf16.msra.mxu0 %v4626_v19 }
 0x193   : > { %4372 = vmatpush3.bf16.msra.mxu1 %v4626_v19  ;;  %4142 = vmatprep.subr.bf16.mxu0 %v4627_v26  ;;  %v753_v19 = vld [vmem:[%s5562_s4 + $0x28] sm:$0xff] }
 0x194   : > { %1332 = vmatmul.mubr.bf16.gmra.mrb[8].mxu0 %v856_v14  ;;  %4365 = vmatprep.subr.bf16.mxu1 %v4627_v26  ;;  %v832_v14 = vld [vmem:[%s5562_s4 + $0x2a0] sm:$0xff]  ;;  %v849_v28 = vpack.c.bf16 %v759_v20, %v753_v19  ;;  %v4635_v19 = vld [vmem:[#allocation8] sm:$0xff]   ;;  %v1590_v20 = vlaneseq }
 0x195   : > { %1429 = vmatmul.mubr.bf16.gmra.mrb[8].mxu1 %v858_v15  ;;  %1339 = vmatprep.mubr.bf16.mxu0 %v863_v16  ;;  %v838_v15 = vld [vmem:[%s5562_s4 + $0x2d0] sm:$0xff]  ;;  %v1593_v16 = vld [vmem:[%s5797_s30 + $0x8] sm:$0xff] }
 0x196   : > { %1436 = vmatprep.mubr.bf16.mxu1 %v865_v18  ;;  %4143 = vmatpush3.bf16.msra.mxu0 %v4628_v29  ;;  %v840_v18 = vld [vmem:[%s5562_s4 + $0x2e0] sm:$0xff]  ;;  %v886_v26 = vpack.c.bf16 %v838_v15, %v832_v14  ;;  %v5857_v21 = vand.u32 127, %v1590_v20 }
 0x197   : > { %4373 = vmatpush3.bf16.msra.mxu1 %v4628_v29  ;;  %4144 = vmatprep.subr.bf16.mxu0 %v4629_v34  ;;  %v888_v27 = vpack.c.bf16 %v840_v18, %v834_v17  ;;  %v885_v29 = vpack.c.bf16 %v831_v23, %v825_v22  ;;  %v812_v15 = vld [vmem:[%s5562_s4 + $0x200] sm:$0xff] }
 0x198   : > { %4366 = vmatprep.subr.bf16.mxu1 %v4629_v34  ;;  %1612 = vperm.xlu0 %4585, %v1593_v16   ;;  %v824_v34 = vld [vmem:[%s5562_s4 + $0x260] sm:$0xff]  ;;  %v818_v16 = vld [vmem:[%s5562_s4 + $0x230] sm:$0xff] }
 0x199   : > { %v878_v17 = vpack.c.bf16 %v818_v16, %v812_v15  ;;  %v1704_v18 = vld [vmem:[#allocation5] sm:$0xff] }
 0x19a   : > { %4145 = vmatpush3.bf16.msra.mxu0 %v4630_v35 }
 0x19b   : > { %4374 = vmatpush3.bf16.msra.mxu1 %v4630_v35  ;;  %4146 = vmatprep.subr.bf16.mxu0 %v4631_v44  ;;  %v830_v35 = vld [vmem:[%s5562_s4 + $0x290] sm:$0xff] }
 0x19c   : > { %1340 = vmatmul.mubr.bf16.gmra.mrb[12].mxu0 %v862_v30  ;;  %4367 = vmatprep.subr.bf16.mxu1 %v4631_v44  ;;  %v1598_v30 = vld [vmem:[%s5797_s30 + $0x30] sm:$0xff]  ;;  %v884_v43 = vpack.c.bf16 %v830_v35, %v824_v34  ;;  %v855_v44 = vpack.c.bf16 %v771_v37, %v765_v36 }
 0x19d   : > { %1437 = vmatmul.mubr.bf16.gmra.mrb[12].mxu1 %v864_v31  ;;  %1347 = vmatprep.mubr.bf16.mxu0 %v869_v32  ;;  %v1599_v31 = vld [vmem:[%s5797_s30 + $0x38] sm:$0xff]  ;;  %v752_v32 = vld [vmem:[%s5562_s4 + $0x20] sm:$0xff] }
 0x19e   : > { %1444 = vmatprep.mubr.bf16.mxu1 %v871_v33  ;;  %4147 = vmatpush3.bf16.msra.mxu0 %v4632_v46  ;;  %v758_v33 = vld [vmem:[%s5562_s4 + $0x50] sm:$0xff] }
 0x19f   : > { %4375 = vmatpush3.bf16.msra.mxu1 %v4632_v46  ;;  %4148 = vmatprep.subr.bf16.mxu0 %v4633_v51  ;;  %v848_v41 = vpack.c.bf16 %v758_v33, %v752_v32  ;;  %v1602_v46 = vld [vmem:[%s5797_s30 + $0x50] sm:$0xff] }
 0x1a0   : > { %4368 = vmatprep.subr.bf16.mxu1 %v4633_v51  ;;  %1621 = vperm.xlu0 %4585, %v1596_v24   ;;  %v842_v51 = vld [vmem:[%s5562_s4 + $0x2f0] sm:$0xff]  ;;  %v5153_v24 = vmov 0.0  }
 0x1a1   : > { %1630 = vperm.xlu1 %4586, %v1599_v31   ;;  %v890_v57 = vpack.c.bf16 %v842_v51, %v836_v50 }
 0x1a2   : > { %4149 = vmatpush3.bf16.msra.mxu0 %v4634_v54 }
 0x1a3   : > { %4376 = vmatpush3.bf16.msra.mxu1 %v4634_v54  ;;  %v1604_v54 = vld [vmem:[%s5797_s30 + $0x60] sm:$0xff] }
 0x1a4   : > { %1348 = vmatmul.mubr.bf16.gmra.mrb[16].mxu0 %v868_v45  ;;  %1627 = vperm.xlu0 %4585, %v1598_v30   ;;  %v891_v45 = vpack.c.bf16 %v843_v39, %v837_v38 }
 0x1a5   : > { %1445 = vmatmul.mubr.bf16.gmra.mrb[16].mxu1 %v870_v47  ;;  %1355 = vmatprep.mubr.bf16.mxu0 %v875_v48  ;;  %v1603_v47 = vld [vmem:[%s5797_s30 + $0x58] sm:$0xff]  ;;  %v764_v48 = vld [vmem:[%s5562_s4 + $0x80] sm:$0xff] }
 0x1a6   : > { %1452 = vmatprep.mubr.bf16.mxu1 %v877_v49  ;;  %1636 = vperm.xlu1 %4586, %v1601_v42   ;;  %v770_v49 = vld [vmem:[%s5562_s4 + $0xb0] sm:$0xff] }
 0x1a7   : > { %v854_v55 = vpack.c.bf16 %v770_v49, %v764_v48  ;;  %4255 = vmatprep.subr.mxu1 %v1704_v18 }
 0x1a8   : > { %1633 = vperm.xlu0 %4585, %v1600_v40  }
 0x1aa   : > { %1642 = vperm.xlu1 %4586, %v1603_v47  }
 0x1ac   : > { %1356 = vmatmul.mubr.bf16.gmra.mrb[20].mxu0 %v874_v60  ;;  %1639 = vperm.xlu0 %4585, %v1602_v46   ;;  %v1607_v60 = vld [vmem:[%s5797_s30 + $0x78] sm:$0xff] }
 0x1ad   : > { %1453 = vmatmul.mubr.bf16.gmra.mrb[20].mxu1 %v876_v61  ;;  %1363 = vmatprep.mubr.bf16.mxu0 %v881_v62  ;;  %v776_v61 = vld [vmem:[%s5562_s4 + $0xe0] sm:$0xff]  ;;  %v782_v62 = vld [vmem:[%s5562_s4 + $0x110] sm:$0xff] }
 0x1ae   : > { %1460 = vmatprep.mubr.bf16.mxu1 %v883_v63  ;;  %1648 = vperm.xlu1 %4586, %v1605_v56   ;;  %v789_v63 = vld [vmem:[%s5562_s4 + $0x148] sm:$0xff]  ;;  %v860_v1 = vpack.c.bf16 %v782_v62, %v776_v61 }
 0x1af   : > { %v867_v2 = vpack.c.bf16 %v795_v0, %v789_v63 }
 0x1b0   : > { %1645 = vperm.xlu0 %4585, %v1604_v54  }
 0x1b2   : > { %1654 = vperm.xlu1 %4586, %v1607_v60  }
 0x1b4   : > { %1364 = vmatmul.mubr.bf16.gmra.mrb[24].mxu0 %v880_v8  ;;  %1651 = vperm.xlu0 %4585, %v1606_v59   ;;  %v873_v8 = vpack.c.bf16 %v807_v6, %v801_v5 }
 0x1b5   : > { %1461 = vmatmul.mubr.bf16.gmra.mrb[24].mxu1 %v882_v11  ;;  %1371 = vmatprep.mubr.bf16.mxu0 %v887_v12  ;;  %v813_v11 = vld [vmem:[%s5562_s4 + $0x208] sm:$0xff]  ;;  %v819_v12 = vld [vmem:[%s5562_s4 + $0x238] sm:$0xff]  ;;  %s6099_s4 = sshll.u32 %s6567_s2, 1  ;;  %s3855_s2 = sshll.u32 %s5558_s27, 4 }
 0x1b6   : > { %1468 = vmatprep.mubr.bf16.mxu1 %v889_v13  ;;  %v872_v13 = vpack.c.bf16 %v806_v10, %v800_v9  ;;  %v879_v14 = vpack.c.bf16 %v819_v12, %v813_v11  ;;  %p733_p10 = scmp.lt.s32.totalorder %s6099_s4, 6  ;;  %s6436_s27 = scalar_lea.vmem [#allocation20], %s3855_s2  }
 0x1b7   : > { %s3483_s6 = ssub.s32 (%p6602_p5), 7, %s6099_s4 }
 0x1b8   : > { %s734_s19 = scalar_select %p733_p10, %s6099_s4, 6 }
 0x1b9   : > { %p3484_p11 = scmp.lt.s32.totalorder (%p6602_p5), %s3483_s6, 2 }
 0x1ba   : > { %s3859_s26 = sshll.u32 %s734_s19, 3 }
 0x1bb   : > { %s6107_s28 = scalar_lea.vmem %s6581_s15, %s3859_s26 }
 0x1bc   : > { %1372 = vmatmul.mubr.bf16.gmra.mrb[28].mxu0 %v886_v26 }
 0x1bd   : > { %1469 = vmatmul.mubr.bf16.gmra.mrb[28].mxu1 %v888_v27  ;;  %1509 = vmatprep.mubr.bf16.mxu0 %v849_v28 }
 0x1be   : > { %1557 = vmatprep.mubr.bf16.mxu1 %v885_v29  ;;  %v4636_v29 = vld [vmem:[#allocation8 + $0x8] sm:$0xff]  }
 0x1c4   : > { %1510 = vmatmul.mubr.bf16.vlgmr.msra.gmra.mrb[32].mxu0 %v848_v41 }
 0x1c5   : > { %1558 = vmatmul.mubr.bf16.vlgmr.msra.gmra.mrb[32].mxu1 %v884_v43  ;;  %1517 = vmatprep.mubr.bf16.mxu0 %v855_v44 }
 0x1c6   : > { %1565 = vmatprep.mubr.bf16.mxu1 %v891_v45  ;;  %4256 = vmatpush3.msra.mxu1 %v1704_v18 }
 0x1c7   : > { %4281 = vmatprep.subr.bf16.mxu1 %v4635_v19 }
 0x1cc   : > { %1518 = vmatmul.mubr.bf16.gmra.mrb[36].mxu0 %v854_v55 }
 0x1cd   : > { %1566 = vmatmul.mubr.bf16.gmra.mrb[36].mxu1 %v890_v57  ;;  %1525 = vmatprep.mubr.bf16.mxu0 %v861_v58  ;;  %v5907_v57 = vld [vmem:[#allocation7] ss:$0 sm:$0xff] }
 0x1d4   : > { %1526 = vmatmul.mubr.bf16.gmra.mrb[40].mxu0 %v860_v1 }
 0x1d5   : > { %1533 = vmatprep.mubr.bf16.mxu0 %v867_v2 }
 0x1dc   : > { %1534 = vmatmul.mubr.bf16.gmra.mrb[44].mxu0 %v866_v7 }
 0x1dd   : > { %1541 = vmatprep.mubr.bf16.mxu0 %v873_v8 }
 0x1e4   : > { %1542 = vmatmul.mubr.bf16.gmra.mrb[48].mxu0 %v872_v13 }
 0x1e5   : > { %1549 = vmatprep.mubr.bf16.mxu0 %v879_v14 }
 0x1ec   : > { %1550 = vmatmul.mubr.bf16.gmra.mrb[52].mxu0 %v878_v17 }
 0x1fa   : > { %v1610_v22 = vpop.permute.xlu0 %1609 }
 0x1fb   : > { %vm1656_vm1 = vcmp.eq.s32.totalorder %v5857_v21, %v1610_v22 }
 0x1fc   : > { %v1616_v23 = vpop.permute.xlu1 %1615  ;;  %v3909_v25 = vsel %vm1656_vm1, 1.0, %v5153_v24 }
 0x1fd   : > { %vm1658_vm2 = vcmp.eq.s32.totalorder %v5857_v21, %v1616_v23  ;;  %4257 = vmatprep.mubr.msk.f32.mxu1 %vm1705_vm0, %v3909_v25 }
 0x1fe   : > { %v3911_v27 = vsel %vm1658_vm2, 1.0, %v5153_v24  ;;  %vm2873_vm2 = vcmask 7168  }
 0x200   : > { %v1619_v28 = vpop.permute.xlu1 %1618 }
 0x201   : > { %vm1659_vm4 = vcmp.eq.s32.totalorder %v5857_v21, %v1619_v28 }
 0x202   : > { %v3912_v31 = vsel %vm1659_vm4, 1.0, %v5153_v24  ;;  %vm3452_vm4 = vcmask 1042434  }
 0x207   : > { %v1625_v33 = vpop.permute.xlu1 %1624 }
 0x208   : > { %vm1661_vm6 = vcmp.eq.s32.totalorder %v5857_v21, %v1625_v33 }
 0x209   : > { %v3914_v35 = vsel %vm1661_vm6, 1.0, %v5153_v24  ;;  %vm3456_vm6 = vcmask 1044484  }
 0x217   : > { %v1613_v26 = vpop.permute.xlu0 %1612 }
 0x218   : > { %vm1657_vm3 = vcmp.eq.s32.totalorder %v5857_v21, %v1613_v26 }
 0x219   : > { %v3910_v30 = vsel %vm1657_vm3, 1.0, %v5153_v24  ;;  %vm3450_vm3 = vcmask 1041409  }
 0x21a   : > { %4258 = vmatmul.mubr.msk.f32.vlgmr.msra.gmra.mrb[40].mxu1 %vm1705_vm0, %v3910_v30 }
 0x21b   : > { %4260 = vmatprep.mubr.msk.f32.mxu1 %vm1705_vm0, %v3911_v27  ;;  %4282 = vmatpush3.bf16.msra.mxu1 %v4635_v19 }
 0x21c   : > { %4283 = vmatprep.subr.bf16.mxu1 %v4636_v29 }
 0x21e   : > { %4261 = vmatmul.mubr.msk.f32.gmra.mrb[42].mxu1 %vm1705_vm0, %v3912_v31 }
 0x21f   : > { %v1622_v32 = vpop.permute.xlu0 %1621  ;;  %4284 = vmatpush3.bf16.msra.mxu1 %v4636_v29 }
 0x220   : > { %vm1660_vm5 = vcmp.eq.s32.totalorder %v5857_v21, %v1622_v32  ;;  %v1631_v37 = vpop.permute.xlu1 %1630 }
 0x221   : > { %v3913_v34 = vsel %vm1660_vm5, 1.0, %v5153_v24  ;;  %vm1663_vm8 = vcmp.eq.s32.totalorder %v5857_v21, %v1631_v37  ;;  %vm3454_vm5 = vcmask 1043459  }
 0x222   : > { %4263 = vmatprep.mubr.msk.f32.mxu1 %vm1705_vm0, %v3913_v34  ;;  %v3916_v39 = vsel %vm1663_vm8, 1.0, %v5153_v24  ;;  %vm3460_vm8 = vcmask 1046534  }
 0x223   : > { %v1628_v36 = vpop.permute.xlu0 %1627  ;;  %4264 = vmatmul.mubr.msk.f32.gmra.mrb[44].mxu1 %vm1705_vm0, %v3914_v35 }
 0x224   : > { %vm1662_vm7 = vcmp.eq.s32.totalorder %v5857_v21, %v1628_v36 }
 0x225   : > { %v3915_v38 = vsel %vm1662_vm7, 1.0, %v5153_v24  ;;  %v1637_v41 = vpop.permute.xlu1 %1636  ;;  %vm3458_vm7 = vcmask 1045509  }
 0x226   : > { %4266 = vmatprep.mubr.msk.f32.mxu1 %vm1705_vm0, %v3915_v38  ;;  %vm1665_vm10 = vcmp.eq.s32.totalorder %v5857_v21, %v1637_v41 }
 0x227   : > { %v1634_v40 = vpop.permute.xlu0 %1633  ;;  %4267 = vmatmul.mubr.msk.f32.gmra.mrb[46].mxu1 %vm1705_vm0, %v3916_v39  ;;  %v3918_v43 = vsel %vm1665_vm10, 1.0, %v5153_v24 }
 0x228   : > { %vm1664_vm9 = vcmp.eq.s32.totalorder %v5857_v21, %v1634_v40 }
 0x229   : > { %v3917_v42 = vsel %vm1664_vm9, 1.0, %v5153_v24  ;;  %v1643_v45 = vpop.permute.xlu1 %1642  ;;  %vm3462_vm9 = vcmask 1047559  }
 0x22a   : > { %4269 = vmatprep.mubr.msk.f32.mxu1 %vm1705_vm0, %v3917_v42  ;;  %vm1667_vm12 = vcmp.eq.s32.totalorder %v5857_v21, %v1643_v45 }
 0x22b   : > { %v1640_v44 = vpop.permute.xlu0 %1639  ;;  %4270 = vmatmul.mubr.msk.f32.gmra.mrb[48].mxu1 %vm1705_vm0, %v3918_v43  ;;  %v3920_v47 = vsel %vm1667_vm12, 1.0, %v5153_v24 }
 0x22c   : > { %vm1666_vm11 = vcmp.eq.s32.totalorder %v5857_v21, %v1640_v44 }
 0x22d   : > { %v3919_v46 = vsel %vm1666_vm11, 1.0, %v5153_v24  ;;  %v1649_v49 = vpop.permute.xlu1 %1648 }
 0x22e   : > { %4272 = vmatprep.mubr.msk.f32.mxu1 %vm1705_vm0, %v3919_v46  ;;  %vm1669_vm14 = vcmp.eq.s32.totalorder %v5857_v21, %v1649_v49 }
 0x22f   : > { %v1646_v48 = vpop.permute.xlu0 %1645  ;;  %4273 = vmatmul.mubr.msk.f32.gmra.mrb[50].mxu1 %vm1705_vm0, %v3920_v47  ;;  %v3922_v51 = vsel %vm1669_vm14, 1.0, %v5153_v24 }
 0x230   : > { %vm1668_vm13 = vcmp.eq.s32.totalorder %v5857_v21, %v1646_v48 }
 0x231   : > { %v3921_v50 = vsel %vm1668_vm13, 1.0, %v5153_v24  ;;  %v1655_v53 = vpop.permute.xlu1 %1654 }
 0x232   : > { %4275 = vmatprep.mubr.msk.f32.mxu1 %vm1705_vm0, %v3921_v50  ;;  %vm1671_vm1 = vcmp.eq.s32.totalorder %v5857_v21, %v1655_v53 }
 0x233   : > { %v1652_v52 = vpop.permute.xlu0 %1651  ;;  %4276 = vmatmul.mubr.msk.f32.gmra.mrb[52].mxu1 %vm1705_vm0, %v3922_v51  ;;  %v3924_v55 = vsel %vm1671_vm1, 1.0, %v5153_v24 }
 0x234   : > { %vm1670_vm15 = vcmp.eq.s32.totalorder %v5857_v21, %v1652_v52 }
 0x235   : > { %v3923_v54 = vsel %vm1670_vm15, 1.0, %v5153_v24 }
 0x236   : > { %4278 = vmatprep.mubr.msk.f32.mxu1 %vm1705_vm0, %v3923_v54 }
 0x237   : > { %4279 = vmatmul.mubr.msk.f32.gmra.mrb[54].mxu1 %vm1705_vm0, %v3924_v55  ;;  %vm1923_vm0 = vcmask 261120  }
 0x257   : > { %v4022_v56 = vpop.f32.mrb[0].mxu0 }
 0x258   : > { %v4023_v58 = vpop.f32.mrb[1].mxu0  ;;  %v4086_v59 = vpop.f32.mrb[0].mxu1 }
 0x259   : > { %v4024_v60 = vadd.f32 %v4023_v58, %v4022_v56  ;;  %v4025_v61 = vpop.f32.mrb[2].mxu0  ;;  %v4087_v62 = vpop.f32.mrb[1].mxu1 }
 0x25a   : > { %v4026_v63 = vpop.f32.mrb[3].mxu0  ;;  %v4088_v0 = vadd.f32 %v4087_v62, %v4086_v59  ;;  %v4089_v1 = vpop.f32.mrb[2].mxu1 }
 0x25b   : > { %v1318_v2 = vadd.f32 %v4024_v60, %v5907_v57  ;;  %v4027_v3 = vadd.f32 %v4026_v63, %v4025_v61  ;;  %v4090_v4 = vpop.f32.mrb[3].mxu1 }
 0x25c   : > { %v4091_v5 = vadd.f32 %v4090_v4, %v4089_v1 }
 0x25d   : > { %v1321_v6 = vadd.f32 %v4027_v3, %v5907_v57  ;;  %v5911_v7 = vadd.f32 %v4088_v0, %v1318_v2 }
 0x25f   : > { %v5913_v8 = vadd.f32 %v4091_v5, %v1321_v6  ;;  %v4028_v9 = vpop.f32.mrb[4].mxu0 }
 0x260   : > { %v4029_v10 = vpop.f32.mrb[5].mxu0  ;;  %v4092_v11 = vpop.f32.mrb[4].mxu1 }
 0x261   : > { %v4030_v12 = vadd.f32 %v4029_v10, %v4028_v9  ;;  %v4031_v13 = vpop.f32.mrb[6].mxu0  ;;  %v4093_v14 = vpop.f32.mrb[5].mxu1 }
 0x262   : > { %v4032_v15 = vpop.f32.mrb[7].mxu0  ;;  %v4094_v16 = vadd.f32 %v4093_v14, %v4092_v11  ;;  %v4095_v17 = vpop.f32.mrb[6].mxu1 }
 0x263   : > { %v1326_v18 = vadd.f32 %v4030_v12, %v5907_v57  ;;  %v4033_v19 = vadd.f32 %v4032_v15, %v4031_v13  ;;  %v4096_v21 = vpop.f32.mrb[7].mxu1 }
 0x264   : > { %v4097_v22 = vadd.f32 %v4096_v21, %v4095_v17 }
 0x265   : > { %v1329_v23 = vadd.f32 %v4033_v19, %v5907_v57  ;;  %v5917_v24 = vadd.f32 %v4094_v16, %v1326_v18 }
 0x267   : > { %v5919_v25 = vadd.f32 %v4097_v22, %v1329_v23  ;;  %v4034_v26 = vpop.f32.mrb[8].mxu0 }
 0x268   : > { %v4035_v27 = vpop.f32.mrb[9].mxu0  ;;  %v4098_v28 = vpop.f32.mrb[8].mxu1 }
 0x269   : > { %v4036_v29 = vadd.f32 %v4035_v27, %v4034_v26  ;;  %v4037_v30 = vpop.f32.mrb[10].mxu0  ;;  %v4099_v31 = vpop.f32.mrb[9].mxu1 }
 0x26a   : > { %v4038_v32 = vpop.f32.mrb[11].mxu0  ;;  %v4100_v33 = vadd.f32 %v4099_v31, %v4098_v28  ;;  %v4101_v34 = vpop.f32.mrb[10].mxu1 }
 0x26b   : > { %v1334_v35 = vadd.f32 %v4036_v29, %v5907_v57  ;;  %v4039_v36 = vadd.f32 %v4038_v32, %v4037_v30  ;;  %v4102_v37 = vpop.f32.mrb[11].mxu1 }
 0x26c   : > { %v4103_v38 = vadd.f32 %v4102_v37, %v4101_v34 }
 0x26d   : > { %v1337_v39 = vadd.f32 %v4039_v36, %v5907_v57  ;;  %v5923_v40 = vadd.f32 %v4100_v33, %v1334_v35 }
 0x26f   : > { %v5925_v41 = vadd.f32 %v4103_v38, %v1337_v39  ;;  %v4040_v42 = vpop.f32.mrb[12].mxu0 }
 0x270   : > { %v4041_v43 = vpop.f32.mrb[13].mxu0  ;;  %v4104_v44 = vpop.f32.mrb[12].mxu1 }
 0x271   : > { %v4042_v45 = vadd.f32 %v4041_v43, %v4040_v42  ;;  %v4043_v46 = vpop.f32.mrb[14].mxu0  ;;  %v4105_v47 = vpop.f32.mrb[13].mxu1 }
 0x272   : > { %v4044_v48 = vpop.f32.mrb[15].mxu0  ;;  %v4106_v49 = vadd.f32 %v4105_v47, %v4104_v44  ;;  %v4107_v50 = vpop.f32.mrb[14].mxu1 }
 0x273   : > { %v1342_v51 = vadd.f32 %v4042_v45, %v5907_v57  ;;  %v4045_v52 = vadd.f32 %v4044_v48, %v4043_v46  ;;  %v4108_v53 = vpop.f32.mrb[15].mxu1 }
 0x274   : > { %v4109_v54 = vadd.f32 %v4108_v53, %v4107_v50 }
 0x275   : > { %v1345_v55 = vadd.f32 %v4045_v52, %v5907_v57  ;;  %v5929_v56 = vadd.f32 %v4106_v49, %v1342_v51 }
 0x277   : > { %v5931_v58 = vadd.f32 %v4109_v54, %v1345_v55  ;;  %v4046_v59 = vpop.f32.mrb[16].mxu0 }
 0x278   : > { %v4047_v60 = vpop.f32.mrb[17].mxu0  ;;  %v4110_v61 = vpop.f32.mrb[16].mxu1 }
 0x279   : > { %v4048_v62 = vadd.f32 %v4047_v60, %v4046_v59  ;;  %v4049_v63 = vpop.f32.mrb[18].mxu0  ;;  %v4111_v0 = vpop.f32.mrb[17].mxu1 }
 0x27a   : > { %v4050_v1 = vpop.f32.mrb[19].mxu0  ;;  %v4112_v2 = vadd.f32 %v4111_v0, %v4110_v61  ;;  %v4113_v3 = vpop.f32.mrb[18].mxu1 }
 0x27b   : > { %v1350_v4 = vadd.f32 %v4048_v62, %v5907_v57  ;;  %v4051_v5 = vadd.f32 %v4050_v1, %v4049_v63  ;;  %v4114_v6 = vpop.f32.mrb[19].mxu1 }
 0x27c   : > { %v4115_v9 = vadd.f32 %v4114_v6, %v4113_v3 }
 0x27d   : > { %v1353_v10 = vadd.f32 %v4051_v5, %v5907_v57  ;;  %v5935_v11 = vadd.f32 %v4112_v2, %v1350_v4 }
 0x27f   : > { %v5937_v12 = vadd.f32 %v4115_v9, %v1353_v10  ;;  %v4052_v13 = vpop.f32.mrb[20].mxu0 }
 0x280   : > { %v4053_v14 = vpop.f32.mrb[21].mxu0  ;;  %v4116_v15 = vpop.f32.mrb[20].mxu1 }
 0x281   : > { %v4054_v16 = vadd.f32 %v4053_v14, %v4052_v13  ;;  %v4055_v17 = vpop.f32.mrb[22].mxu0  ;;  %v4117_v18 = vpop.f32.mrb[21].mxu1 }
 0x282   : > { %v4056_v19 = vpop.f32.mrb[23].mxu0  ;;  %v4118_v21 = vadd.f32 %v4117_v18, %v4116_v15  ;;  %v4119_v22 = vpop.f32.mrb[22].mxu1 }
 0x283   : > { %v1358_v23 = vadd.f32 %v4054_v16, %v5907_v57  ;;  %v4057_v26 = vadd.f32 %v4056_v19, %v4055_v17  ;;  %v4120_v27 = vpop.f32.mrb[23].mxu1 }
 0x284   : > { %v4121_v28 = vadd.f32 %v4120_v27, %v4119_v22 }
 0x285   : > { %v1361_v29 = vadd.f32 %v4057_v26, %v5907_v57  ;;  %v5941_v30 = vadd.f32 %v4118_v21, %v1358_v23 }
 0x287   : > { %v5943_v31 = vadd.f32 %v4121_v28, %v1361_v29  ;;  %v4058_v32 = vpop.f32.mrb[24].mxu0 }
 0x288   : > { %v4059_v33 = vpop.f32.mrb[25].mxu0  ;;  %v4122_v34 = vpop.f32.mrb[24].mxu1 }
 0x289   : > { %v4060_v35 = vadd.f32 %v4059_v33, %v4058_v32  ;;  %v4061_v36 = vpop.f32.mrb[26].mxu0  ;;  %v4123_v37 = vpop.f32.mrb[25].mxu1 }
 0x28a   : > { %v4062_v38 = vpop.f32.mrb[27].mxu0  ;;  %v4124_v39 = vadd.f32 %v4123_v37, %v4122_v34  ;;  %v4125_v42 = vpop.f32.mrb[26].mxu1 }
 0x28b   : > { %v1366_v43 = vadd.f32 %v4060_v35, %v5907_v57  ;;  %v4063_v44 = vadd.f32 %v4062_v38, %v4061_v36  ;;  %v4126_v45 = vpop.f32.mrb[27].mxu1  ;;  %v4637_v36 = vld [vmem:[#allocation11] sm:$0xff]  }
 0x28c   : > { %v4127_v46 = vadd.f32 %v4126_v45, %v4125_v42  ;;  %4301 = vmatprep.subr.bf16.mxu0 %v4637_v36 }
 0x28d   : > { %v1369_v47 = vadd.f32 %v4063_v44, %v5907_v57  ;;  %v1463_v48 = vadd.f32 %v4124_v39, %v1366_v43  ;;  %4302 = vmatpush3.bf16.msra.mxu0 %v4637_v36 }
 0x28f   : > { %v1466_v49 = vadd.f32 %v4127_v46, %v1369_v47  ;;  %v4064_v50 = vpop.f32.mrb[28].mxu0 }
 0x290   : > { %v4065_v51 = vpop.f32.mrb[29].mxu0  ;;  %v4128_v52 = vpop.f32.mrb[28].mxu1 }
 0x291   : > { %v4066_v53 = vadd.f32 %v4065_v51, %v4064_v50  ;;  %v4067_v54 = vpop.f32.mrb[30].mxu0  ;;  %v4129_v55 = vpop.f32.mrb[29].mxu1 }
 0x292   : > { %v4068_v59 = vpop.f32.mrb[31].mxu0  ;;  %v4130_v60 = vadd.f32 %v4129_v55, %v4128_v52  ;;  %v4131_v61 = vpop.f32.mrb[30].mxu1 }
 0x293   : > { %v1374_v62 = vadd.f32 %v4066_v53, %v5907_v57  ;;  %v4069_v63 = vadd.f32 %v4068_v59, %v4067_v54  ;;  %v4132_v0 = vpop.f32.mrb[31].mxu1 }
 0x294   : > { %v4133_v1 = vadd.f32 %v4132_v0, %v4131_v61 }
 0x295   : > { %v1377_v2 = vadd.f32 %v4069_v63, %v5907_v57  ;;  %v1471_v3 = vadd.f32 %v4130_v60, %v1374_v62 }
 0x297   : > { %v1474_v4 = vadd.f32 %v4133_v1, %v1377_v2  ;;  %v4150_v5 = vpop.f32.mrb[32].mxu0 }
 0x298   : > { %v4186_v6 = vpop.f32.mrb[32].mxu1  ;;  %v4151_v9 = vpop.f32.mrb[33].mxu0 }
 0x299   : > { %v4152_v10 = vadd.f32 %v4151_v9, %v4150_v5  ;;  %v4187_v13 = vpop.f32.mrb[33].mxu1  ;;  %v4153_v14 = vpop.f32.mrb[34].mxu0 }
 0x29a   : > { %v4188_v15 = vadd.f32 %v4187_v13, %v4186_v6  ;;  %v4189_v16 = vpop.f32.mrb[34].mxu1  ;;  %v4154_v17 = vpop.f32.mrb[35].mxu0 }
 0x29b   : > { %v1512_v18 = vadd.f32 %v4152_v10, %v5911_v7  ;;  %v4155_v19 = vadd.f32 %v4154_v17, %v4153_v14  ;;  %v4190_v21 = vpop.f32.mrb[35].mxu1 }
 0x29c   : > { %v1560_v22 = vadd.f32 %v4188_v15, %v1463_v48  ;;  %v4191_v23 = vadd.f32 %v4190_v21, %v4189_v16 }
 0x29d   : > { %v1515_v26 = vadd.f32 %v4155_v19, %v5913_v8  ;;  %v1574_v27 = vmax.f32 %v1512_v18, 0.0 }
 0x29e   : > { %v1563_v57 = vadd.f32 %v4191_v23, %v1466_v49  ;;  %v1586_v32 = vmax.f32 %v1560_v22, 0.0 }
 0x29f   : > { %v1575_v28 = vmax.f32 %v1515_v26, 0.0  ;;  %v4156_v29 = vpop.f32.mrb[36].mxu0 }
 0x2a0   : > { %v1587_v33 = vmax.f32 %v1563_v57, 0.0  ;;  %v4192_v34 = vpop.f32.mrb[36].mxu1  ;;  %v4157_v35 = vpop.f32.mrb[37].mxu0 }
 0x2a1   : > { %v1899_v37 = vpack.c.bf16 %v1575_v28, %v1574_v27  ;;  %v4158_v38 = vadd.f32 %v4157_v35, %v4156_v29  ;;  %v4193_v39 = vpop.f32.mrb[37].mxu1  ;;  %v4159_v7 = vpop.f32.mrb[38].mxu0 }
 0x2a2   : > { %v5951_v42 = vpack.c.bf16 %v1587_v33, %v1586_v32  ;;  %v4194_v43 = vadd.f32 %v4193_v39, %v4192_v34  ;;  %v4195_v44 = vpop.f32.mrb[38].mxu1  ;;  %v4160_v45 = vpop.f32.mrb[39].mxu0 }
 0x2a3   : > { %v1520_v8 = vadd.f32 %v4158_v38, %v5917_v24  ;;  %v4161_v46 = vadd.f32 %v4160_v45, %v4159_v7  ;;  %v4196_v47 = vpop.f32.mrb[39].mxu1  ;;  %4285 = vmatprep.mubr.msk.bf16.mxu1 %vm1923_vm0, %v1899_v37 }
 0x2a4   : > { %v1568_v48 = vadd.f32 %v4194_v43, %v1471_v3  ;;  %v4197_v49 = vadd.f32 %v4196_v47, %v4195_v44 }
 0x2a5   : > { %v1523_v50 = vadd.f32 %v4161_v46, %v5919_v25  ;;  %v1576_v52 = vmax.f32 %v1520_v8, 0.0 }
 0x2a6   : > { %v1571_v51 = vadd.f32 %v4197_v49, %v1474_v4  ;;  %v1588_v55 = vmax.f32 %v1568_v48, 0.0 }
 0x2a7   : > { %v1577_v53 = vmax.f32 %v1523_v50, 0.0  ;;  %v4162_v54 = vpop.f32.mrb[40].mxu0 }
 0x2a8   : > { %v1589_v59 = vmax.f32 %v1571_v51, 0.0  ;;  %v4163_v60 = vpop.f32.mrb[41].mxu0 }
 0x2a9   : > { %v1900_v61 = vpack.c.bf16 %v1577_v53, %v1576_v52  ;;  %v4164_v62 = vadd.f32 %v4163_v60, %v4162_v54  ;;  %v4165_v63 = vpop.f32.mrb[42].mxu0 }
 0x2aa   : > { %v1906_v24 = vpack.c.bf16 %v1589_v59, %v1588_v55  ;;  %v4166_v0 = vpop.f32.mrb[43].mxu0  ;;  %v4639_v59 = vld [vmem:[#allocation14] sm:$0xff]  }
 0x2ab   : > { %v1528_v1 = vadd.f32 %v4164_v62, %v5923_v40  ;;  %v4167_v2 = vadd.f32 %v4166_v0, %v4165_v63  ;;  %4286 = vmatmul.mubr.msk.bf16.vlgmr.msra.gmra.mrb[56].mxu1 %vm1923_vm0, %v1900_v61  ;;  %4321 = vmatprep.subr.bf16.mxu1 %v4639_v59  ;;  %v5980_v61 = vld [vmem:[#allocation10] ss:$0 sm:$0xff] }
 0x2ac   : > { %4322 = vmatpush3.bf16.msra.mxu1 %v4639_v59 }
 0x2ad   : > { %v1531_v3 = vadd.f32 %v4167_v2, %v5925_v41  ;;  %v1578_v25 = vmax.f32 %v1528_v1, 0.0 }
 0x2af   : > { %v1579_v4 = vmax.f32 %v1531_v3, 0.0  ;;  %v4168_v5 = vpop.f32.mrb[44].mxu0 }
 0x2b0   : > { %v4169_v6 = vpop.f32.mrb[45].mxu0 }
 0x2b1   : > { %v1901_v9 = vpack.c.bf16 %v1579_v4, %v1578_v25  ;;  %v4170_v10 = vadd.f32 %v4169_v6, %v4168_v5  ;;  %v4171_v13 = vpop.f32.mrb[46].mxu0 }
 0x2b2   : > { %v4172_v14 = vpop.f32.mrb[47].mxu0 }
 0x2b3   : > { %v1536_v15 = vadd.f32 %v4170_v10, %v5929_v56  ;;  %v4173_v16 = vadd.f32 %v4172_v14, %v4171_v13  ;;  %4289 = vmatprep.mubr.msk.bf16.mxu1 %vm1923_vm0, %v1901_v9 }
 0x2b5   : > { %v1539_v40 = vadd.f32 %v4173_v16, %v5931_v58  ;;  %v1580_v17 = vmax.f32 %v1536_v15, 0.0 }
 0x2b7   : > { %v1581_v18 = vmax.f32 %v1539_v40, 0.0  ;;  %v4174_v19 = vpop.f32.mrb[48].mxu0 }
 0x2b8   : > { %v4175_v21 = vpop.f32.mrb[49].mxu0 }
 0x2b9   : > { %v1902_v41 = vpack.c.bf16 %v1581_v18, %v1580_v17  ;;  %v4176_v22 = vadd.f32 %v4175_v21, %v4174_v19  ;;  %v4177_v23 = vpop.f32.mrb[50].mxu0 }
 0x2ba   : > { %v4178_v26 = vpop.f32.mrb[51].mxu0 }
 0x2bb   : > { %v1544_v57 = vadd.f32 %v4176_v22, %v5935_v11  ;;  %v4179_v27 = vadd.f32 %v4178_v26, %v4177_v23  ;;  %4290 = vmatmul.mubr.msk.bf16.gmra.mrb[60].mxu1 %vm1923_vm0, %v1902_v41 }
 0x2bd   : > { %v1547_v56 = vadd.f32 %v4179_v27, %v5937_v12  ;;  %v1582_v28 = vmax.f32 %v1544_v57, 0.0  ;;  %v4638_v12 = vld [vmem:[#allocation11 + $0x8] sm:$0xff]  }
 0x2be   : > { %4303 = vmatprep.subr.bf16.mxu0 %v4638_v12 }
 0x2bf   : > { %v1583_v29 = vmax.f32 %v1547_v56, 0.0  ;;  %v4180_v32 = vpop.f32.mrb[52].mxu0  ;;  %4304 = vmatpush3.bf16.msra.mxu0 %v4638_v12 }
 0x2c0   : > { %v4181_v33 = vpop.f32.mrb[53].mxu0 }
 0x2c1   : > { %v1903_v58 = vpack.c.bf16 %v1583_v29, %v1582_v28  ;;  %v4182_v34 = vadd.f32 %v4181_v33, %v4180_v32  ;;  %v4183_v35 = vpop.f32.mrb[54].mxu0 }
 0x2c2   : > { %v4184_v36 = vpop.f32.mrb[55].mxu0 }
 0x2c3   : > { %v1552_v37 = vadd.f32 %v4182_v34, %v5941_v30  ;;  %v4185_v38 = vadd.f32 %v4184_v36, %v4183_v35  ;;  %4293 = vmatprep.mubr.msk.bf16.mxu1 %vm1923_vm0, %v1903_v58 }
 0x2c5   : > { %v1555_v11 = vadd.f32 %v4185_v38, %v5943_v31  ;;  %v1584_v39 = vmax.f32 %v1552_v37, 0.0 }
 0x2c7   : > { %v1585_v7 = vmax.f32 %v1555_v11, 0.0 }
 0x2c9   : > { %v1904_v43 = vpack.c.bf16 %v1585_v7, %v1584_v39 }
 0x2cb   : > { %4294 = vmatmul.mubr.msk.bf16.gmra.mrb[64].mxu1 %vm1923_vm0, %v1904_v43 }
 0x2cc   : > { %4297 = vmatprep.mubr.msk.bf16.mxu1 %vm1923_vm0, %v5951_v42 }
 0x2d3   : > { %4298 = vmatmul.mubr.msk.bf16.gmra.mrb[68].mxu1 %vm1923_vm0, %v1906_v24 }
 0x2ed   : > { %v4259_v44 = vpop.f32.mrb[40].mxu1 }
 0x2ee   : > { %v1820_v30 = vpop.f32.mrb[41].mxu1 }
 0x2f1   : > { %v4262_v45 = vpop.f32.mrb[42].mxu1 }
 0x2f2   : > { %v1830_v8 = vpop.f32.mrb[43].mxu1 }
 0x2f6   : > { %v4265_v46 = vpop.f32.mrb[44].mxu1 }
 0x2f7   : > { %v1840_v47 = vpop.f32.mrb[45].mxu1 }
 0x2fa   : > { %v4268_v31 = vpop.f32.mrb[46].mxu1 }
 0x2fb   : > { %v1850_v48 = vpop.f32.mrb[47].mxu1 }
 0x2fe   : > { %v4271_v49 = vpop.f32.mrb[48].mxu1 }
 0x2ff   : > { %v1860_v50 = vpop.f32.mrb[49].mxu1 }
 0x302   : > { %v4274_v51 = vpop.f32.mrb[50].mxu1 }
 0x303   : > { %v1870_v52 = vpop.f32.mrb[51].mxu1 }
 0x306   : > { %v5972_v53 = vpop.f32.mrb[52].mxu1 }
 0x307   : > { %v5974_v42 = vpop.f32.mrb[53].mxu1 }
 0x30a   : > { %v5976_v54 = vpop.f32.mrb[54].mxu1 }
 0x30b   : > { %v5978_v55 = vpop.f32.mrb[55].mxu1 }
 0x37e   : > { %v4287_v60 = vpop.f32.mrb[56].mxu1 }
 0x37f   : > { %v1991_v62 = vadd.f32 %v4287_v60, %v1830_v8  ;;  %v1982_v63 = vpop.f32.mrb[57].mxu1 }
 0x380   : > { %v1983_v24 = vadd.f32 %v1982_v63, %v1820_v30  ;;  %v4288_v0 = vpop.f32.mrb[58].mxu1 }
 0x381   : > { %v2054_v1 = vadd.f32 %v5980_v61, %v1991_v62  ;;  %v1994_v2 = vadd.f32 %v4288_v0, %v4262_v45  ;;  %v1985_v3 = vpop.f32.mrb[59].mxu1 }
 0x382   : > { %v2052_v25 = vadd.f32 %v5980_v61, %v1983_v24  ;;  %v1986_v4 = vadd.f32 %v4259_v44, %v1985_v3 }
 0x383   : > { %v2055_v5 = vadd.f32 %v5980_v61, %v1994_v2  ;;  %v2070_v9 = vmax.f32 %v2054_v1, 0.0 }
 0x384   : > { %v2053_v6 = vadd.f32 %v5980_v61, %v1986_v4  ;;  %v2068_v13 = vmax.f32 %v2052_v25, 0.0 }
 0x385   : > { %v2071_v10 = vmax.f32 %v2055_v5, 0.0 }
 0x386   : > { %v2069_v14 = vmax.f32 %v2053_v6, 0.0 }
 0x387   : > { %v2085_v15 = vpack.c.bf16 %v2071_v10, %v2070_v9  ;;  %v3952_v9 = vld [vmem:[#allocation13] ss:$0 sm:$0xff] }
 0x388   : > { %v2084_v16 = vpack.c.bf16 %v2069_v14, %v2068_v13 }
 0x38a   : > { %4305 = vmatprep.mubr.msk.bf16.mxu0 %vm1923_vm0, %v2084_v16 }
 0x38b   : > { %4306 = vmatmul.mubr.msk.bf16.vlgmr.msra.gmra.mrb[56].mxu0 %vm1923_vm0, %v2085_v15 }
 0x38e   : > { %v4291_v40 = vpop.f32.mrb[60].mxu1 }
 0x38f   : > { %v2007_v17 = vadd.f32 %v4291_v40, %v1850_v48  ;;  %v1998_v18 = vpop.f32.mrb[61].mxu1 }
 0x390   : > { %v1999_v19 = vadd.f32 %v1998_v18, %v1840_v47  ;;  %v4292_v21 = vpop.f32.mrb[62].mxu1 }
 0x391   : > { %v2058_v41 = vadd.f32 %v5980_v61, %v2007_v17  ;;  %v2010_v22 = vadd.f32 %v4292_v21, %v4268_v31  ;;  %v2001_v23 = vpop.f32.mrb[63].mxu1 }
 0x392   : > { %v2056_v26 = vadd.f32 %v5980_v61, %v1999_v19  ;;  %v2002_v57 = vadd.f32 %v4265_v46, %v2001_v23 }
 0x393   : > { %v2059_v27 = vadd.f32 %v5980_v61, %v2010_v22  ;;  %v2074_v28 = vmax.f32 %v2058_v41, 0.0 }
 0x394   : > { %v2057_v56 = vadd.f32 %v5980_v61, %v2002_v57  ;;  %v2072_v32 = vmax.f32 %v2056_v26, 0.0 }
 0x395   : > { %v2075_v29 = vmax.f32 %v2059_v27, 0.0 }
 0x396   : > { %v2073_v33 = vmax.f32 %v2057_v56, 0.0 }
 0x397   : > { %v2087_v58 = vpack.c.bf16 %v2075_v29, %v2074_v28 }
 0x398   : > { %v2086_v34 = vpack.c.bf16 %v2073_v33, %v2072_v32 }
 0x39a   : > { %4309 = vmatprep.mubr.msk.bf16.mxu0 %vm1923_vm0, %v2086_v34 }
 0x39b   : > { %4310 = vmatmul.mubr.msk.bf16.gmra.mrb[60].mxu0 %vm1923_vm0, %v2087_v58 }
 0x39e   : > { %v4295_v35 = vpop.f32.mrb[64].mxu1 }
 0x39f   : > { %v2023_v36 = vadd.f32 %v4295_v35, %v1870_v52  ;;  %v2014_v37 = vpop.f32.mrb[65].mxu1 }
 0x3a0   : > { %v2015_v38 = vadd.f32 %v2014_v37, %v1860_v50  ;;  %v4296_v11 = vpop.f32.mrb[66].mxu1 }
 0x3a1   : > { %v2062_v39 = vadd.f32 %v5980_v61, %v2023_v36  ;;  %v2026_v7 = vadd.f32 %v4296_v11, %v4274_v51  ;;  %v2017_v43 = vpop.f32.mrb[67].mxu1 }
 0x3a2   : > { %v2060_v12 = vadd.f32 %v5980_v61, %v2015_v38  ;;  %v2018_v44 = vadd.f32 %v4271_v49, %v2017_v43 }
 0x3a3   : > { %v2063_v30 = vadd.f32 %v5980_v61, %v2026_v7  ;;  %v2078_v8 = vmax.f32 %v2062_v39, 0.0 }
 0x3a4   : > { %v2061_v45 = vadd.f32 %v5980_v61, %v2018_v44  ;;  %v2076_v47 = vmax.f32 %v2060_v12, 0.0 }
 0x3a5   : > { %v2079_v46 = vmax.f32 %v2063_v30, 0.0 }
 0x3a6   : > { %v2077_v31 = vmax.f32 %v2061_v45, 0.0  ;;  %v4299_v48 = vpop.f32.mrb[68].mxu1 }
 0x3a7   : > { %v2089_v52 = vpack.c.bf16 %v2079_v46, %v2078_v8  ;;  %v2039_v50 = vadd.f32 %v4299_v48, %v5978_v55  ;;  %v2030_v59 = vpop.f32.mrb[69].mxu1 }
 0x3a8   : > { %v2088_v60 = vpack.c.bf16 %v2077_v31, %v2076_v47  ;;  %v2031_v51 = vadd.f32 %v2030_v59, %v5974_v42  ;;  %v4300_v62 = vpop.f32.mrb[70].mxu1 }
 0x3a9   : > { %v2066_v63 = vadd.f32 %v5980_v61, %v2039_v50  ;;  %v2042_v49 = vadd.f32 %v4300_v62, %v5976_v54  ;;  %v2033_v24 = vpop.f32.mrb[71].mxu1  ;;  %v4640_v54 = vld [vmem:[#allocation14 + $0x8] sm:$0xff]  }
 0x3aa   : > { %v2064_v0 = vadd.f32 %v5980_v61, %v2031_v51  ;;  %v2034_v1 = vadd.f32 %v5972_v53, %v2033_v24  ;;  %4313 = vmatprep.mubr.msk.bf16.mxu0 %vm1923_vm0, %v2088_v60  ;;  %4323 = vmatprep.subr.bf16.mxu1 %v4640_v54  ;;  %v4641_v53 = vld [vmem:[#allocation16] sm:$0xff]  }
 0x3ab   : > { %v2067_v2 = vadd.f32 %v5980_v61, %v2042_v49  ;;  %4314 = vmatmul.mubr.msk.bf16.gmra.mrb[64].mxu0 %vm1923_vm0, %v2089_v52  ;;  %v2082_v3 = vmax.f32 %v2066_v63, 0.0  ;;  %4324 = vmatpush3.bf16.msra.mxu1 %v4640_v54  ;;  %v2406_v54 = vshrl.u32 %v1590_v20, 7 }
 0x3ac   : > { %v2065_v55 = vadd.f32 %v5980_v61, %v2034_v1  ;;  %v2080_v25 = vmax.f32 %v2064_v0, 0.0  ;;  %4341 = vmatprep.subr.bf16.mxu0 %v4641_v53 }
 0x3ad   : > { %v2083_v42 = vmax.f32 %v2067_v2, 0.0  ;;  %4342 = vmatpush3.bf16.msra.mxu0 %v4641_v53 }
 0x3ae   : > { %v2081_v4 = vmax.f32 %v2065_v55, 0.0 }
 0x3af   : > { %v2091_v5 = vpack.c.bf16 %v2083_v42, %v2082_v3 }
 0x3b0   : > { %v2090_v6 = vpack.c.bf16 %v2081_v4, %v2080_v25  ;;  %v4642_v25 = vld [vmem:[#allocation16 + $0x8] sm:$0xff]   ;;  %v5154_v4 = vmov 1966171168  }
 0x3b1   : > { %4343 = vmatprep.subr.bf16.mxu0 %v4642_v25 }
 0x3b2   : > { %4317 = vmatprep.mubr.msk.bf16.mxu0 %vm1923_vm0, %v2090_v6  ;;  %4344 = vmatpush3.bf16.msra.mxu0 %v4642_v25 }
 0x3b3   : > { %4318 = vmatmul.mubr.msk.bf16.gmra.mrb[68].mxu0 %vm1923_vm0, %v2091_v5  ;;  %v2403_v5 = vunpack.c.l.s4 %v5154_v4 }
 0x3b5   : > { %v2404_v6 = vunpack.c.0.s8 %v2403_v5 }
 0x3b7   : > { %v6109_v53 = vsub.s32 %v2404_v6, %v2406_v54 }
 0x45e   : > { %v4307_v10 = vpop.f32.mrb[56].mxu0 }
 0x45f   : > { %v2173_v13 = vpop.f32.mrb[57].mxu0  ;;  %v6012_v15 = vadd.f32 %v4307_v10, %v3952_v9 }
 0x460   : > { %v6010_v61 = vadd.f32 %v3952_v9, %v2173_v13  ;;  %v4308_v14 = vpop.f32.mrb[58].mxu0 }
 0x461   : > { %v6014_v16 = vadd.f32 %v4308_v14, %v3952_v9  ;;  %v2176_v40 = vpop.f32.mrb[59].mxu0  ;;  %v6541_v41 = vmax.f32 %v6012_v15, 0.0 }
 0x462   : > { %v6016_v17 = vadd.f32 %v3952_v9, %v2176_v40  ;;  %v6542_v19 = vmax.f32 %v6010_v61, 0.0 }
 0x463   : > { %v6540_v18 = vmax.f32 %v6014_v16, 0.0 }
 0x464   : > { %v6539_v21 = vmax.f32 %v6016_v17, 0.0 }
 0x465   : > { %v2253_v23 = vpack.c.bf16 %v6540_v18, %v6541_v41 }
 0x466   : > { %v2252_v22 = vpack.c.bf16 %v6539_v21, %v6542_v19 }
 0x468   : > { %4325 = vmatprep.mubr.msk.bf16.mxu1 %vm1923_vm0, %v2252_v22 }
 0x469   : > { %4326 = vmatmul.mubr.msk.bf16.vlgmr.msra.gmra.mrb[72].mxu1 %vm1923_vm0, %v2253_v23  ;;  %v6115_v23 = vsub.s32 0, %v2406_v54 }
 0x46e   : > { %v4311_v26 = vpop.f32.mrb[60].mxu0 }
 0x46f   : > { %v2189_v57 = vpop.f32.mrb[61].mxu0  ;;  %v6034_v28 = vadd.f32 %v4311_v26, %v3952_v9 }
 0x470   : > { %v6032_v27 = vadd.f32 %v3952_v9, %v2189_v57  ;;  %v4312_v56 = vpop.f32.mrb[62].mxu0 }
 0x471   : > { %v6036_v29 = vadd.f32 %v4312_v56, %v3952_v9  ;;  %v2192_v32 = vpop.f32.mrb[63].mxu0  ;;  %v6538_v36 = vmax.f32 %v6034_v28, 0.0 }
 0x472   : > { %v6038_v33 = vadd.f32 %v3952_v9, %v2192_v32  ;;  %v6537_v34 = vmax.f32 %v6032_v27, 0.0 }
 0x473   : > { %v6534_v58 = vmax.f32 %v6036_v29, 0.0 }
 0x474   : > { %v6536_v35 = vmax.f32 %v6038_v33, 0.0 }
 0x475   : > { %v2255_v38 = vpack.c.bf16 %v6534_v58, %v6538_v36 }
 0x476   : > { %v2254_v37 = vpack.c.bf16 %v6536_v35, %v6537_v34 }
 0x478   : > { %4329 = vmatprep.mubr.msk.bf16.mxu1 %vm1923_vm0, %v2254_v37 }
 0x479   : > { %4330 = vmatmul.mubr.msk.bf16.gmra.mrb[76].mxu1 %vm1923_vm0, %v2255_v38 }
 0x47e   : > { %v4315_v11 = vpop.f32.mrb[64].mxu0 }
 0x47f   : > { %v2205_v39 = vpop.f32.mrb[65].mxu0  ;;  %v6056_v12 = vadd.f32 %v4315_v11, %v3952_v9 }
 0x480   : > { %v6054_v7 = vadd.f32 %v3952_v9, %v2205_v39  ;;  %v4316_v43 = vpop.f32.mrb[66].mxu0 }
 0x481   : > { %v6058_v44 = vadd.f32 %v4316_v43, %v3952_v9  ;;  %v2208_v30 = vpop.f32.mrb[67].mxu0  ;;  %v6535_v31 = vmax.f32 %v6056_v12, 0.0 }
 0x482   : > { %v6060_v45 = vadd.f32 %v3952_v9, %v2208_v30  ;;  %v6533_v46 = vmax.f32 %v6054_v7, 0.0 }
 0x483   : > { %v6532_v8 = vmax.f32 %v6058_v44, 0.0 }
 0x484   : > { %v6531_v47 = vmax.f32 %v6060_v45, 0.0 }
 0x485   : > { %v2257_v50 = vpack.c.bf16 %v6532_v8, %v6535_v31 }
 0x486   : > { %v2256_v48 = vpack.c.bf16 %v6531_v47, %v6533_v46  ;;  %v4319_v52 = vpop.f32.mrb[68].mxu0 }
 0x487   : > { %v2221_v59 = vpop.f32.mrb[69].mxu0  ;;  %v6077_v62 = vadd.f32 %v4319_v52, %v3952_v9 }
 0x488   : > { %v6074_v60 = vadd.f32 %v3952_v9, %v2221_v59  ;;  %v4320_v51 = vpop.f32.mrb[70].mxu0  ;;  %4333 = vmatprep.mubr.msk.bf16.mxu1 %vm1923_vm0, %v2256_v48 }
 0x489   : > { %v6079_v63 = vadd.f32 %v4320_v51, %v3952_v9  ;;  %v2224_v49 = vpop.f32.mrb[71].mxu0  ;;  %4334 = vmatmul.mubr.msk.bf16.gmra.mrb[80].mxu1 %vm1923_vm0, %v2257_v50  ;;  %v6530_v55 = vmax.f32 %v6077_v62, 0.0 }
 0x48a   : > { %v6082_v24 = vadd.f32 %v3952_v9, %v2224_v49  ;;  %v6529_v1 = vmax.f32 %v6074_v60, 0.0  ;;  %v2397_v9 = vld [vmem:[%s6107_s28] sm:$0xff] }
 0x48b   : > { %6580 = vst [vmem:[#allocation32_spill] sm:$0xff] %v6079_v63  ;;  %v6527_v0 = vmax.f32 %v6079_v63, 0.0  ;;  %v2408_v10 = vrot.slane %v2397_v9, %v6109_v53  ;;  %v2401_v26 = vcombine.high %v2397_v9, %v2397_v9 }
 0x48c   : > { %v6528_v2 = vmax.f32 %v6082_v24, 0.0 }
 0x48d   : > { %v2259_v42 = vpack.c.bf16 %v6527_v0, %v6530_v55  ;;  %v2416_v13 = vcombine.high %v2408_v10, %v2408_v10  ;;  %v2424_v14 = vrot.slane %v2408_v10, %v6109_v53  ;;  %v2415_v37 = vrot.slane %v2401_v26, %v6109_v53 }
 0x48e   : > { %v2258_v3 = vpack.c.bf16 %v6528_v2, %v6529_v1 }
 0x48f   : > { %v2438_v40 = vrot.slane %v2416_v13, %v6109_v53  ;;  %v2446_v22 = vcombine.high %v2424_v14, %v2424_v14  ;;  %v2502_v56 = vrot.slane %v2424_v14, %v6115_v23  ;;  %v2417_v59 = vcombine.high %v2415_v37, %v2415_v37  ;;  %v2398_v13 = vld [vmem:[%s6107_s28 + $0x8] sm:$0xff] }
 0x490   : > { %4337 = vmatprep.mubr.msk.bf16.mxu1 %vm1923_vm0, %v2258_v3 }
 0x491   : > { %4338 = vmatmul.mubr.msk.bf16.gmra.mrb[84].mxu1 %vm1923_vm0, %v2259_v42  ;;  %v2448_v20 = vcombine.high %v2438_v40, %v2438_v40  ;;  %v2510_v57 = vrot.slane %v2446_v22, %v6115_v23  ;;  %v2506_v11 = vrot.slane %v2438_v40, %v6115_v23  ;;  %v2431_v42 = vrot.slane %v2415_v37, %v6109_v53 }
 0x492   : > { %v2445_v6 = vrot.slane %v2417_v59, %v6109_v53 }
 0x493   : > { %v2514_v32 = vrot.slane %v2448_v20, %v6115_v23  ;;  %v2447_v9 = vcombine.high %v2431_v42, %v2431_v42  ;;  %v2518_v40 = vrot.slane %v2431_v42, %v6115_v23  ;;  %v2457_v20 = vrot.slane %v2398_v13, %v6109_v53 }
 0x494   : > { %v2449_v10 = vcombine.high %v2445_v6, %v2445_v6 }
 0x495   : > { %v2526_v14 = vrot.slane %v2447_v9, %v6115_v23  ;;  %v2473_v59 = vrot.slane %v2457_v20, %v6109_v53 }
 0x496   : > { %v2530_v22 = vrot.slane %v2449_v10, %v6115_v23 }
 0x53c   : > { %v4327_v38 = vpop.f32.mrb[72].mxu1 }
 0x53d   : > { %v2581_v39 = vadd.f32 %v4327_v38, %v2510_v57  ;;  %v2334_v43 = vpop.f32.mrb[73].mxu1  ;;  %v2522_v57 = vrot.slane %v2445_v6, %v6115_v23 }
 0x53e   : > { %v2579_v30 = vadd.f32 %v2502_v56, %v2334_v43  ;;  %v4328_v48 = vpop.f32.mrb[74].mxu1  ;;  %v2465_v43 = vcombine.high %v2457_v20, %v2457_v20 }
 0x53f   : > { %v2582_v52 = vadd.f32 %v4328_v48, %v2514_v32  ;;  %v2337_v50 = vpop.f32.mrb[75].mxu1  ;;  %v2597_v49 = vmax.f32 %v2581_v39, 0.0 }
 0x540   : > { %v2580_v51 = vadd.f32 %v2506_v11, %v2337_v50  ;;  %v2595_v25 = vmax.f32 %v2579_v30, 0.0  ;;  %v2450_v30 = vcombine.high %v2398_v13, %v2398_v13  ;;  %v2487_v42 = vrot.slane %v2465_v43, %v6109_v53 }
 0x541   : > { %v2598_v3 = vmax.f32 %v2582_v52, 0.0  ;;  %v2534_v13 = vrot.slane %v2473_v59, %v6115_v23 }
 0x542   : > { %v2596_v4 = vmax.f32 %v2580_v51, 0.0  ;;  %v2497_v6 = vcombine.high %v2487_v42, %v2487_v42  ;;  %v2538_v20 = vrot.slane %v2487_v42, %v6115_v23 }
 0x543   : > { %v2612_v5 = vpack.c.bf16 %v2598_v3, %v2597_v49 }
 0x544   : > { %v2611_v54 = vpack.c.bf16 %v2596_v4, %v2595_v25  ;;  %v2464_v25 = vrot.slane %v2450_v30, %v6109_v53 }
 0x546   : > { %4345 = vmatprep.mubr.msk.bf16.mxu0 %vm1923_vm0, %v2611_v54  ;;  %v2466_v54 = vcombine.high %v2464_v25, %v2464_v25  ;;  %v2480_v10 = vrot.slane %v2464_v25, %v6109_v53 }
 0x547   : > { %4346 = vmatmul.mubr.msk.bf16.vlgmr.msra.gmra.mrb[72].mxu0 %vm1923_vm0, %v2612_v5  ;;  %v2495_v5 = vcombine.high %v2473_v59, %v2473_v59 }
 0x549   : > { %v2542_v9 = vrot.slane %v2495_v5, %v6115_v23 }
 0x54c   : > { %v4331_v26 = vpop.f32.mrb[76].mxu1 }
 0x54d   : > { %v2585_v56 = vadd.f32 %v4331_v26, %v2526_v14  ;;  %v2350_v32 = vpop.f32.mrb[77].mxu1  ;;  %v2546_v14 = vrot.slane %v2497_v6, %v6115_v23 }
 0x54e   : > { %v2583_v37 = vadd.f32 %v2518_v40, %v2350_v32  ;;  %v4332_v38 = vpop.f32.mrb[78].mxu1  ;;  %v2494_v40 = vrot.slane %v2466_v54, %v6109_v53  ;;  %v2550_v53 = vrot.slane %v2480_v10, %v6115_v23 }
 0x54f   : > { %v2586_v11 = vadd.f32 %v4332_v38, %v2530_v22  ;;  %v2353_v39 = vpop.f32.mrb[79].mxu1  ;;  %v2601_v52 = vmax.f32 %v2585_v56, 0.0  ;;  %v2496_v56 = vcombine.high %v2480_v10, %v2480_v10 }
 0x550   : > { %v2584_v48 = vadd.f32 %v2522_v57, %v2353_v39  ;;  %v2599_v51 = vmax.f32 %v2583_v37, 0.0  ;;  %v2498_v39 = vcombine.high %v2494_v40, %v2494_v40  ;;  %v2554_v25 = vrot.slane %v2494_v40, %v6115_v23 }
 0x551   : > { %v2602_v50 = vmax.f32 %v2586_v11, 0.0 }
 0x552   : > { %v2600_v49 = vmax.f32 %v2584_v48, 0.0 }
 0x553   : > { %v2614_v3 = vpack.c.bf16 %v2602_v50, %v2601_v52  ;;  %v2558_v52 = vrot.slane %v2496_v56, %v6115_v23 }
 0x554   : > { %v2613_v4 = vpack.c.bf16 %v2600_v49, %v2599_v51  ;;  %v2562_v49 = vrot.slane %v2498_v39, %v6115_v23  ;;  %v6151_v23 = vld [vmem:[#allocation17] ss:$0 sm:$0xff]  ;;  %v6155_v39 = vld [vmem:[#allocation19] ss:$0 sm:$0xff] }
 0x556   : > { %4349 = vmatprep.mubr.msk.bf16.mxu0 %vm1923_vm0, %v2613_v4 }
 0x557   : > { %4350 = vmatmul.mubr.msk.bf16.gmra.mrb[76].mxu0 %vm1923_vm0, %v2614_v3 }
 0x55c   : > { %v4335_v22 = vpop.f32.mrb[80].mxu1 }
 0x55d   : > { %v2589_v26 = vadd.f32 %v4335_v22, %v2542_v9  ;;  %v2366_v57 = vpop.f32.mrb[81].mxu1 }
 0x55e   : > { %v2587_v32 = vadd.f32 %v2534_v13, %v2366_v57  ;;  %v4336_v37 = vpop.f32.mrb[82].mxu1 }
 0x55f   : > { %v2590_v38 = vadd.f32 %v4336_v37, %v2546_v14  ;;  %v2369_v11 = vpop.f32.mrb[83].mxu1  ;;  %v2605_v30 = vmax.f32 %v2589_v26, 0.0 }
 0x560   : > { %v2588_v43 = vadd.f32 %v2538_v20, %v2369_v11  ;;  %v2603_v50 = vmax.f32 %v2587_v32, 0.0 }
 0x561   : > { %v2606_v48 = vmax.f32 %v2590_v38, 0.0 }
 0x562   : > { %v2604_v59 = vmax.f32 %v2588_v43, 0.0 }
 0x563   : > { %v2616_v51 = vpack.c.bf16 %v2606_v48, %v2605_v30 }
 0x564   : > { %v2615_v3 = vpack.c.bf16 %v2604_v59, %v2603_v50  ;;  %v4339_v42 = vpop.f32.mrb[84].mxu1 }
 0x565   : > { %v2593_v4 = vadd.f32 %v4339_v42, %v2558_v52  ;;  %v2382_v5 = vpop.f32.mrb[85].mxu1 }
 0x566   : > { %v2591_v6 = vadd.f32 %v2550_v53, %v2382_v5  ;;  %v4340_v54 = vpop.f32.mrb[86].mxu1  ;;  %4353 = vmatprep.mubr.msk.bf16.mxu0 %vm1923_vm0, %v2615_v3 }
 0x567   : > { %v2594_v9 = vadd.f32 %v4340_v54, %v2562_v49  ;;  %v2385_v13 = vpop.f32.mrb[87].mxu1  ;;  %4354 = vmatmul.mubr.msk.bf16.gmra.mrb[80].mxu0 %vm1923_vm0, %v2616_v51  ;;  %v2609_v22 = vmax.f32 %v2593_v4, 0.0 }
 0x568   : > { %v2592_v14 = vadd.f32 %v2554_v25, %v2385_v13  ;;  %v2607_v20 = vmax.f32 %v2591_v6, 0.0 }
 0x569   : > { %v2610_v10 = vmax.f32 %v2594_v9, 0.0 }
 0x56a   : > { %v2608_v26 = vmax.f32 %v2592_v14, 0.0 }
 0x56b   : > { %v2618_v57 = vpack.c.bf16 %v2610_v10, %v2609_v22 }
 0x56c   : > { %v2617_v56 = vpack.c.bf16 %v2608_v26, %v2607_v20 }
 0x56e   : > { %4357 = vmatprep.mubr.msk.bf16.mxu0 %vm1923_vm0, %v2617_v56 }
 0x56f   : > { %4358 = vmatmul.mubr.msk.bf16.gmra.mrb[84].mxu0 %vm1923_vm0, %v2618_v57 }
 0x61a   : > { %v4347_v40 = vpop.f32.mrb[72].mxu0 }
 0x61b   : > { %v2709_v32 = vadd.f32 %v4347_v40, %v6151_v23  ;;  %v2700_v37 = vpop.f32.mrb[73].mxu0 }
 0x61c   : > { %v2701_v38 = vadd.f32 %v6151_v23, %v2700_v37  ;;  %v4348_v11 = vpop.f32.mrb[74].mxu0 }
 0x61d   : > { %v2765_v43 = vmax.f32 %v2709_v32, 0.0  ;;  %v2712_v30 = vadd.f32 %v4348_v11, %v6151_v23  ;;  %v2703_v48 = vpop.f32.mrb[75].mxu0 }
 0x61e   : > { %v2763_v52 = vmax.f32 %v2701_v38, 0.0  ;;  %v2704_v50 = vadd.f32 %v6151_v23, %v2703_v48 }
 0x61f   : > { %v2766_v59 = vmax.f32 %v2712_v30, 0.0  ;;  %v2788_v53 = vmul.f32 %v6155_v39, %v2765_v43 }
 0x620   : > { %v2786_v51 = vmul.f32 %v6155_v39, %v2763_v52  ;;  %v2764_v49 = vmax.f32 %v2704_v50, 0.0 }
 0x621   : > { %v2808_v3 = vsel %vm1923_vm0, %v2788_v53, 0.0  ;;  %v2789_v42 = vmul.f32 %v6155_v39, %v2766_v59 }
 0x622   : > { %2809 = vadd.xlane.f32.xlu1 %v2808_v3  ;;  %v2802_v25 = vsel %vm1923_vm0, %v2786_v51, 0.0  ;;  %v2787_v5 = vmul.f32 %v6155_v39, %v2764_v49 }
 0x623   : > { %2803 = vadd.xlane.f32.xlu0 %v2802_v25  ;;  %v2811_v4 = vsel %vm1923_vm0, %v2789_v42, 0.0 }
 0x624   : > { %v2805_v6 = vsel %vm1923_vm0, %v2787_v5, 0.0 }
 0x626   : > { %2812 = vadd.xlane.f32.xlu1 %v2811_v4 }
 0x62a   : > { %2806 = vadd.xlane.f32.xlu1 %v2805_v6  ;;  %v4351_v54 = vpop.f32.mrb[76].mxu0 }
 0x62b   : > { %v2725_v9 = vadd.f32 %v4351_v54, %v6151_v23  ;;  %v2716_v13 = vpop.f32.mrb[77].mxu0 }
 0x62c   : > { %v2717_v14 = vadd.f32 %v6151_v23, %v2716_v13  ;;  %v4352_v22 = vpop.f32.mrb[78].mxu0 }
 0x62d   : > { %v2769_v10 = vmax.f32 %v2725_v9, 0.0  ;;  %v2719_v20 = vpop.f32.mrb[79].mxu0  ;;  %v2728_v40 = vadd.f32 %v4352_v22, %v6151_v23 }
 0x62e   : > { %v2767_v26 = vmax.f32 %v2717_v14, 0.0  ;;  %v2720_v57 = vadd.f32 %v6151_v23, %v2719_v20 }
 0x62f   : > { %v2792_v56 = vmul.f32 %v6155_v39, %v2769_v10  ;;  %v2770_v11 = vmax.f32 %v2728_v40, 0.0 }
 0x630   : > { %v2768_v32 = vmax.f32 %v2720_v57, 0.0  ;;  %v2790_v38 = vmul.f32 %v6155_v39, %v2767_v26 }
 0x631   : > { %v2820_v37 = vsel %vm1923_vm0, %v2792_v56, 0.0  ;;  %v2793_v52 = vmul.f32 %v6155_v39, %v2770_v11 }
 0x632   : > { %2821 = vadd.xlane.f32.xlu1 %v2820_v37  ;;  %v2814_v43 = vsel %vm1923_vm0, %v2790_v38, 0.0  ;;  %v2791_v30 = vmul.f32 %v6155_v39, %v2768_v32 }
 0x633   : > { %v2823_v4 = vsel %vm1923_vm0, %v2793_v52, 0.0 }
 0x634   : > { %v2817_v48 = vsel %vm1923_vm0, %v2791_v30, 0.0 }
 0x636   : > { %2815 = vadd.xlane.f32.xlu1 %v2814_v43 }
 0x63a   : > { %2818 = vadd.xlane.f32.xlu1 %v2817_v48  ;;  %v4355_v50 = vpop.f32.mrb[80].mxu0 }
 0x63b   : > { %v2741_v59 = vadd.f32 %v4355_v50, %v6151_v23  ;;  %v2732_v53 = vpop.f32.mrb[81].mxu0 }
 0x63c   : > { %v2733_v51 = vadd.f32 %v6151_v23, %v2732_v53  ;;  %v4356_v49 = vpop.f32.mrb[82].mxu0 }
 0x63d   : > { %v2773_v3 = vmax.f32 %v2741_v59, 0.0  ;;  %v2744_v42 = vadd.f32 %v4356_v49, %v6151_v23  ;;  %v2735_v25 = vpop.f32.mrb[83].mxu0 }
 0x63e   : > { %v2771_v5 = vmax.f32 %v2733_v51, 0.0  ;;  %2824 = vadd.xlane.f32.xlu1 %v2823_v4  ;;  %v2736_v9 = vadd.f32 %v6151_v23, %v2735_v25 }
 0x63f   : > { %v2796_v6 = vmul.f32 %v6155_v39, %v2773_v3  ;;  %v2774_v54 = vmax.f32 %v2744_v42, 0.0 }
 0x640   : > { %v2794_v14 = vmul.f32 %v6155_v39, %v2771_v5  ;;  %v2772_v26 = vmax.f32 %v2736_v9, 0.0 }
 0x641   : > { %v2832_v13 = vsel %vm1923_vm0, %v2796_v6, 0.0  ;;  %v2797_v32 = vmul.f32 %v6155_v39, %v2774_v54 }
 0x642   : > { %2833 = vadd.xlane.f32.xlu0 %v2832_v13  ;;  %v4359_v22 = vpop.f32.mrb[84].mxu0  ;;  %v2826_v40 = vsel %vm1923_vm0, %v2794_v14, 0.0  ;;  %v2795_v43 = vmul.f32 %v6155_v39, %v2772_v26 }
 0x643   : > { %v2748_v10 = vpop.f32.mrb[85].mxu0  ;;  %v2757_v57 = vadd.f32 %v4359_v22, %v6151_v23  ;;  %v2835_v11 = vsel %vm1923_vm0, %v2797_v32, 0.0 }
 0x644   : > { %v4360_v20 = vpop.f32.mrb[86].mxu0  ;;  %v2749_v38 = vadd.f32 %v6151_v23, %v2748_v10  ;;  %v2829_v52 = vsel %vm1923_vm0, %v2795_v43, 0.0 }
 0x645   : > { %v2751_v56 = vpop.f32.mrb[87].mxu0  ;;  %v2777_v37 = vmax.f32 %v2757_v57, 0.0  ;;  %v2760_v59 = vadd.f32 %v4360_v20, %v6151_v23 }
 0x646   : > { %2827 = vadd.xlane.f32.xlu0 %v2826_v40  ;;  %v2775_v30 = vmax.f32 %v2749_v38, 0.0  ;;  %v2752_v48 = vadd.f32 %v6151_v23, %v2751_v56  ;;  %v6203_v23 = vld [vmem:[#allocation2] ss:$0 sm:$0xff] }
 0x647   : > { %v2800_v50 = vmul.f32 %v6155_v39, %v2777_v37  ;;  %v2778_v3 = vmax.f32 %v2760_v59, 0.0 }
 0x648   : > { %v2776_v53 = vmax.f32 %v2752_v48, 0.0  ;;  %v2798_v49 = vmul.f32 %v6155_v39, %v2775_v30 }
 0x649   : > { %v2844_v51 = vsel %vm1923_vm0, %v2800_v50, 0.0  ;;  %v2801_v5 = vmul.f32 %v6155_v39, %v2778_v3 }
 0x64a   : > { %2836 = vadd.xlane.f32.xlu0 %v2835_v11  ;;  %v2838_v42 = vsel %vm1923_vm0, %v2798_v49, 0.0  ;;  %v2799_v25 = vmul.f32 %v6155_v39, %v2776_v53 }
 0x64b   : > { %v2847_v6 = vsel %vm1923_vm0, %v2801_v5, 0.0 }
 0x64c   : > { %v2841_v4 = vsel %vm1923_vm0, %v2799_v25, 0.0 }
 0x64e   : > { %2830 = vadd.xlane.f32.xlu0 %v2829_v52 }
 0x652   : > { %2845 = vadd.xlane.f32.xlu0 %v2844_v51 }
 0x656   : > { %2839 = vadd.xlane.f32.xlu0 %v2838_v42 }
 0x65a   : > { %2842 = vadd.xlane.f32.xlu0 %v2841_v4 }
 0x65e   : > { %2848 = vadd.xlane.f32.xlu0 %v2847_v6 }
 0x6af   : > { %v2810_v54 = vpop.xlane.xlu1 %2809 }
 0x6b0   : > { %v2859_v9 = vadd.f32 %v6203_v23, %v2810_v54  ;;  %v2804_v13 = vpop.xlane.xlu0 %2803 }
 0x6b1   : > { %v2857_v14 = vadd.f32 %v6203_v23, %v2804_v13 }
 0x6b2   : > { %v2888_v22 = vsel %vm2873_vm2, %v2859_v9, -inf }
 0x6b3   : > { %v2889_v10 = vrot.slane %v2888_v22, 4  ;;  %v2874_v20 = vsel %vm2873_vm2, %v2857_v14, -inf  ;;  %v2813_v26 = vpop.xlane.xlu1 %2812 }
 0x6b4   : > { %v2875_v39 = vrot.slane %v2874_v20, 4  ;;  %v2860_v57 = vadd.f32 %v6203_v23, %v2813_v26 }
 0x6b5   : > { %v2890_v56 = vmax.f32 %v2888_v22, %v2889_v10 }
 0x6b6   : > { %v2876_v40 = vmax.f32 %v2874_v20, %v2875_v39  ;;  %v2895_v32 = vsel %vm2873_vm2, %v2860_v57, -inf }
 0x6b7   : > { %v2891_v37 = vrot.slane %v2890_v56, 2  ;;  %v2896_v38 = vrot.slane %v2895_v32, 4  ;;  %v2807_v11 = vpop.xlane.xlu1 %2806 }
 0x6b8   : > { %v2877_v43 = vrot.slane %v2876_v40, 2  ;;  %v2858_v30 = vadd.f32 %v6203_v23, %v2807_v11 }
 0x6b9   : > { %v2892_v48 = vmax.f32 %v2890_v56, %v2891_v37  ;;  %v2897_v52 = vmax.f32 %v2895_v32, %v2896_v38 }
 0x6ba   : > { %v2878_v50 = vmax.f32 %v2876_v40, %v2877_v43  ;;  %v2881_v59 = vsel %vm2873_vm2, %v2858_v30, -inf }
 0x6bb   : > { %v2893_v53 = vrot.slane %v2892_v48, 1  ;;  %v2898_v51 = vrot.slane %v2897_v52, 2  ;;  %v2882_v49 = vrot.slane %v2881_v59, 4 }
 0x6bc   : > { %v2879_v3 = vrot.slane %v2878_v50, 1 }
 0x6bd   : > { %v2894_v42 = vmax.f32 %v2892_v48, %v2893_v53  ;;  %v2899_v25 = vmax.f32 %v2897_v52, %v2898_v51  ;;  %v2883_v4 = vmax.f32 %v2881_v59, %v2882_v49 }
 0x6be   : > { %v2880_v5 = vmax.f32 %v2878_v50, %v2879_v3 }
 0x6bf   : > { %v2988_v6 = vsub.f32 %v2859_v9, %v2894_v42  ;;  %v2900_v54 = vrot.slane %v2899_v25, 1  ;;  %v2884_v13 = vrot.slane %v2883_v4, 2  ;;  %v2822_v22 = vpop.xlane.xlu1 %2821 }
 0x6c0   : > { %v2986_v10 = vsub.f32 %v2857_v14, %v2880_v5  ;;  %v2863_v20 = vadd.f32 %v6203_v23, %v2822_v22 }
 0x6c1   : > { %v3006_v26 = vmul.f32 1.442695, %v2988_v6  ;;  %v2901_v39 = vmax.f32 %v2899_v25, %v2900_v54  ;;  %v2885_v56 = vmax.f32 %v2883_v4, %v2884_v13 }
 0x6c2   : > { %v3002_v40 = vmul.f32 1.442695, %v2986_v10  ;;  %v2916_v32 = vsel %vm2873_vm2, %v2863_v20, -inf }
 0x6c3   : > { %4645 = vpow2.f32 %v3006_v26  ;;  %v2989_v37 = vsub.f32 %v2860_v57, %v2901_v39  ;;  %v2886_v38 = vrot.slane %v2885_v56, 1  ;;  %v2917_v11 = vrot.slane %v2916_v32, 4  ;;  %v2816_v43 = vpop.xlane.xlu1 %2815 }
 0x6c4   : > { %4647 = vpow2.f32 %v3002_v40  ;;  %v2861_v9 = vadd.f32 %v6203_v23, %v2816_v43 }
 0x6c5   : > { %v3008_v48 = vmul.f32 1.442695, %v2989_v37  ;;  %v2887_v52 = vmax.f32 %v2885_v56, %v2886_v38  ;;  %v2918_v50 = vmax.f32 %v2916_v32, %v2917_v11 }
 0x6c6   : > { %v2902_v14 = vsel %vm2873_vm2, %v2861_v9, -inf }
 0x6c7   : > { %4649 = vpow2.f32 %v3008_v48  ;;  %v2987_v59 = vsub.f32 %v2858_v30, %v2887_v52  ;;  %v2919_v53 = vrot.slane %v2918_v50, 2  ;;  %v2903_v51 = vrot.slane %v2902_v14, 4  ;;  %v2819_v49 = vpop.xlane.xlu1 %2818 }
 0x6c8   : > { %v6218_v3 = vadd.f32 %v6203_v23, %v2819_v49 }
 0x6c9   : > { %v3004_v57 = vmul.f32 1.442695, %v2987_v59  ;;  %v2920_v42 = vmax.f32 %v2918_v50, %v2919_v53  ;;  %v2904_v25 = vmax.f32 %v2902_v14, %v2903_v51 }
 0x6ca   : > { %v2909_v4 = vsel %vm2873_vm2, %v6218_v3, -inf }
 0x6cb   : > { %4651 = vpow2.f32 %v3004_v57  ;;  %v2921_v5 = vrot.slane %v2920_v42, 1  ;;  %v2905_v6 = vrot.slane %v2904_v25, 2  ;;  %v2910_v54 = vrot.slane %v2909_v4, 4  ;;  %v2825_v13 = vpop.xlane.xlu1 %2824 }
 0x6cc   : > { %v6223_v22 = vadd.f32 %v6203_v23, %v2825_v13 }
 0x6cd   : > { %v6225_v30 = vpop.eup %4645  ;;  %v2922_v10 = vmax.f32 %v2920_v42, %v2921_v5  ;;  %v2906_v26 = vmax.f32 %v2904_v25, %v2905_v6  ;;  %v2911_v39 = vmax.f32 %v2909_v4, %v2910_v54 }
 0x6ce   : > { %v6227_v56 = vpop.eup %4647  ;;  %v3048_v40 = vsel %vm2873_vm2, %v6225_v30, 0.0  ;;  %v2923_v32 = vsel %vm2873_vm2, %v6223_v22, -inf }
 0x6cf   : > { %v3049_v37 = vrot.slane %v3048_v40, 4  ;;  %v3034_v38 = vsel %vm2873_vm2, %v6227_v56, 0.0  ;;  %v2992_v11 = vsub.f32 %v2863_v20, %v2922_v10  ;;  %v2907_v43 = vrot.slane %v2906_v26, 1  ;;  %v2834_v48 = vpop.xlane.xlu0 %2833 }
 0x6d0   : > { %v2912_v52 = vrot.slane %v2911_v39, 2  ;;  %v2924_v50 = vrot.slane %v2923_v32, 4  ;;  %v6236_v14 = vadd.f32 %v6203_v23, %v2834_v48  ;;  %v3035_v53 = vrot.slane %v3034_v38, 4 }
 0x6d1   : > { %v6238_v59 = vpop.eup %4649  ;;  %v3014_v51 = vmul.f32 1.442695, %v2992_v11  ;;  %v2908_v49 = vmax.f32 %v2906_v26, %v2907_v43  ;;  %v3050_v57 = vadd.f32 %v3049_v37, %v3048_v40 }
 0x6d2   : > { %v3055_v42 = vsel %vm2873_vm2, %v6238_v59, 0.0  ;;  %v2913_v25 = vmax.f32 %v2911_v39, %v2912_v52  ;;  %v2925_v4 = vmax.f32 %v2923_v32, %v2924_v50  ;;  %v2944_v20 = vsel %vm2873_vm2, %v6236_v14, -inf }
 0x6d3   : > { %v3056_v5 = vrot.slane %v3055_v42, 4  ;;  %4653 = vpow2.f32 %v3014_v51  ;;  %v2990_v6 = vsub.f32 %v2861_v9, %v2908_v49  ;;  %v2945_v54 = vrot.slane %v2944_v20, 4  ;;  %v2828_v13 = vpop.xlane.xlu0 %2827 }
 0x6d4   : > { %v2914_v10 = vrot.slane %v2913_v25, 1  ;;  %v2926_v48 = vrot.slane %v2925_v4, 2  ;;  %v6245_v0 = vadd.f32 %v6203_v23, %v2828_v13  ;;  %v3051_v26 = vrot.slane %v3050_v57, 2 }
 0x6d5   : > { %v6247_v40 = vpop.eup %4651  ;;  %v3010_v37 = vmul.f32 1.442695, %v2990_v6  ;;  %v2946_v11 = vmax.f32 %v2944_v20, %v2945_v54  ;;  %v3036_v39 = vadd.f32 %v3035_v53, %v3034_v38  ;;  %v3057_v32 = vadd.f32 %v3056_v5, %v3055_v42 }
 0x6d6   : > { %v6251_v43 = vsel %vm2873_vm2, %v6247_v40, 0.0  ;;  %v2915_v52 = vmax.f32 %v2913_v25, %v2914_v10  ;;  %v2927_v9 = vmax.f32 %v2925_v4, %v2926_v48  ;;  %v2930_v50 = vsel %vm2873_vm2, %v6245_v0, -inf }
 0x6d7   : > { %v3042_v51 = vrot.slane %v6251_v43, 4  ;;  %4655 = vpow2.f32 %v3010_v37  ;;  %v2947_v49 = vrot.slane %v2946_v11, 2  ;;  %v2931_v13 = vrot.slane %v2930_v50, 4  ;;  %v2837_v2 = vpop.xlane.xlu0 %2836 }
 0x6d8   : > { %v2991_v6 = vsub.f32 %v6218_v3, %v2915_v52  ;;  %v2928_v20 = vrot.slane %v2927_v9, 1  ;;  %v6258_v38 = vadd.f32 %v6203_v23, %v2837_v2  ;;  %v3052_v53 = vadd.f32 %v3051_v26, %v3050_v57 }
 0x6d9   : > { %v2948_v42 = vmax.f32 %v2946_v11, %v2947_v49  ;;  %v2932_v5 = vmax.f32 %v2930_v50, %v2931_v13  ;;  %v3037_v25 = vrot.slane %v3036_v39, 2  ;;  %v3058_v4 = vrot.slane %v3057_v32, 2 }
 0x6da   : > { %v3012_v54 = vmul.f32 1.442695, %v2991_v6  ;;  %v2929_v10 = vmax.f32 %v2927_v9, %v2928_v20  ;;  %v2951_v48 = vsel %vm2873_vm2, %v6258_v38, -inf  ;;  %v3053_v37 = vrot.slane %v3052_v53, 1 }
 0x6db   : > { %v2949_v1 = vrot.slane %v2948_v42, 1  ;;  %v2933_v55 = vrot.slane %v2932_v5, 2  ;;  %v2952_v47 = vrot.slane %v2951_v48, 4  ;;  %v2831_v8 = vpop.xlane.xlu0 %2830  ;;  %v3038_v3 = vadd.f32 %v3037_v25, %v3036_v39 }
 0x6dc   : > { %4657 = vpow2.f32 %v3012_v54  ;;  %v2993_v2 = vsub.f32 %v6223_v22, %v2929_v10  ;;  %v6264_v57 = vadd.f32 %v6203_v23, %v2831_v8  ;;  %v3054_v26 = vadd.f32 %v3053_v37, %v3052_v53 }
 0x6dd   : > { %v6266_v11 = vpop.eup %4653  ;;  %v2950_v52 = vmax.f32 %v2948_v42, %v2949_v1  ;;  %v2934_v9 = vmax.f32 %v2932_v5, %v2933_v55  ;;  %v2953_v50 = vmax.f32 %v2951_v48, %v2952_v47  ;;  %v3039_v49 = vrot.slane %v3038_v3, 1 }
 0x6de   : > { %v3076_v13 = vsel %vm2873_vm2, %v6266_v11, 0.0  ;;  %v3016_v6 = vmul.f32 1.442695, %v2993_v2  ;;  %v2937_v39 = vsel %vm2873_vm2, %v6264_v57, -inf  ;;  %4659 = vrcp.f32 %v3054_v26 }
 0x6df   : > { %v3077_v20 = vrot.slane %v3076_v13, 4  ;;  %v2996_v22 = vsub.f32 %v6236_v14, %v2950_v52  ;;  %v2935_v8 = vrot.slane %v2934_v9, 1  ;;  %v2954_v25 = vrot.slane %v2953_v50, 2  ;;  %v2846_v53 = vpop.xlane.xlu0 %2845 }
 0x6e0   : > { %4661 = vpow2.f32 %v3016_v6  ;;  %v2938_v54 = vrot.slane %v2937_v39, 4  ;;  %v6274_v1 = vadd.f32 %v6203_v23, %v2846_v53  ;;  %v3040_v47 = vadd.f32 %v3039_v49, %v3038_v3 }
 0x6e1   : > { %v6276_v55 = vpop.eup %4655  ;;  %v3022_v42 = vmul.f32 1.442695, %v2996_v22  ;;  %v2936_v5 = vmax.f32 %v2934_v9, %v2935_v8  ;;  %v2955_v10 = vmax.f32 %v2953_v50, %v2954_v25  ;;  %v3059_v48 = vadd.f32 %v3058_v4, %v3057_v32 }
 0x6e2   : > { %v6280_v37 = vsel %vm2873_vm2, %v6276_v55, 0.0  ;;  %v2939_v14 = vmax.f32 %v2937_v39, %v2938_v54  ;;  %v2972_v2 = vsel %vm2873_vm2, %v6274_v1, -inf  ;;  %4663 = vrcp.f32 %v3040_v47 }
 0x6e3   : > { %4665 = vpow2.f32 %v3022_v42  ;;  %v2994_v3 = vsub.f32 %v6245_v0, %v2936_v5  ;;  %v2956_v49 = vrot.slane %v2955_v10, 1  ;;  %v2840_v6 = vpop.xlane.xlu0 %2839  ;;  %v2973_v9 = vrot.slane %v2972_v2, 4 }
 0x6e4   : > { %v2940_v22 = vrot.slane %v2939_v14, 2  ;;  %v6287_v32 = vadd.f32 %v6203_v23, %v2840_v6  ;;  %v3060_v4 = vrot.slane %v3059_v48, 1  ;;  %v3043_v39 = vadd.f32 %v3042_v51, %v6251_v43 }
 0x6e5   : > { %v3018_v50 = vmul.f32 1.442695, %v2994_v3  ;;  %v2957_v8 = vmax.f32 %v2955_v10, %v2956_v49  ;;  %v6292_v25 = vadd.f32 %v3077_v20, %v3076_v13  ;;  %v2974_v0 = vmax.f32 %v2972_v2, %v2973_v9 }
 0x6e6   : > { %v6294_v53 = vpop.eup %4657  ;;  %v2941_v54 = vmax.f32 %v2939_v14, %v2940_v22  ;;  %v2958_v42 = vsel %vm2873_vm2, %v6287_v32, -inf  ;;  %v6298_v5 = vadd.f32 %v3060_v4, %v3059_v48 }
 0x6e7   : > { %v6302_v6 = vsel %vm2873_vm2, %v6294_v53, 0.0  ;;  %4667 = vpow2.f32 %v3018_v50  ;;  %v2997_v10 = vsub.f32 %v6258_v38, %v2957_v8  ;;  %v2959_v3 = vrot.slane %v2958_v42, 4  ;;  %v2843_v43 = vpop.xlane.xlu0 %2842 }
 0x6e8   : > { %v4660_v51 = vpop.eup %4659  ;;  %v2942_v20 = vrot.slane %v2941_v54, 1  ;;  %v2975_v14 = vrot.slane %v2974_v0, 2  ;;  %v6307_v2 = vadd.f32 %v6203_v23, %v2843_v43  ;;  %4669 = vrcp.f32 %v6298_v5 }
 0x6e9   : > { %v3024_v49 = vmul.f32 1.442695, %v2997_v10  ;;  %v2960_v48 = vmax.f32 %v2958_v42, %v2959_v3  ;;  %v3164_v22 = vmul.f32 %v4660_v51, %v3054_v26  ;;  %v3044_v8 = vrot.slane %v3043_v39, 2 }
 0x6ea   : > { %v6310_v9 = vpop.eup %4661  ;;  %v2943_v4 = vmax.f32 %v2941_v54, %v2942_v20  ;;  %v2976_v50 = vmax.f32 %v2974_v0, %v2975_v14  ;;  %v2965_v38 = vsel %vm2873_vm2, %v6307_v2, -inf }
 0x6eb   : > { %v6316_v46 = vsel %vm2873_vm2, %v6310_v9, 0.0  ;;  %4671 = vpow2.f32 %v3024_v49  ;;  %v2961_v43 = vrot.slane %v2960_v48, 2  ;;  %v2966_v58 = vrot.slane %v2965_v38, 4  ;;  %v2849_v10 = vpop.xlane.xlu0 %2848 }
 0x6ec   : > { %v4664_v42 = vpop.eup %4663  ;;  %v3084_v26 = vrot.slane %v6316_v46, 4  ;;  %v2995_v3 = vsub.f32 %v6264_v57, %v2943_v4  ;;  %v2977_v31 = vrot.slane %v2976_v50, 1  ;;  %v6321_v54 = vadd.f32 %v6203_v23, %v2849_v10 }
 0x6ed   : > { %v6323_v0 = vpop.eup %4665  ;;  %v2962_v20 = vmax.f32 %v2960_v48, %v2961_v43  ;;  %v2967_v14 = vmax.f32 %v2965_v38, %v2966_v58  ;;  %v3180_v35 = vsub.f32 2.0, %v3164_v22  ;;  %v3162_v34 = vmul.f32 %v4664_v42, %v3040_v47 }
 0x6ee   : > { %v3104_v49 = vsel %vm2873_vm2, %v6323_v0, 0.0  ;;  %v3020_v36 = vmul.f32 1.442695, %v2995_v3  ;;  %v2978_v21 = vmax.f32 %v2976_v50, %v2977_v31  ;;  %v2979_v18 = vsel %vm2873_vm2, %v6321_v54, -inf }
 0x6ef   : > { %v3105_v41 = vrot.slane %v3104_v49, 4  ;;  %v2963_v57 = vrot.slane %v2962_v20, 1  ;;  %v2968_v4 = vrot.slane %v2967_v14, 2  ;;  %v2980_v19 = vrot.slane %v2979_v18, 4 }
 0x6f0   : > { %4673 = vpow2.f32 %v3020_v36  ;;  %v3000_v23 = vsub.f32 %v6274_v1, %v2978_v21  ;;  %v3196_v10 = vmul.f32 %v4660_v51, %v3180_v35  ;;  %v3178_v48 = vsub.f32 2.0, %v3162_v34 }
 0x6f1   : > { %v6330_v58 = vpop.eup %4667  ;;  %v2964_v47 = vmax.f32 %v2962_v20, %v2963_v57  ;;  %v2969_v22 = vmax.f32 %v2967_v14, %v2968_v4  ;;  %v2981_v38 = vmax.f32 %v2979_v18, %v2980_v19  ;;  %v3045_v43 = vadd.f32 %v3044_v8, %v3043_v39 }
 0x6f2   : > { %v3090_v31 = vsel %vm2873_vm2, %v6330_v58, 0.0  ;;  %v3030_v50 = vmul.f32 1.442695, %v3000_v23  ;;  %v3212_v3 = vmul.f32 %v6225_v30, %v3196_v10  ;;  %v3194_v13 = vmul.f32 %v4664_v42, %v3178_v48  ;;  %v4670_v52 = vpop.eup %4669 }
 0x6f3   : > { %v3091_v63 = vrot.slane %v3090_v31, 4  ;;  %v2998_v36 = vsub.f32 %v6287_v32, %v2964_v47  ;;  %v2970_v21 = vrot.slane %v2969_v22, 1  ;;  %v2982_v35 = vrot.slane %v2981_v38, 2 }
 0x6f4   : > { %4675 = vpow2.f32 %v3030_v50  ;;  %3238 = vperm.xlu0 %4585, %v3212_v3   ;;  %v3210_v34 = vmul.f32 %v6227_v56, %v3194_v13  ;;  %v3165_v18 = vmul.f32 %v4670_v52, %v6298_v5  ;;  %v3046_v19 = vrot.slane %v3045_v43, 1 }
 0x6f5   : > { %v6338_v1 = vpop.eup %4671  ;;  %v3026_v39 = vmul.f32 1.442695, %v2998_v36  ;;  %v2971_v51 = vmax.f32 %v2969_v22, %v2970_v21  ;;  %v2983_v8 = vmax.f32 %v2981_v38, %v2982_v35  ;;  %v3079_v30 = vrot.slane %v6292_v25, 2 }
 0x6f6   : > { %v3111_v42 = vsel %vm2873_vm2, %v6338_v1, 0.0  ;;  %3228 = vperm.xlu1 %4586, %v3210_v34   ;;  %v3181_v32 = vsub.f32 2.0, %v3165_v18  ;;  %v3047_v20 = vadd.f32 %v3046_v19, %v3045_v43  ;;  %v6582_v14 = vrot.slane %v6280_v37, 4 }
 0x6f7   : > { %v3112_v13 = vrot.slane %v3111_v42, 4  ;;  %4677 = vpow2.f32 %v3026_v39  ;;  %v2999_v5 = vsub.f32 %v6307_v2, %v2971_v51  ;;  %v2984_v57 = vrot.slane %v2983_v8, 1 }
 0x6f8   : > { %v3064_v56 = vadd.f32 %v6582_v14, %v6280_v37  ;;  %v3197_v4 = vmul.f32 %v4670_v52, %v3181_v32  ;;  %4679 = vrcp.f32 %v3047_v20  ;;  %v3080_v23 = vadd.f32 %v3079_v30, %v6292_v25 }
 0x6f9   : > { %v3028_v48 = vmul.f32 1.442695, %v2999_v5  ;;  %v2985_v47 = vmax.f32 %v2983_v8, %v2984_v57  ;;  %v6583_v22 = vrot.slane %v6302_v6, 4  ;;  %v3085_v43 = vadd.f32 %v3084_v26, %v6316_v46 }
 0x6fa   : > { %v3065_v10 = vrot.slane %v3064_v56, 2  ;;  %v6352_v50 = vpop.eup %4673  ;;  %v3213_v37 = vmul.f32 %v6238_v59, %v3197_v4  ;;  %v3081_v3 = vrot.slane %v3080_v23, 1  ;;  %v3106_v36 = vadd.f32 %v3105_v41, %v3104_v49 }
 0x6fb   : > { %v3071_v38 = vadd.f32 %v6583_v22, %v6302_v6  ;;  %v3097_v52 = vsel %vm2873_vm2, %v6352_v50, 0.0  ;;  %4681 = vpow2.f32 %v3028_v48  ;;  %v3001_v25 = vsub.f32 %v6321_v54, %v2985_v47 }
 0x6fc   : > { %v3066_v2 = vadd.f32 %v3065_v10, %v3064_v56  ;;  %v3098_v35 = vrot.slane %v3097_v52, 4  ;;  %3243 = vperm.xlu0 %4585, %v3213_v37   ;;  %v3082_v34 = vadd.f32 %v3081_v3, %v3080_v23  ;;  %v3086_v18 = vrot.slane %v3085_v43, 2 }
 0x6fd   : > { %v3072_v21 = vrot.slane %v3071_v38, 2  ;;  %v3032_v46 = vmul.f32 1.442695, %v3001_v25  ;;  %v3107_v19 = vrot.slane %v3106_v36, 2  ;;  %v3092_v39 = vadd.f32 %v3091_v63, %v3090_v31 }
 0x6fe   : > { %v3067_v6 = vrot.slane %v3066_v2, 1  ;;  %v6358_v59 = vpop.eup %4675  ;;  %4683 = vrcp.f32 %v3082_v34  ;;  %v3087_v49 = vadd.f32 %v3086_v18, %v3085_v43  ;;  %v3113_v51 = vadd.f32 %v3112_v13, %v3111_v42 }
 0x6ff   : > { %v3073_v26 = vadd.f32 %v3072_v21, %v3071_v38  ;;  %v3132_v8 = vsel %vm2873_vm2, %v6358_v59, 0.0  ;;  %4685 = vpow2.f32 %v3032_v46  ;;  %v3108_v30 = vadd.f32 %v3107_v19, %v3106_v36 }
 0x700   : > { %v3068_v41 = vadd.f32 %v3067_v6, %v3066_v2  ;;  %v3133_v32 = vrot.slane %v3132_v8, 4  ;;  %v3088_v14 = vrot.slane %v3087_v49, 1  ;;  %v3093_v56 = vrot.slane %v3092_v39, 2 }
 0x701   : > { %v3074_v54 = vrot.slane %v3073_v26, 1  ;;  %v6362_v5 = vpop.eup %4677  ;;  %v3109_v63 = vrot.slane %v3108_v30, 1  ;;  %v3114_v31 = vrot.slane %v3113_v51, 2  ;;  %v3099_v4 = vadd.f32 %v3098_v35, %v3097_v52 }
 0x702   : > { %4687 = vrcp.f32 %v3068_v41  ;;  %v4680_v23 = vpop.eup %4679  ;;  %v3118_v42 = vsel %vm2873_vm2, %v6362_v5, 0.0  ;;  %v3089_v13 = vadd.f32 %v3088_v14, %v3087_v49  ;;  %v3094_v10 = vadd.f32 %v3093_v56, %v3092_v39 }
 0x703   : > { %v3075_v57 = vadd.f32 %v3074_v54, %v3073_v26  ;;  %v3134_v48 = vadd.f32 %v3133_v32, %v3132_v8  ;;  %v3119_v47 = vrot.slane %v3118_v42, 4  ;;  %v3163_v22 = vmul.f32 %v4680_v23, %v3047_v20 }
 0x704   : > { %v3110_v38 = vadd.f32 %v3109_v63, %v3108_v30  ;;  %v3095_v43 = vrot.slane %v3094_v10, 1  ;;  %v3115_v37 = vadd.f32 %v3114_v31, %v3113_v51  ;;  %v3100_v3 = vrot.slane %v3099_v4, 2 }
 0x705   : > { %4689 = vrcp.f32 %v3075_v57  ;;  %v6366_v2 = vpop.eup %4681  ;;  %v3179_v36 = vsub.f32 2.0, %v3163_v22  ;;  %v3135_v52 = vrot.slane %v3134_v48, 2  ;;  %v3120_v25 = vadd.f32 %v3119_v47, %v3118_v42 }
 0x706   : > { %4691 = vrcp.f32 %v3089_v13  ;;  %v3125_v21 = vsel %vm2873_vm2, %v6366_v2, 0.0  ;;  %v3096_v35 = vadd.f32 %v3095_v43, %v3094_v10  ;;  %v3116_v6 = vrot.slane %v3115_v37, 1 }
 0x707   : > { %4693 = vrcp.f32 %v3110_v38  ;;  %v3101_v18 = vadd.f32 %v3100_v3, %v3099_v4  ;;  %v3126_v46 = vrot.slane %v3125_v21, 4  ;;  %v3195_v20 = vmul.f32 %v4680_v23, %v3179_v36 }
 0x708   : > { %v3136_v26 = vadd.f32 %v3135_v52, %v3134_v48  ;;  %v3121_v19 = vrot.slane %v3120_v25, 2  ;;  %v4684_v39 = vpop.eup %4683  ;;  %4695 = vrcp.f32 %v3096_v35  ;;  %v3117_v49 = vadd.f32 %v3116_v6, %v3115_v37 }
 0x709   : > { %v3102_v51 = vrot.slane %v3101_v18, 1  ;;  %v6370_v8 = vpop.eup %4685  ;;  %v3211_v54 = vmul.f32 %v6247_v40, %v3195_v20  ;;  %v3168_v30 = vmul.f32 %v4684_v39, %v3082_v34  ;;  %v3127_v4 = vadd.f32 %v3126_v46, %v3125_v21 }
 0x70a   : > { %v3137_v32 = vrot.slane %v3136_v26, 1  ;;  %v3122_v14 = vadd.f32 %v3121_v19, %v3120_v25  ;;  %v3139_v63 = vsel %vm2873_vm2, %v6370_v8, 0.0  ;;  %4697 = vrcp.f32 %v3117_v49 }
 0x70b   : > { %v3103_v31 = vadd.f32 %v3102_v51, %v3101_v18  ;;  %v3140_v23 = vrot.slane %v3139_v63, 4  ;;  %3233 = vperm.xlu0 %4585, %v3211_v54   ;;  %v3184_v42 = vsub.f32 2.0, %v3168_v30  ;;  %v3128_v22 = vrot.slane %v3127_v4, 2 }
 0x70c   : > { %v4688_v56 = vpop.eup %4687  ;;  %v3138_v48 = vadd.f32 %v3137_v32, %v3136_v26  ;;  %v3123_v47 = vrot.slane %v3122_v14, 1 }
 0x70d   : > { %v3166_v10 = vmul.f32 %v4688_v56, %v3068_v41  ;;  %4699 = vrcp.f32 %v3103_v31  ;;  %v3200_v40 = vmul.f32 %v4684_v39, %v3184_v42  ;;  %v3141_v37 = vadd.f32 %v3140_v23, %v3139_v63 }
 0x70e   : > { %4701 = vrcp.f32 %v3138_v48  ;;  %v3124_v52 = vadd.f32 %v3123_v47, %v3122_v14  ;;  %v3129_v25 = vadd.f32 %v3128_v22, %v3127_v4 }
 0x70f   : > { %v4690_v43 = vpop.eup %4689  ;;  %v3182_v34 = vsub.f32 2.0, %v3166_v10  ;;  %v3216_v21 = vmul.f32 %v6266_v11, %v3200_v40  ;;  %v3142_v20 = vrot.slane %v3141_v37, 2 }
 0x710   : > { %v4692_v3 = vpop.eup %4691  ;;  %v3167_v36 = vmul.f32 %v4690_v43, %v3075_v57  ;;  %4703 = vrcp.f32 %v3124_v52  ;;  %v3130_v19 = vrot.slane %v3129_v25, 1 }
 0x711   : > { %v4694_v6 = vpop.eup %4693  ;;  %v3198_v18 = vmul.f32 %v4688_v56, %v3182_v34  ;;  %v3169_v46 = vmul.f32 %v4692_v3, %v3089_v13  ;;  %3258 = vperm.xlu0 %4585, %v3216_v21   ;;  %v3143_v54 = vadd.f32 %v3142_v20, %v3141_v37 }
 0x712   : > { %v3183_v41 = vsub.f32 2.0, %v3167_v36  ;;  %v3172_v26 = vmul.f32 %v4694_v6, %v3110_v38  ;;  %v4696_v30 = vpop.eup %4695  ;;  %v3131_v14 = vadd.f32 %v3130_v19, %v3129_v25 }
 0x713   : > { %v3214_v39 = vmul.f32 %v6276_v55, %v3198_v18  ;;  %v3185_v51 = vsub.f32 2.0, %v3169_v46  ;;  %v3170_v63 = vmul.f32 %v4696_v30, %v3096_v35  ;;  %v3144_v4 = vrot.slane %v3143_v54, 1 }
 0x714   : > { %v3199_v32 = vmul.f32 %v4690_v43, %v3183_v41  ;;  %v3188_v57 = vsub.f32 2.0, %v3172_v26  ;;  %v4698_v23 = vpop.eup %4697  ;;  %4705 = vrcp.f32 %v3131_v14 }
 0x715   : > { %v3201_v11 = vmul.f32 %v4692_v3, %v3185_v51  ;;  %3248 = vperm.xlu0 %4585, %v3214_v39   ;;  %v3186_v38 = vsub.f32 2.0, %v3170_v63  ;;  %v3173_v42 = vmul.f32 %v4698_v23, %v3117_v49  ;;  %v3145_v10 = vadd.f32 %v3144_v4, %v3143_v54 }
 0x716   : > { %v3204_v56 = vmul.f32 %v4694_v6, %v3188_v57  ;;  %v3215_v13 = vmul.f32 %v6294_v53, %v3199_v32  ;;  %v6585_v63 = vmax.f32 %v6012_v15, 0.0 }
 0x717   : > { %v4700_v47 = vpop.eup %4699  ;;  %v3202_v40 = vmul.f32 %v4696_v30, %v3186_v38  ;;  %v3189_v43 = vsub.f32 2.0, %v3173_v42  ;;  %4707 = vrcp.f32 %v3145_v10  ;;  %v3217_v37 = vmul.f32 %v6310_v9, %v3201_v11 }
 0x718   : > { %v3220_v55 = vmul.f32 %v6323_v0, %v3204_v56  ;;  %v4702_v22 = vpop.eup %4701  ;;  %v3171_v34 = vmul.f32 %v4700_v47, %v3103_v31 }
 0x719   : > { %v3176_v35 = vmul.f32 %v4702_v22, %v3138_v48  ;;  %3253 = vperm.xlu0 %4585, %v3215_v13   ;;  %v3218_v3 = vmul.f32 %v6330_v58, %v3202_v40  ;;  %v3205_v36 = vmul.f32 %v4698_v23, %v3189_v43  ;;  %v6586_v23 = vmax.f32 %v6014_v16, 0.0 }
 0x71a   : > { %3278 = vperm.xlu1 %4586, %v3220_v55   ;;  %v3187_v53 = vsub.f32 2.0, %v3171_v34  ;;  %v4704_v25 = vpop.eup %4703  ;;  %v6588_v34 = vmax.f32 %v6034_v28, 0.0 }
 0x71b   : > { %v3221_v49 = vmul.f32 %v6338_v1, %v3205_v36  ;;  %v3192_v0 = vsub.f32 2.0, %v3176_v35  ;;  %v3174_v21 = vmul.f32 %v4704_v25, %v3124_v52 }
 0x71c   : > { %v3203_v6 = vmul.f32 %v4700_v47, %v3187_v53 }
 0x71d   : > { %3263 = vperm.xlu0 %4585, %v3217_v37   ;;  %v3208_v48 = vmul.f32 %v4702_v22, %v3192_v0  ;;  %v3190_v46 = vsub.f32 2.0, %v3174_v21  ;;  %v6589_v0 = vmax.f32 %v6032_v27, 0.0 }
 0x71e   : > { %3268 = vperm.xlu1 %4586, %v3218_v3   ;;  %v4706_v18 = vpop.eup %4705  ;;  %v3219_v31 = vmul.f32 %v6352_v50, %v3203_v6 }
 0x71f   : > { %v3175_v20 = vmul.f32 %v4706_v18, %v3131_v14  ;;  %v3224_v58 = vmul.f32 %v6358_v59, %v3208_v48  ;;  %v3206_v41 = vmul.f32 %v4704_v25, %v3190_v46  ;;  %v6584_v59 = vmax.f32 %v6010_v61, 0.0 }
 0x721   : > { %v4708_v9 = vpop.eup %4707  ;;  %v3191_v26 = vsub.f32 2.0, %v3175_v20  ;;  %v3222_v1 = vmul.f32 %v6362_v5, %v3206_v41 }
 0x722   : > { %3283 = vperm.xlu1 %4586, %v3221_v49   ;;  %v3177_v19 = vmul.f32 %v4708_v9, %v3145_v10 }
 0x723   : > { %v3207_v39 = vmul.f32 %v4706_v18, %v3191_v26  ;;  %v6590_v26 = vmax.f32 %v6038_v33, 0.0 }
 0x724   : > { %v3193_v52 = vsub.f32 2.0, %v3177_v19 }
 0x725   : > { %v3223_v51 = vmul.f32 %v6366_v2, %v3207_v39 }
 0x726   : > { %3273 = vperm.xlu1 %4586, %v3219_v31   ;;  %v3209_v54 = vmul.f32 %v4708_v9, %v3193_v52 }
 0x728   : > { %v3225_v50 = vmul.f32 %v6370_v8, %v3209_v54  ;;  %v6587_v8 = vmax.f32 %v6016_v17, 0.0 }
 0x72a   : > { %3298 = vperm.xlu1 %4586, %v3224_v58  }
 0x72e   : > { %3288 = vperm.xlu1 %4586, %v3222_v1  }
 0x732   : > { %3293 = vperm.xlu1 %4586, %v3223_v51  }
 0x736   : > { %3303 = vperm.xlu1 %4586, %v3225_v50  }
 0x773   : > { %v3239_v30 = vpop.permute.xlu0 %3238 }
 0x774   : > { %v3308_v4 = vmul.f32 %v3239_v30, %v6585_v63 }
 0x775   : > { %v3229_v32 = vpop.permute.xlu1 %3228 }
 0x776   : > { %v3306_v57 = vmul.f32 %v3229_v32, %v6584_v59  ;;  %v3336_v2 = vsel %vm1923_vm0, %v3308_v4, 0.0  ;;  %v6591_v59 = vmax.f32 %v6056_v12, 0.0  ;;  %v6592_v4 = vmax.f32 %v6036_v29, 0.0 }
 0x777   : > { %v3337_v42 = vrot.slane %v3336_v2, 4 }
 0x778   : > { %v3322_v5 = vsel %vm1923_vm0, %v3306_v57, 0.0 }
 0x779   : > { %v3323_v56 = vrot.slane %v3322_v5, 4  ;;  %v3338_v22 = vadd.f32 %v3337_v42, %v3336_v2 }
 0x77b   : > { %v3244_v14 = vpop.permute.xlu0 %3243  ;;  %v3324_v10 = vadd.f32 %v3323_v56, %v3322_v5  ;;  %v3339_v36 = vrot.slane %v3338_v22, 2  ;;  %v6593_v5 = vmax.f32 %v6054_v7, 0.0 }
 0x77c   : > { %v3309_v11 = vmul.f32 %v3244_v14, %v6586_v23 }
 0x77d   : > { %v3325_v16 = vrot.slane %v3324_v10, 2  ;;  %v3340_v20 = vadd.f32 %v3339_v36, %v3338_v22 }
 0x77e   : > { %v3343_v61 = vsel %vm1923_vm0, %v3309_v11, 0.0 }
 0x77f   : > { %v3344_v55 = vrot.slane %v3343_v61, 4  ;;  %v3326_v49 = vadd.f32 %v3325_v16, %v3324_v10  ;;  %v3341_v54 = vrot.slane %v3340_v20, 1 }
 0x781   : > { %v3345_v3 = vadd.f32 %v3344_v55, %v3343_v61  ;;  %v3327_v58 = vrot.slane %v3326_v49, 1  ;;  %v6594_v55 = vmax.f32 %v6058_v44, 0.0  ;;  %v6595_v44 = vmax.f32 %v6060_v45, 0.0 }
 0x783   : > { %v3346_v18 = vrot.slane %v3345_v3, 2  ;;  %v3328_v14 = vadd.f32 %v3327_v58, %v3326_v49 }
 0x785   : > { %v3347_v39 = vadd.f32 %v3346_v18, %v3345_v3 }
 0x787   : > { %v3348_v56 = vrot.slane %v3347_v39, 1 }
 0x78a   : > { %v3234_v13 = vpop.permute.xlu0 %3233 }
 0x78b   : > { %v3307_v38 = vmul.f32 %v3234_v13, %v6587_v8 }
 0x78d   : > { %v3329_v47 = vsel %vm1923_vm0, %v3307_v38, 0.0 }
 0x78e   : > { %v3330_v15 = vrot.slane %v3329_v47, 4 }
 0x790   : > { %v3331_v40 = vadd.f32 %v3330_v15, %v3329_v47  ;;  %v3259_v43 = vpop.permute.xlu0 %3258  ;;  %v3342_v47 = vadd.f32 %v3341_v54, %v3340_v20 }
 0x791   : > { %v3312_v35 = vmul.f32 %v3259_v43, %v6588_v34 }
 0x792   : > { %v3332_v37 = vrot.slane %v3331_v40, 2 }
 0x793   : > { %v3364_v17 = vsel %vm1923_vm0, %v3312_v35, 0.0 }
 0x794   : > { %v3333_v53 = vadd.f32 %v3332_v37, %v3331_v40  ;;  %v3249_v25 = vpop.permute.xlu0 %3248  ;;  %v3365_v6 = vrot.slane %v3364_v17, 4 }
 0x795   : > { %v3310_v21 = vmul.f32 %v3249_v25, %v6589_v0 }
 0x796   : > { %v3334_v31 = vrot.slane %v3333_v53, 1  ;;  %v3366_v41 = vadd.f32 %v3365_v6, %v3364_v17  ;;  %v3349_v17 = vadd.f32 %v3348_v56, %v3347_v39 }
 0x797   : > { %v3350_v48 = vsel %vm1923_vm0, %v3310_v21, 0.0 }
 0x798   : > { %v3351_v28 = vrot.slane %v3350_v48, 4  ;;  %v3254_v9 = vpop.permute.xlu0 %3253  ;;  %v3335_v52 = vadd.f32 %v3334_v31, %v3333_v53  ;;  %v3367_v63 = vrot.slane %v3366_v41, 2 }
 0x799   : > { %v3279_v46 = vpop.permute.xlu1 %3278  ;;  %v3311_v19 = vmul.f32 %v3254_v9, %v6590_v26 }
 0x79a   : > { %v3352_v1 = vadd.f32 %v3351_v28, %v3350_v48  ;;  %v3316_v57 = vmul.f32 %v3279_v46, %v6591_v59  ;;  %v3451_v13 = vsel %vm3450_vm3, %v3335_v52, %v3328_v14  ;;  %v3368_v15 = vadd.f32 %v3367_v63, %v3366_v41 }
 0x79b   : > { %v3357_v27 = vsel %vm1923_vm0, %v3311_v19, 0.0  ;;  %v3453_v16 = vsel %vm3452_vm4, %v3342_v47, %v3451_v13  ;;  %v6596_v19 = vmax.f32 %v6077_v62, 0.0  ;;  %v6597_v14 = vmax.f32 %v6074_v60, 0.0 }
 0x79c   : > { %v3353_v50 = vrot.slane %v3352_v1, 2  ;;  %v3358_v30 = vrot.slane %v3357_v27, 4  ;;  %v3264_v32 = vpop.permute.xlu0 %3263  ;;  %v3392_v29 = vsel %vm1923_vm0, %v3316_v57, 0.0  ;;  %v3369_v25 = vrot.slane %v3368_v15, 1 }
 0x79d   : > { %v3269_v51 = vpop.permute.xlu1 %3268  ;;  %v3313_v33 = vmul.f32 %v3264_v32, %v6592_v4  ;;  %v3393_v35 = vrot.slane %v3392_v29, 4  ;;  %v3455_v0 = vsel %vm3454_vm5, %v3349_v17, %v3453_v16 }
 0x79e   : > { %v3314_v23 = vmul.f32 %v3269_v51, %v6593_v5  ;;  %v3354_v11 = vadd.f32 %v3353_v50, %v3352_v1  ;;  %v3359_v2 = vadd.f32 %v3358_v30, %v3357_v27  ;;  %v3370_v26 = vadd.f32 %v3369_v25, %v3368_v15 }
 0x79f   : > { %v3371_v8 = vsel %vm1923_vm0, %v3313_v33, 0.0  ;;  %v3394_v46 = vadd.f32 %v3393_v35, %v3392_v29 }
 0x7a0   : > { %v3378_v38 = vsel %vm1923_vm0, %v3314_v23, 0.0  ;;  %v3355_v42 = vrot.slane %v3354_v11, 1  ;;  %v3360_v61 = vrot.slane %v3359_v2, 2  ;;  %v3372_v10 = vrot.slane %v3371_v8, 4 }
 0x7a1   : > { %v3284_v12 = vpop.permute.xlu1 %3283  ;;  %v3379_v7 = vrot.slane %v3378_v38, 4  ;;  %v3395_v54 = vrot.slane %v3394_v46, 2 }
 0x7a2   : > { %v3317_v22 = vmul.f32 %v3284_v12, %v6594_v55  ;;  %v3361_v40 = vadd.f32 %v3360_v61, %v3359_v2  ;;  %v3373_v43 = vadd.f32 %v3372_v10, %v3371_v8  ;;  %v3356_v34 = vadd.f32 %v3355_v42, %v3354_v11 }
 0x7a3   : > { %v3380_v49 = vadd.f32 %v3379_v7, %v3378_v38  ;;  %v3396_v2 = vadd.f32 %v3395_v54, %v3394_v46  ;;  %v6598_v8 = vmax.f32 %v6082_v24, 0.0 }
 0x7a4   : > { %v3399_v37 = vsel %vm1923_vm0, %v3317_v22, 0.0  ;;  %v3362_v36 = vrot.slane %v3361_v40, 1  ;;  %v3374_v53 = vrot.slane %v3373_v43, 2  ;;  %v3457_v48 = vsel %vm3456_vm6, %v3356_v34, %v3455_v0  ;;  %v6599_v22 = vld [vmem:[#allocation32_spill] sm:$0xff] }
 0x7a5   : > { %v3274_v3 = vpop.permute.xlu1 %3273  ;;  %v3400_v31 = vrot.slane %v3399_v37, 4  ;;  %v3381_v45 = vrot.slane %v3380_v49, 2  ;;  %v3397_v7 = vrot.slane %v3396_v2, 1 }
 0x7a6   : > { %v3315_v6 = vmul.f32 %v3274_v3, %v6595_v44  ;;  %v3363_v21 = vadd.f32 %v3362_v36, %v3361_v40  ;;  %v3375_v18 = vadd.f32 %v3374_v53, %v3373_v43  ;;  %v6600_v40 = vmax.f32 %v6599_v22, 0.0 }
 0x7a7   : > { %v3401_v52 = vadd.f32 %v3400_v31, %v3399_v37  ;;  %v3382_v62 = vadd.f32 %v3381_v45, %v3380_v49  ;;  %v3398_v25 = vadd.f32 %v3397_v7, %v3396_v2 }
 0x7a8   : > { %v3385_v20 = vsel %vm1923_vm0, %v3315_v6, 0.0  ;;  %v3459_v9 = vsel %vm3458_vm7, %v3363_v21, %v3457_v48  ;;  %v3376_v58 = vrot.slane %v3375_v18, 1 }
 0x7a9   : > { %v3299_v28 = vpop.permute.xlu1 %3298  ;;  %v3386_v41 = vrot.slane %v3385_v20, 4  ;;  %v3461_v51 = vsel %vm3460_vm8, %v3370_v26, %v3459_v9  ;;  %v3402_v4 = vrot.slane %v3401_v52, 2  ;;  %v3383_v60 = vrot.slane %v3382_v62, 1 }
 0x7aa   : > { %v3320_v1 = vmul.f32 %v3299_v28, %v6596_v19  ;;  %v3377_v39 = vadd.f32 %v3376_v58, %v3375_v18 }
 0x7ab   : > { %v3387_v27 = vadd.f32 %v3386_v41, %v3385_v20  ;;  %v3403_v42 = vadd.f32 %v3402_v4, %v3401_v52  ;;  %v3384_v16 = vadd.f32 %v3383_v60, %v3382_v62 }
 0x7ac   : > { %v3420_v50 = vsel %vm1923_vm0, %v3320_v1, 0.0  ;;  %v3463_v32 = vsel %vm3462_vm9, %v3377_v39, %v3461_v51 }
 0x7ad   : > { %v3289_v30 = vpop.permute.xlu1 %3288  ;;  %v3388_v59 = vrot.slane %v3387_v27, 2  ;;  %v3421_v57 = vrot.slane %v3420_v50, 4  ;;  %3473 = vst.msk [vmem:[%s6436_s27] sm:$0xff] %vm1923_vm0, %v3463_v32  ;;  %v3404_v37 = vrot.slane %v3403_v42, 1 }
 0x7ae   : > { %v3318_v63 = vmul.f32 %v3289_v30, %v6597_v14 }
 0x7af   : > { %v3389_v33 = vadd.f32 %v3388_v59, %v3387_v27  ;;  %v3422_v13 = vadd.f32 %v3421_v57, %v3420_v50  ;;  %v3405_v18 = vadd.f32 %v3404_v37, %v3403_v42 }
 0x7b0   : > { %v3406_v5 = vsel %vm1923_vm0, %v3318_v63, 0.0 }
 0x7b1   : > { %v3407_v23 = vrot.slane %v3406_v5, 4  ;;  %v3294_v11 = vpop.permute.xlu1 %3293  ;;  %v3390_v56 = vrot.slane %v3389_v33, 1  ;;  %v3423_v55 = vrot.slane %v3422_v13, 2 }
 0x7b2   : > { %v3319_v38 = vmul.f32 %v3294_v11, %v6598_v8 }
 0x7b3   : > { %v3408_v12 = vadd.f32 %v3407_v23, %v3406_v5  ;;  %v3391_v10 = vadd.f32 %v3390_v56, %v3389_v33  ;;  %v3424_v49 = vadd.f32 %v3423_v55, %v3422_v13 }
 0x7b4   : > { %v3413_v61 = vsel %vm1923_vm0, %v3319_v38, 0.0 }
 0x7b5   : > { %v3409_v29 = vrot.slane %v3408_v12, 2  ;;  %v3414_v47 = vrot.slane %v3413_v61, 4  ;;  %v3304_v15 = vpop.permute.xlu1 %3303  ;;  %v3464_v3 = vsel %vm3450_vm3, %v3391_v10, %v3384_v16  ;;  %v3425_v46 = vrot.slane %v3424_v49, 1 }
 0x7b6   : > { %v3321_v43 = vmul.f32 %v3304_v15, %v6600_v40  ;;  %v3465_v0 = vsel %vm3452_vm4, %v3398_v25, %v3464_v3 }
 0x7b7   : > { %v3410_v34 = vadd.f32 %v3409_v29, %v3408_v12  ;;  %v3415_v35 = vadd.f32 %v3414_v47, %v3413_v61  ;;  %v3466_v20 = vsel %vm3454_vm5, %v3405_v18, %v3465_v0  ;;  %v3426_v45 = vadd.f32 %v3425_v46, %v3424_v49 }
 0x7b8   : > { %v3427_v24 = vsel %vm1923_vm0, %v3321_v43, 0.0 }
 0x7b9   : > { %v3411_v17 = vrot.slane %v3410_v34, 1  ;;  %v3416_v36 = vrot.slane %v3415_v35, 2  ;;  %v3428_v53 = vrot.slane %v3427_v24, 4 }
 0x7bb   : > { %v3417_v44 = vadd.f32 %v3416_v36, %v3415_v35  ;;  %v3429_v6 = vadd.f32 %v3428_v53, %v3427_v24  ;;  %v3412_v21 = vadd.f32 %v3411_v17, %v3410_v34 }
 0x7bd   : > { %v3418_v31 = vrot.slane %v3417_v44, 1  ;;  %v3430_v48 = vrot.slane %v3429_v6, 2  ;;  %v3467_v58 = vsel %vm3456_vm6, %v3412_v21, %v3466_v20 }
 0x7bf   : > { %v3419_v28 = vadd.f32 %v3418_v31, %v3417_v44  ;;  %v3431_v9 = vadd.f32 %v3430_v48, %v3429_v6 }
 0x7c0   : > { %3481 = sbr.rel (!%p6602_p5) target bundleno = 2040 (0x7f8), region = 128 }
 0x7c1   : > { %v3468_v41 = vsel %vm3458_vm7, %v3419_v28, %v3467_v58  ;;  %v3432_v26 = vrot.slane %v3431_v9, 1 }
 0x7c2   : > { %v3469_v1 = vsel %vm3460_vm8, %v3426_v45, %v3468_v41 }
 0x7c3   : > { %v3433_v19 = vadd.f32 %v3432_v26, %v3431_v9 }
 0x7c5   : > { %v3470_v39 = vsel %vm3462_vm9, %v3433_v19, %v3469_v1 }
 0x7c6   : > { %3474 = vst.msk [vmem:[%s6436_s27 + $0x8] sm:$0xff] %vm1923_vm0, %v3470_v39 }
 0x7c7   : > { %s6612_s6 = smov (!%p3484_p11, %s3483_s6), 2 }
 0x7c8   : > { %s3988_s23 = sshll.u32 %s6612_s6, 7 }
 0x7c9   : > { %p3991_p13 = scmp.eq.s32.totalorder %s3988_s23, 0 }
 0x7ca   : > { %s6469_s18 = sshrl.u32 (!%p3991_p13), %s6612_s6, 1 }
 0x7cb   : > { %3492 = sbr.rel (%p3991_p13) target bundleno = 2040 (0x7f8), region = 132  ;;  %p3992_p3 = scmp.le.s32.totalorder (!%p3991_p13), %s6469_s18, 0 }
 0x7d2   : > { %3675 = sbr.rel (%p3992_p3) target bundleno = 2019 (0x7e3), region = 220  ;;  %s5105_s30 = smov (!%p3992_p3), %s6463_s14  }
 0x7d3   : > { %s5109_s4 = smov (!%p3992_p3), %s6436_s27   ;;  %s5113_s19 = smov (!%p3992_p3), 0  }
 0x7d4   : > { %s5117_s24 = smov (!%p3992_p3), 0  }
 0x7d9 LB: >> { %v3556_v52 = vld [vmem:[%s5111_s4] sm:$0xff]  ;;  %v3558_v27 = vld [vmem:[%s5111_s4 + $0x8] sm:$0xff]  ;;  %s3560_s26 = sadd.s32 1, %s5115_s19  ;;  %s3550_s24 = sadd.s32 1, %s5119_s24   ;;  %s5119_s24 = sphi %s5117_s24, %s3550_s24   ;;  %s5115_s19 = sphi %s5113_s19, %s5114_s19   ;;  %s5111_s4 = sphi %s5109_s4, %s3565_s4   ;;  %s5107_s30 = sphi %s5105_s30, %s3566_s30  }
 0x7da   : >> { %3557 = vst [vmem:[%s5107_s30] sm:$0xff] %v3556_v52  ;;  %3559 = vst [vmem:[%s5107_s30 + $0x8] sm:$0xff] %v3558_v27  ;;  %p3561_p6 = scmp.ge.s32.totalorder %s3560_s26, %s6469_s18  ;;  %p3549_p7 = scmp.ge.s32.totalorder %s3550_s24, %s6469_s18 }
 0x7dc   : >> { %s6614_s26 = smov (%p3561_p6, %s3560_s26), 0  ;;  %3552 = sbr.rel (!%p3549_p7) target bundleno = 2009 (0x7d9), region = 226 }
 0x7dd   : >> { %s3993_s29 = sshll.u32 %s6614_s26, 4  ;;  %s5114_s19 = smov %s6614_s26  }
 0x7de   : >> { %s3565_s4 = scalar_lea.vmem %s6436_s27, %s3993_s29 [#allocation20]   ;;  %s3566_s30 = scalar_lea.vmem %s6463_s14, %s3993_s29  }
 0x7e3 PF: > { %s6479_s25 = sand.u32 1, %s6612_s6   ;;  %s4004_s15 = sshll.u32 %s6469_s18, 4 }
 0x7e4   : > { %s3571_s28 = scalar_lea.vmem %s6436_s27, %s4004_s15 [#allocation20]   ;;  %s3573_s2 = scalar_lea.vmem %s6463_s14, %s4004_s15  }
 0x7e5   : > { %p3998_p9 = scmp.le.s32.totalorder %s6479_s25, 0 }
 0x7e6   : > { %s5121_s17 = smov (!%p3998_p9), %s3573_s2   ;;  %s5125_s16 = smov (!%p3998_p9), %s3571_s28  }
 0x7e7   : > { %3689 = sbr.rel (%p3998_p9) target bundleno = 2040 (0x7f8), region = 231  ;;  %s5129_s3 = smov (!%p3998_p9), 0  }
 0x7e8   : > { %s5133_s20 = smov (!%p3998_p9), 0  }
 0x7ee LB: >> { %v3583_v51 = vld [vmem:[%s5127_s16] sm:$0xff]  ;;  %s3585_s6 = sadd.s32 1, %s5131_s3  ;;  %s3577_s20 = sadd.s32 1, %s5135_s20   ;;  %s5135_s20 = sphi %s5133_s20, %s3577_s20   ;;  %s5131_s3 = sphi %s5129_s3, %s5130_s3   ;;  %s5127_s16 = sphi %s5125_s16, %s3590_s16   ;;  %s5123_s17 = sphi %s5121_s17, %s3591_s17  }
 0x7ef   : >> { %3584 = vst [vmem:[%s5123_s17] sm:$0xff] %v3583_v51  ;;  %p3586_p12 = scmp.ge.s32.totalorder %s3585_s6, %s6479_s25  ;;  %p3576_p0 = scmp.ge.s32.totalorder %s3577_s20, %s6479_s25 }
 0x7f1   : >> { %s6616_s6 = smov (%p3586_p12, %s3585_s6), 0  ;;  %3579 = sbr.rel (!%p3576_p0) target bundleno = 2030 (0x7ee), region = 237 }
 0x7f2   : >> { %s3999_s27 = sshll.u32 %s6616_s6, 3  ;;  %s5130_s3 = smov %s6616_s6  }
 0x7f3   : >> { %s3590_s16 = scalar_lea.vmem %s3571_s28, %s3999_s27 [#allocation20]   ;;  %s3591_s17 = scalar_lea.vmem %s3573_s2, %s3999_s27  }
 0x7f8 PF: > { %s6604_s23 = sld [smem:[#allocation28_spill]]  ;;  %s6605_s14 = sld [smem:[#allocation29_spill]] }
 0x7f9   : > { %s6606_s20 = smov %s5095_s21  ;;  %s6607_s21 = smov %s5099_s22 }
 0x7fe   : > { %p32_p2 = scmp.ge.s32.totalorder %s6604_s23, 6   ;;  %s6608_s22 = smov %s6605_s14 }
 0x800   :  { %34 = sbr.rel (!%p32_p2) target bundleno = 15 (0xf), region = 248 }
 0x807   :  { %3607 = vsyncpa [#allocation4], 1 }
 0x808   :  { %3609 = vsyncpa [#allocation4 + $0x1], 1 }
 0x809   :  { %3610 = vsyncpa [#allocation6], 1 }
 0x80a   :  { %3611 = vsyncpa [#allocation9], 1 }
 0x80b   :  { %3612 = vsyncpa [#allocation12], 1 }
 0x80c   :  { %3613 = vsyncpa [#allocation15], 1 }
 0x80d   :  { %3614 = vsyncpa [#allocation18], 1 }

</bundles_post_ra>
